<compile_context>
chip_gen: v5e
topology: v5e:2x2
jax: 0.10.0
libtpu: 0.0.40
codegen_flags: <defaults>
</compile_context>

<pallas_src>
import math

import jax
import jax.numpy as jnp
from jax import lax
from jax.experimental import pallas as pl
from jax.experimental.pallas import tpu as pltpu  # noqa: F401  (TPU backend)

# ----------------------------- model config ---------------------------------
D_MODEL = 32
N_HEADS = 4
D_HEAD = D_MODEL // N_HEADS
D_FF = 64
N_LAYERS = 2
EPS = 1e-6
NEG_INF = -1e9


# --------------------------- in-kernel helpers -------------------------------
def _layer_norm(x2d, gamma, beta):
    # x2d: (M, D) f32; gamma/beta: (1, D) f32
    mean = jnp.mean(x2d, axis=-1, keepdims=True)
    c = x2d - mean
    var = jnp.mean(c * c, axis=-1, keepdims=True)
    return gamma * c * lax.rsqrt(var + EPS) + beta


def _attention(yq, kv, B, Tq, Tk, bias3, w_ref, b_ref, wo_ref, bo_ref, l):
    """Multi-head attention with ONE batched softmax over all (head, batch) pairs.

    yq   : (B*Tq, D) bf16  query-side activations (post-LayerNorm)
    kv   : (B*Tk, D) bf16  key/value-side activations
    bias3: (H*B, Tq, Tk) f32 additive mask bias, leading index = h*B + b
    w_ref : (L*3*H, D, D_HEAD) bf16  per-head Q/K/V weights (q-block, k-block, v-block)
    b_ref : (L*3*H, 1, D_HEAD) f32   per-head Q/K/V biases
    wo_ref: (L*H, D_HEAD, D) bf16    per-head slices of the output projection
    bo_ref: (L, 1, D) f32            output projection bias
    """
    base = l * 3 * N_HEADS
    q_blocks, k_blocks, v_blocks = [], [], []
    for h in range(N_HEADS):  # static unroll; per-head aligned matmuls (no lane slices)
        qh = jnp.dot(yq, w_ref[base + h],
                     preferred_element_type=jnp.float32) + b_ref[base + h]
        kh = jnp.dot(kv, w_ref[base + N_HEADS + h],
                     preferred_element_type=jnp.float32) + b_ref[base + N_HEADS + h]
        vh = jnp.dot(kv, w_ref[base + 2 * N_HEADS + h],
                     preferred_element_type=jnp.float32) + b_ref[base + 2 * N_HEADS + h]
        q_blocks.append(qh.reshape(B, Tq, D_HEAD))
        k_blocks.append(kh.reshape(B, Tk, D_HEAD))
        v_blocks.append(vh.reshape(B, Tk, D_HEAD))

    # Heads stacked along the leading (sublane-tile) axis: n = h*B + b.  Sublane
    # concatenation of 8-row blocks is essentially free (no XLU lane shuffles).
    q3 = jnp.concatenate(q_blocks, axis=0).astype(jnp.bfloat16)   # (H*B, Tq, Dh)
    k3 = jnp.concatenate(k_blocks, axis=0).astype(jnp.bfloat16)   # (H*B, Tk, Dh)
    v3 = jnp.concatenate(v_blocks, axis=0).astype(jnp.bfloat16)   # (H*B, Tk, Dh)

    # One batched score matmul + ONE softmax pass for all heads & batches.
    s = jnp.einsum('nqd,nkd->nqk', q3, k3, preferred_element_type=jnp.float32)
    s = s * (1.0 / math.sqrt(D_HEAD)) + bias3
    s = s - jnp.max(s, axis=-1, keepdims=True)
    p = jnp.exp(s)
    p = p * pl.reciprocal(jnp.sum(p, axis=-1, keepdims=True), approx=True)

    o3 = jnp.einsum('nqk,nkd->nqd', p.astype(jnp.bfloat16), v3,
                    preferred_element_type=jnp.float32)           # (H*B, Tq, Dh) f32
    # Regroup rows back to (b, t) order per head and fold Wo per head (no lane concat).
    o3 = o3.reshape(N_HEADS, B * Tq, D_HEAD).astype(jnp.bfloat16)

    out = bo_ref[l]                                               # (1, D) f32
    for h in range(N_HEADS):
        out = out + jnp.dot(o3[h], wo_ref[l * N_HEADS + h],
                            preferred_element_type=jnp.float32)
    return out                                                    # (B*Tq, D) f32


# ----------------------------- fused kernel ----------------------------------
def _decoder_kernel(
    x_ref, mem_ref, tgt_bias_ref, src_bias_ref,
    self_w_ref, self_b_ref, self_wo_ref, self_bo_ref,
    enc_w_ref, enc_b_ref, enc_wo_ref, enc_bo_ref,
    ff_w1_ref, ff_b1_ref, ff_w2_ref, ff_b2_ref,
    ln_g_ref, ln_b_ref, norm_g_ref, norm_b_ref,
    o_ref,
):
    HB, T, _ = tgt_bias_ref.shape
    S = src_bias_ref.shape[2]
    B = HB // N_HEADS

    x = x_ref[...]                                    # (B*T, D) f32 residual stream
    memb = mem_ref[...].astype(jnp.bfloat16)          # (B*S, D) bf16, loaded/cast once
    tgt_bias = tgt_bias_ref[...]                      # (H*B, T, T) hoisted bias load
    src_bias = src_bias_ref[...]                      # (H*B, T, S) hoisted bias load

    for l in range(N_LAYERS):                         # static unroll (L small)
        lng = ln_g_ref[l]                             # (3, D) loaded once per layer
        lnb = ln_b_ref[l]

        # ---- sublayer 0: masked self-attention ------------------------------
        y = _layer_norm(x, lng[0:1, :], lnb[0:1, :]).astype(jnp.bfloat16)
        x = x + _attention(y, y, B, T, T, tgt_bias,
                           self_w_ref, self_b_ref, self_wo_ref, self_bo_ref, l)

        # ---- sublayer 1: encoder-decoder attention ---------------------------
        # K/V projections depend only on `memb` (x-invariant); single straight-line
        # block lets the LLO scheduler overlap them with the self-attn chain above.
        y = _layer_norm(x, lng[1:2, :], lnb[1:2, :]).astype(jnp.bfloat16)
        x = x + _attention(y, memb, B, T, S, src_bias,
                           enc_w_ref, enc_b_ref, enc_wo_ref, enc_bo_ref, l)

        # ---- sublayer 2: position-wise feed-forward --------------------------
        y = _layer_norm(x, lng[2:3, :], lnb[2:3, :]).astype(jnp.bfloat16)
        h1 = jnp.dot(y, ff_w1_ref[l], preferred_element_type=jnp.float32) + ff_b1_ref[l]
        h1 = jnp.maximum(h1, 0.0).astype(jnp.bfloat16)
        x = x + jnp.dot(h1, ff_w2_ref[l],
                        preferred_element_type=jnp.float32) + ff_b2_ref[l]

    # ---- final LayerNorm -----------------------------------------------------
    o_ref[...] = _layer_norm(x, norm_g_ref[...], norm_b_ref[...])


# ------------------------- host-side weight packing --------------------------
def _pack_attn(w_fused, b_fused, wo, bo):
    """Split fused (L, D, 3D) QKV weights into per-head, lane-aligned bf16 operands."""
    L = w_fused.shape[0]
    w = (w_fused.reshape(L, D_MODEL, 3, N_HEADS, D_HEAD)
                .transpose(0, 2, 3, 1, 4)                       # (L, 3, H, D, Dh)
                .reshape(L * 3 * N_HEADS, D_MODEL, D_HEAD)
                .astype(jnp.bfloat16))
    b = (b_fused.reshape(L, 1, 3, N_HEADS, D_HEAD)
                .transpose(0, 2, 3, 1, 4)                       # (L, 3, H, 1, Dh)
                .reshape(L * 3 * N_HEADS, 1, D_HEAD)
                .astype(jnp.float32))
    wo_h = (wo.reshape(L, N_HEADS, D_HEAD, D_MODEL)
              .reshape(L * N_HEADS, D_HEAD, D_MODEL)
              .astype(jnp.bfloat16))
    return w, b, wo_h, bo.astype(jnp.float32)


# ----------------------------- wrapper ---------------------------------------
def decoder_forward(params, x, memory, src_mask, tgt_mask):
    # x: (B, T, D), memory: (B, S, D)
    # src_mask: (B, 1, S) 1=keep/0=mask; tgt_mask: (B, T, T) (causal & padding)
    B, T, D = x.shape
    S = memory.shape[1]
    f32 = jnp.float32

    tgt_bias = (1.0 - tgt_mask.astype(f32)) * NEG_INF                          # (B,T,T)
    src_bias = (1.0 - jnp.broadcast_to(src_mask.astype(f32), (B, T, S))) * NEG_INF
    # Pre-broadcast to the (head, batch)-batched layout used by the in-kernel softmax.
    tgt_bias3 = jnp.broadcast_to(tgt_bias[None], (N_HEADS, B, T, T)).reshape(N_HEADS * B, T, T)
    src_bias3 = jnp.broadcast_to(src_bias[None], (N_HEADS, B, T, S)).reshape(N_HEADS * B, T, S)

    self_w, self_b, self_wo, self_bo = _pack_attn(
        params["self_wqkv"], params["self_bqkv"], params["self_wo"], params["self_bo"])
    enc_w, enc_b, enc_wo, enc_bo = _pack_attn(
        params["enc_wqkv"], params["enc_bqkv"], params["enc_wo"], params["enc_bo"])

    out2d = pl.pallas_call(
        _decoder_kernel,
        out_shape=jax.ShapeDtypeStruct((B * T, D), f32),
    )(
        x.reshape(B * T, D).astype(f32),
        memory.reshape(B * S, D).astype(f32),
        tgt_bias3, src_bias3,
        self_w, self_b, self_wo, self_bo,
        enc_w, enc_b, enc_wo, enc_bo,
        params["ff_w1"].astype(jnp.bfloat16), params["ff_b1"],
        params["ff_w2"].astype(jnp.bfloat16), params["ff_b2"],
        params["ln_g"], params["ln_b"], params["norm_g"], params["norm_b"],
    )
    return out2d.reshape(B, T, D)


# ------------------------- pure-JAX reference --------------------------------
def decoder_reference(params, x, memory, src_mask, tgt_mask):
    B, T, D = x.shape
    S = memory.shape[1]
    tgt_bias = (1.0 - tgt_mask.astype(jnp.float32)) * NEG_INF
    src_bias = (1.0 - jnp.broadcast_to(src_mask.astype(jnp.float32), (B, T, S))) * NEG_INF

    def ln(x2, g, b):
        mean = jnp.mean(x2, -1, keepdims=True)
        var = jnp.mean((x2 - mean) ** 2, -1, keepdims=True)
        return g * (x2 - mean) / jnp.sqrt(var + EPS) + b

    def mha(q2, k2, v2, nq, nkv, bias, wo, bo):
        q = q2.reshape(B, nq, N_HEADS, D_HEAD).transpose(0, 2, 1, 3)
        k = k2.reshape(B, nkv, N_HEADS, D_HEAD).transpose(0, 2, 1, 3)
        v = v2.reshape(B, nkv, N_HEADS, D_HEAD).transpose(0, 2, 1, 3)
        s = jnp.einsum("bhqd,bhkd->bhqk", q, k) / math.sqrt(D_HEAD) + bias[:, None]
        p = jax.nn.softmax(s, axis=-1)
        o = jnp.einsum("bhqk,bhkd->bhqd", p, v).transpose(0, 2, 1, 3).reshape(B * nq, D)
        return o @ wo + bo

    x2 = x.reshape(B * T, D)
    mem2 = memory.reshape(B * S, D)
    for l in range(N_LAYERS):
        y = ln(x2, params["ln_g"][l, 0:1], params["ln_b"][l, 0:1])
        qkv = y @ params["self_wqkv"][l] + params["self_bqkv"][l]
        x2 = x2 + mha(qkv[:, :D], qkv[:, D:2 * D], qkv[:, 2 * D:], T, T, tgt_bias,
                      params["self_wo"][l], params["self_bo"][l])
        y = ln(x2, params["ln_g"][l, 1:2], params["ln_b"][l, 1:2])
        q = y @ params["enc_wqkv"][l][:, :D] + params["enc_bqkv"][l][:, :D]
        kv = mem2 @ params["enc_wqkv"][l][:, D:] + params["enc_bqkv"][l][:, D:]
        x2 = x2 + mha(q, kv[:, :D], kv[:, D:], T, S, src_bias,
                      params["enc_wo"][l], params["enc_bo"][l])
        y = ln(x2, params["ln_g"][l, 2:3], params["ln_b"][l, 2:3])
        h = jnp.maximum(y @ params["ff_w1"][l] + params["ff_b1"][l], 0.0)
        x2 = x2 + h @ params["ff_w2"][l] + params["ff_b2"][l]
    return ln(x2, params["norm_g"], params["norm_b"]).reshape(B, T, D)


# ----------------------------- parameter init -------------------------------
def init_decoder_params(key):
    scale = 0.02
    names = ["self_wqkv", "self_bqkv", "self_wo", "self_bo",
             "enc_wqkv", "enc_bqkv", "enc_wo", "enc_bo",
             "ff_w1", "ff_b1", "ff_w2", "ff_b2", "ln_g", "ln_b"]
    acc = {n: [] for n in names}
    for _ in range(N_LAYERS):
        key, k1, k2, k3, k4, k5, k6 = jax.random.split(key, 7)
        acc["self_wqkv"].append(scale * jax.random.normal(k1, (D_MODEL, 3 * D_MODEL), jnp.float32))
        acc["self_bqkv"].append(jnp.zeros((1, 3 * D_MODEL), jnp.float32))
        acc["self_wo"].append(scale * jax.random.normal(k2, (D_MODEL, D_MODEL), jnp.float32))
        acc["self_bo"].append(jnp.zeros((1, D_MODEL), jnp.float32))
        acc["enc_wqkv"].append(scale * jax.random.normal(k3, (D_MODEL, 3 * D_MODEL), jnp.float32))
        acc["enc_bqkv"].append(jnp.zeros((1, 3 * D_MODEL), jnp.float32))
        acc["enc_wo"].append(scale * jax.random.normal(k4, (D_MODEL, D_MODEL), jnp.float32))
        acc["enc_bo"].append(jnp.zeros((1, D_MODEL), jnp.float32))
        acc["ff_w1"].append(scale * jax.random.normal(k5, (D_MODEL, D_FF), jnp.float32))
        acc["ff_b1"].append(jnp.zeros((1, D_FF), jnp.float32))
        acc["ff_w2"].append(scale * jax.random.normal(k6, (D_FF, D_MODEL), jnp.float32))
        acc["ff_b2"].append(jnp.zeros((1, D_MODEL), jnp.float32))
        acc["ln_g"].append(jnp.ones((3, D_MODEL), jnp.float32))
        acc["ln_b"].append(jnp.zeros((3, D_MODEL), jnp.float32))
    params = {n: jnp.stack(v) for n, v in acc.items()}
    params["norm_g"] = jnp.ones((1, D_MODEL), jnp.float32)
    params["norm_b"] = jnp.zeros((1, D_MODEL), jnp.float32)
    return params


# --------------------------------- main --------------------------------------
if __name__ == "__main__":
    B, T, S = 2, 8, 8

    key = jax.random.PRNGKey(0)
    k_x, k_mem, k_params = jax.random.split(key, 3)

    x = jax.random.normal(k_x, (B, T, D_MODEL), jnp.float32)
    memory = jax.random.normal(k_mem, (B, S, D_MODEL), jnp.float32)

    # src_mask: all-ones padding mask (B, 1, S); tgt_mask: causal mask (B, T, T)
    src_mask = jnp.ones((B, 1, S), jnp.float32)
    tgt_mask = jnp.broadcast_to(
        jnp.tril(jnp.ones((T, T), jnp.float32))[None, :, :], (B, T, T)
    )

    params = init_decoder_params(k_params)

    out = jax.jit(decoder_forward)(params, x, memory, src_mask, tgt_mask)
    out = jax.block_until_ready(out)

    assert out.shape == (B, T, D_MODEL), out.shape
    assert jnp.all(jnp.isfinite(out))

    # Loose tolerance: kernel uses bf16 matmul operands + approx EUP reciprocal in softmax.
    ref = decoder_reference(params, x, memory, src_mask, tgt_mask)
    max_err = float(jnp.max(jnp.abs(out - ref)))
    assert max_err < 5e-2, max_err

    print("KERNEL_OK")
</pallas_src>

<mosaic_0001>
module attributes {stable_mosaic.version = 11 : i64} {
  func.func @_decoder_kernel(%arg0: memref<16x32xf32, #tpu.memory_space<vmem>>, %arg1: memref<16x32xf32, #tpu.memory_space<vmem>>, %arg2: memref<8x8x8xf32, #tpu.memory_space<vmem>>, %arg3: memref<8x8x8xf32, #tpu.memory_space<vmem>>, %arg4: memref<24x32x8xbf16, #tpu.memory_space<vmem>>, %arg5: memref<24x1x8xf32, #tpu.memory_space<vmem>>, %arg6: memref<8x8x32xbf16, #tpu.memory_space<vmem>>, %arg7: memref<2x1x32xf32, #tpu.memory_space<vmem>>, %arg8: memref<24x32x8xbf16, #tpu.memory_space<vmem>>, %arg9: memref<24x1x8xf32, #tpu.memory_space<vmem>>, %arg10: memref<8x8x32xbf16, #tpu.memory_space<vmem>>, %arg11: memref<2x1x32xf32, #tpu.memory_space<vmem>>, %arg12: memref<2x32x64xbf16, #tpu.memory_space<vmem>>, %arg13: memref<2x1x64xf32, #tpu.memory_space<vmem>>, %arg14: memref<2x64x32xbf16, #tpu.memory_space<vmem>>, %arg15: memref<2x1x32xf32, #tpu.memory_space<vmem>>, %arg16: memref<2x3x32xf32, #tpu.memory_space<vmem>>, %arg17: memref<2x3x32xf32, #tpu.memory_space<vmem>>, %arg18: memref<1x32xf32, #tpu.memory_space<vmem>>, %arg19: memref<1x32xf32, #tpu.memory_space<vmem>>, %arg20: memref<16x32xf32, #tpu.memory_space<vmem>>) attributes {dimension_semantics = [], scalar_prefetch = 0 : i64, scratch_operands = 0 : i64, tpu.core_type = #tpu.core_type<tc>} {
    %c0 = arith.constant 0 : index
    %c0_0 = arith.constant 0 : index
    %0 = vector.load %arg0[%c0, %c0_0] : memref<16x32xf32, #tpu.memory_space<vmem>>, vector<16x32xf32>
    %c0_1 = arith.constant 0 : index
    %c0_2 = arith.constant 0 : index
    %1 = vector.load %arg1[%c0_1, %c0_2] : memref<16x32xf32, #tpu.memory_space<vmem>>, vector<16x32xf32>
    %2 = arith.truncf %1 : vector<16x32xf32> to vector<16x32xbf16>
    %c0_3 = arith.constant 0 : index
    %c0_4 = arith.constant 0 : index
    %c0_5 = arith.constant 0 : index
    %3 = vector.load %arg2[%c0_3, %c0_4, %c0_5] : memref<8x8x8xf32, #tpu.memory_space<vmem>>, vector<8x8x8xf32>
    %c0_6 = arith.constant 0 : index
    %c0_7 = arith.constant 0 : index
    %c0_8 = arith.constant 0 : index
    %4 = vector.load %arg3[%c0_6, %c0_7, %c0_8] : memref<8x8x8xf32, #tpu.memory_space<vmem>>, vector<8x8x8xf32>
    %c0_9 = arith.constant 0 : index
    %c0_10 = arith.constant 0 : index
    %c0_11 = arith.constant 0 : index
    %5 = vector.load %arg16[%c0_9, %c0_10, %c0_11] : memref<2x3x32xf32, #tpu.memory_space<vmem>>, vector<1x3x32xf32>
    %6 = vector.shape_cast %5 : vector<1x3x32xf32> to vector<3x32xf32>
    %c0_12 = arith.constant 0 : index
    %c0_13 = arith.constant 0 : index
    %c0_14 = arith.constant 0 : index
    %7 = vector.load %arg17[%c0_12, %c0_13, %c0_14] : memref<2x3x32xf32, #tpu.memory_space<vmem>>, vector<1x3x32xf32>
    %8 = vector.shape_cast %7 : vector<1x3x32xf32> to vector<3x32xf32>
    %9 = vector.extract_strided_slice %6 {offsets = [0, 0], sizes = [1, 32], strides = [1, 1]} : vector<3x32xf32> to vector<1x32xf32>
    %10 = vector.extract_strided_slice %8 {offsets = [0, 0], sizes = [1, 32], strides = [1, 1]} : vector<3x32xf32> to vector<1x32xf32>
    %cst = arith.constant dense<0.000000e+00> : vector<16xf32>
    %11 = vector.multi_reduction <add>, %0, %cst [1] : vector<16x32xf32> to vector<16xf32>
    %12 = vector.shape_cast %11 : vector<16xf32> to vector<16x1xf32>
    %cst_15 = arith.constant 3.200000e+01 : f32
    %13 = vector.broadcast %cst_15 : f32 to vector<16x1xf32>
    %14 = arith.divf %12, %13 : vector<16x1xf32>
    %15 = vector.broadcast %14 : vector<16x1xf32> to vector<16x32xf32>
    %16 = arith.subf %0, %15 : vector<16x32xf32>
    %17 = arith.mulf %16, %16 : vector<16x32xf32>
    %cst_16 = arith.constant dense<0.000000e+00> : vector<16xf32>
    %18 = vector.multi_reduction <add>, %17, %cst_16 [1] : vector<16x32xf32> to vector<16xf32>
    %19 = vector.shape_cast %18 : vector<16xf32> to vector<16x1xf32>
    %cst_17 = arith.constant 3.200000e+01 : f32
    %20 = vector.broadcast %cst_17 : f32 to vector<16x1xf32>
    %21 = arith.divf %19, %20 : vector<16x1xf32>
    %22 = vector.broadcast %9 : vector<1x32xf32> to vector<16x32xf32>
    %23 = arith.mulf %22, %16 : vector<16x32xf32>
    %cst_18 = arith.constant 9.99999997E-7 : f32
    %24 = vector.broadcast %cst_18 : f32 to vector<16x1xf32>
    %25 = arith.addf %21, %24 : vector<16x1xf32>
    %26 = math.rsqrt %25 : vector<16x1xf32>
    %27 = vector.broadcast %26 : vector<16x1xf32> to vector<16x32xf32>
    %28 = arith.mulf %23, %27 : vector<16x32xf32>
    %29 = vector.broadcast %10 : vector<1x32xf32> to vector<16x32xf32>
    %30 = arith.addf %28, %29 : vector<16x32xf32>
    %31 = arith.truncf %30 : vector<16x32xf32> to vector<16x32xbf16>
    %c0_19 = arith.constant 0 : index
    %c0_20 = arith.constant 0 : index
    %c0_21 = arith.constant 0 : index
    %32 = vector.load %arg4[%c0_19, %c0_20, %c0_21] : memref<24x32x8xbf16, #tpu.memory_space<vmem>>, vector<1x32x8xbf16>
    %33 = vector.shape_cast %32 : vector<1x32x8xbf16> to vector<32x8xbf16>
    %cst_22 = arith.constant dense<0.000000e+00> : vector<16x8xf32>
    %34 = tpu.matmul %31, %33, %cst_22 {dimension_numbers = #tpu.dot_dimension_numbers<[1], [0], [0], [1], [0, 0, 1, 1], [], []>} : vector<16x32xbf16>, vector<32x8xbf16>, vector<16x8xf32> -> vector<16x8xf32>
    %c0_23 = arith.constant 0 : index
    %c0_24 = arith.constant 0 : index
    %c0_25 = arith.constant 0 : index
    %35 = vector.load %arg5[%c0_23, %c0_24, %c0_25] : memref<24x1x8xf32, #tpu.memory_space<vmem>>, vector<1x1x8xf32>
    %36 = vector.shape_cast %35 : vector<1x1x8xf32> to vector<1x8xf32>
    %37 = vector.broadcast %36 : vector<1x8xf32> to vector<16x8xf32>
    %38 = arith.addf %34, %37 : vector<16x8xf32>
    %c4 = arith.constant 4 : index
    %c0_26 = arith.constant 0 : index
    %c0_27 = arith.constant 0 : index
    %39 = vector.load %arg4[%c4, %c0_26, %c0_27] : memref<24x32x8xbf16, #tpu.memory_space<vmem>>, vector<1x32x8xbf16>
    %40 = vector.shape_cast %39 : vector<1x32x8xbf16> to vector<32x8xbf16>
    %cst_28 = arith.constant dense<0.000000e+00> : vector<16x8xf32>
    %41 = tpu.matmul %31, %40, %cst_28 {dimension_numbers = #tpu.dot_dimension_numbers<[1], [0], [0], [1], [0, 0, 1, 1], [], []>} : vector<16x32xbf16>, vector<32x8xbf16>, vector<16x8xf32> -> vector<16x8xf32>
    %c4_29 = arith.constant 4 : index
    %c0_30 = arith.constant 0 : index
    %c0_31 = arith.constant 0 : index
    %42 = vector.load %arg5[%c4_29, %c0_30, %c0_31] : memref<24x1x8xf32, #tpu.memory_space<vmem>>, vector<1x1x8xf32>
    %43 = vector.shape_cast %42 : vector<1x1x8xf32> to vector<1x8xf32>
    %44 = vector.broadcast %43 : vector<1x8xf32> to vector<16x8xf32>
    %45 = arith.addf %41, %44 : vector<16x8xf32>
    %c8 = arith.constant 8 : index
    %c0_32 = arith.constant 0 : index
    %c0_33 = arith.constant 0 : index
    %46 = vector.load %arg4[%c8, %c0_32, %c0_33] : memref<24x32x8xbf16, #tpu.memory_space<vmem>>, vector<1x32x8xbf16>
    %47 = vector.shape_cast %46 : vector<1x32x8xbf16> to vector<32x8xbf16>
    %cst_34 = arith.constant dense<0.000000e+00> : vector<16x8xf32>
    %48 = tpu.matmul %31, %47, %cst_34 {dimension_numbers = #tpu.dot_dimension_numbers<[1], [0], [0], [1], [0, 0, 1, 1], [], []>} : vector<16x32xbf16>, vector<32x8xbf16>, vector<16x8xf32> -> vector<16x8xf32>
    %c8_35 = arith.constant 8 : index
    %c0_36 = arith.constant 0 : index
    %c0_37 = arith.constant 0 : index
    %49 = vector.load %arg5[%c8_35, %c0_36, %c0_37] : memref<24x1x8xf32, #tpu.memory_space<vmem>>, vector<1x1x8xf32>
    %50 = vector.shape_cast %49 : vector<1x1x8xf32> to vector<1x8xf32>
    %51 = vector.broadcast %50 : vector<1x8xf32> to vector<16x8xf32>
    %52 = arith.addf %48, %51 : vector<16x8xf32>
    %53 = vector.shape_cast %38 : vector<16x8xf32> to vector<2x8x8xf32>
    %54 = vector.shape_cast %45 : vector<16x8xf32> to vector<2x8x8xf32>
    %55 = vector.shape_cast %52 : vector<16x8xf32> to vector<2x8x8xf32>
    %c1 = arith.constant 1 : index
    %c0_38 = arith.constant 0 : index
    %c0_39 = arith.constant 0 : index
    %56 = vector.load %arg4[%c1, %c0_38, %c0_39] : memref<24x32x8xbf16, #tpu.memory_space<vmem>>, vector<1x32x8xbf16>
    %57 = vector.shape_cast %56 : vector<1x32x8xbf16> to vector<32x8xbf16>
    %cst_40 = arith.constant dense<0.000000e+00> : vector<16x8xf32>
    %58 = tpu.matmul %31, %57, %cst_40 {dimension_numbers = #tpu.dot_dimension_numbers<[1], [0], [0], [1], [0, 0, 1, 1], [], []>} : vector<16x32xbf16>, vector<32x8xbf16>, vector<16x8xf32> -> vector<16x8xf32>
    %c1_41 = arith.constant 1 : index
    %c0_42 = arith.constant 0 : index
    %c0_43 = arith.constant 0 : index
    %59 = vector.load %arg5[%c1_41, %c0_42, %c0_43] : memref<24x1x8xf32, #tpu.memory_space<vmem>>, vector<1x1x8xf32>
    %60 = vector.shape_cast %59 : vector<1x1x8xf32> to vector<1x8xf32>
    %61 = vector.broadcast %60 : vector<1x8xf32> to vector<16x8xf32>
    %62 = arith.addf %58, %61 : vector<16x8xf32>
    %c5 = arith.constant 5 : index
    %c0_44 = arith.constant 0 : index
    %c0_45 = arith.constant 0 : index
    %63 = vector.load %arg4[%c5, %c0_44, %c0_45] : memref<24x32x8xbf16, #tpu.memory_space<vmem>>, vector<1x32x8xbf16>
    %64 = vector.shape_cast %63 : vector<1x32x8xbf16> to vector<32x8xbf16>
    %cst_46 = arith.constant dense<0.000000e+00> : vector<16x8xf32>
    %65 = tpu.matmul %31, %64, %cst_46 {dimension_numbers = #tpu.dot_dimension_numbers<[1], [0], [0], [1], [0, 0, 1, 1], [], []>} : vector<16x32xbf16>, vector<32x8xbf16>, vector<16x8xf32> -> vector<16x8xf32>
    %c5_47 = arith.constant 5 : index
    %c0_48 = arith.constant 0 : index
    %c0_49 = arith.constant 0 : index
    %66 = vector.load %arg5[%c5_47, %c0_48, %c0_49] : memref<24x1x8xf32, #tpu.memory_space<vmem>>, vector<1x1x8xf32>
    %67 = vector.shape_cast %66 : vector<1x1x8xf32> to vector<1x8xf32>
    %68 = vector.broadcast %67 : vector<1x8xf32> to vector<16x8xf32>
    %69 = arith.addf %65, %68 : vector<16x8xf32>
    %c9 = arith.constant 9 : index
    %c0_50 = arith.constant 0 : index
    %c0_51 = arith.constant 0 : index
    %70 = vector.load %arg4[%c9, %c0_50, %c0_51] : memref<24x32x8xbf16, #tpu.memory_space<vmem>>, vector<1x32x8xbf16>
    %71 = vector.shape_cast %70 : vector<1x32x8xbf16> to vector<32x8xbf16>
    %cst_52 = arith.constant dense<0.000000e+00> : vector<16x8xf32>
    %72 = tpu.matmul %31, %71, %cst_52 {dimension_numbers = #tpu.dot_dimension_numbers<[1], [0], [0], [1], [0, 0, 1, 1], [], []>} : vector<16x32xbf16>, vector<32x8xbf16>, vector<16x8xf32> -> vector<16x8xf32>
    %c9_53 = arith.constant 9 : index
    %c0_54 = arith.constant 0 : index
    %c0_55 = arith.constant 0 : index
    %73 = vector.load %arg5[%c9_53, %c0_54, %c0_55] : memref<24x1x8xf32, #tpu.memory_space<vmem>>, vector<1x1x8xf32>
    %74 = vector.shape_cast %73 : vector<1x1x8xf32> to vector<1x8xf32>
    %75 = vector.broadcast %74 : vector<1x8xf32> to vector<16x8xf32>
    %76 = arith.addf %72, %75 : vector<16x8xf32>
    %77 = vector.shape_cast %62 : vector<16x8xf32> to vector<2x8x8xf32>
    %78 = vector.shape_cast %69 : vector<16x8xf32> to vector<2x8x8xf32>
    %79 = vector.shape_cast %76 : vector<16x8xf32> to vector<2x8x8xf32>
    %c2 = arith.constant 2 : index
    %c0_56 = arith.constant 0 : index
    %c0_57 = arith.constant 0 : index
    %80 = vector.load %arg4[%c2, %c0_56, %c0_57] : memref<24x32x8xbf16, #tpu.memory_space<vmem>>, vector<1x32x8xbf16>
    %81 = vector.shape_cast %80 : vector<1x32x8xbf16> to vector<32x8xbf16>
    %cst_58 = arith.constant dense<0.000000e+00> : vector<16x8xf32>
    %82 = tpu.matmul %31, %81, %cst_58 {dimension_numbers = #tpu.dot_dimension_numbers<[1], [0], [0], [1], [0, 0, 1, 1], [], []>} : vector<16x32xbf16>, vector<32x8xbf16>, vector<16x8xf32> -> vector<16x8xf32>
    %c2_59 = arith.constant 2 : index
    %c0_60 = arith.constant 0 : index
    %c0_61 = arith.constant 0 : index
    %83 = vector.load %arg5[%c2_59, %c0_60, %c0_61] : memref<24x1x8xf32, #tpu.memory_space<vmem>>, vector<1x1x8xf32>
    %84 = vector.shape_cast %83 : vector<1x1x8xf32> to vector<1x8xf32>
    %85 = vector.broadcast %84 : vector<1x8xf32> to vector<16x8xf32>
    %86 = arith.addf %82, %85 : vector<16x8xf32>
    %c6 = arith.constant 6 : index
    %c0_62 = arith.constant 0 : index
    %c0_63 = arith.constant 0 : index
    %87 = vector.load %arg4[%c6, %c0_62, %c0_63] : memref<24x32x8xbf16, #tpu.memory_space<vmem>>, vector<1x32x8xbf16>
    %88 = vector.shape_cast %87 : vector<1x32x8xbf16> to vector<32x8xbf16>
    %cst_64 = arith.constant dense<0.000000e+00> : vector<16x8xf32>
    %89 = tpu.matmul %31, %88, %cst_64 {dimension_numbers = #tpu.dot_dimension_numbers<[1], [0], [0], [1], [0, 0, 1, 1], [], []>} : vector<16x32xbf16>, vector<32x8xbf16>, vector<16x8xf32> -> vector<16x8xf32>
    %c6_65 = arith.constant 6 : index
    %c0_66 = arith.constant 0 : index
    %c0_67 = arith.constant 0 : index
    %90 = vector.load %arg5[%c6_65, %c0_66, %c0_67] : memref<24x1x8xf32, #tpu.memory_space<vmem>>, vector<1x1x8xf32>
    %91 = vector.shape_cast %90 : vector<1x1x8xf32> to vector<1x8xf32>
    %92 = vector.broadcast %91 : vector<1x8xf32> to vector<16x8xf32>
    %93 = arith.addf %89, %92 : vector<16x8xf32>
    %c10 = arith.constant 10 : index
    %c0_68 = arith.constant 0 : index
    %c0_69 = arith.constant 0 : index
    %94 = vector.load %arg4[%c10, %c0_68, %c0_69] : memref<24x32x8xbf16, #tpu.memory_space<vmem>>, vector<1x32x8xbf16>
    %95 = vector.shape_cast %94 : vector<1x32x8xbf16> to vector<32x8xbf16>
    %cst_70 = arith.constant dense<0.000000e+00> : vector<16x8xf32>
    %96 = tpu.matmul %31, %95, %cst_70 {dimension_numbers = #tpu.dot_dimension_numbers<[1], [0], [0], [1], [0, 0, 1, 1], [], []>} : vector<16x32xbf16>, vector<32x8xbf16>, vector<16x8xf32> -> vector<16x8xf32>
    %c10_71 = arith.constant 10 : index
    %c0_72 = arith.constant 0 : index
    %c0_73 = arith.constant 0 : index
    %97 = vector.load %arg5[%c10_71, %c0_72, %c0_73] : memref<24x1x8xf32, #tpu.memory_space<vmem>>, vector<1x1x8xf32>
    %98 = vector.shape_cast %97 : vector<1x1x8xf32> to vector<1x8xf32>
    %99 = vector.broadcast %98 : vector<1x8xf32> to vector<16x8xf32>
    %100 = arith.addf %96, %99 : vector<16x8xf32>
    %101 = vector.shape_cast %86 : vector<16x8xf32> to vector<2x8x8xf32>
    %102 = vector.shape_cast %93 : vector<16x8xf32> to vector<2x8x8xf32>
    %103 = vector.shape_cast %100 : vector<16x8xf32> to vector<2x8x8xf32>
    %c3 = arith.constant 3 : index
    %c0_74 = arith.constant 0 : index
    %c0_75 = arith.constant 0 : index
    %104 = vector.load %arg4[%c3, %c0_74, %c0_75] : memref<24x32x8xbf16, #tpu.memory_space<vmem>>, vector<1x32x8xbf16>
    %105 = vector.shape_cast %104 : vector<1x32x8xbf16> to vector<32x8xbf16>
    %cst_76 = arith.constant dense<0.000000e+00> : vector<16x8xf32>
    %106 = tpu.matmul %31, %105, %cst_76 {dimension_numbers = #tpu.dot_dimension_numbers<[1], [0], [0], [1], [0, 0, 1, 1], [], []>} : vector<16x32xbf16>, vector<32x8xbf16>, vector<16x8xf32> -> vector<16x8xf32>
    %c3_77 = arith.constant 3 : index
    %c0_78 = arith.constant 0 : index
    %c0_79 = arith.constant 0 : index
    %107 = vector.load %arg5[%c3_77, %c0_78, %c0_79] : memref<24x1x8xf32, #tpu.memory_space<vmem>>, vector<1x1x8xf32>
    %108 = vector.shape_cast %107 : vector<1x1x8xf32> to vector<1x8xf32>
    %109 = vector.broadcast %108 : vector<1x8xf32> to vector<16x8xf32>
    %110 = arith.addf %106, %109 : vector<16x8xf32>
    %c7 = arith.constant 7 : index
    %c0_80 = arith.constant 0 : index
    %c0_81 = arith.constant 0 : index
    %111 = vector.load %arg4[%c7, %c0_80, %c0_81] : memref<24x32x8xbf16, #tpu.memory_space<vmem>>, vector<1x32x8xbf16>
    %112 = vector.shape_cast %111 : vector<1x32x8xbf16> to vector<32x8xbf16>
    %cst_82 = arith.constant dense<0.000000e+00> : vector<16x8xf32>
    %113 = tpu.matmul %31, %112, %cst_82 {dimension_numbers = #tpu.dot_dimension_numbers<[1], [0], [0], [1], [0, 0, 1, 1], [], []>} : vector<16x32xbf16>, vector<32x8xbf16>, vector<16x8xf32> -> vector<16x8xf32>
    %c7_83 = arith.constant 7 : index
    %c0_84 = arith.constant 0 : index
    %c0_85 = arith.constant 0 : index
    %114 = vector.load %arg5[%c7_83, %c0_84, %c0_85] : memref<24x1x8xf32, #tpu.memory_space<vmem>>, vector<1x1x8xf32>
    %115 = vector.shape_cast %114 : vector<1x1x8xf32> to vector<1x8xf32>
    %116 = vector.broadcast %115 : vector<1x8xf32> to vector<16x8xf32>
    %117 = arith.addf %113, %116 : vector<16x8xf32>
    %c11 = arith.constant 11 : index
    %c0_86 = arith.constant 0 : index
    %c0_87 = arith.constant 0 : index
    %118 = vector.load %arg4[%c11, %c0_86, %c0_87] : memref<24x32x8xbf16, #tpu.memory_space<vmem>>, vector<1x32x8xbf16>
    %119 = vector.shape_cast %118 : vector<1x32x8xbf16> to vector<32x8xbf16>
    %cst_88 = arith.constant dense<0.000000e+00> : vector<16x8xf32>
    %120 = tpu.matmul %31, %119, %cst_88 {dimension_numbers = #tpu.dot_dimension_numbers<[1], [0], [0], [1], [0, 0, 1, 1], [], []>} : vector<16x32xbf16>, vector<32x8xbf16>, vector<16x8xf32> -> vector<16x8xf32>
    %c11_89 = arith.constant 11 : index
    %c0_90 = arith.constant 0 : index
    %c0_91 = arith.constant 0 : index
    %121 = vector.load %arg5[%c11_89, %c0_90, %c0_91] : memref<24x1x8xf32, #tpu.memory_space<vmem>>, vector<1x1x8xf32>
    %122 = vector.shape_cast %121 : vector<1x1x8xf32> to vector<1x8xf32>
    %123 = vector.broadcast %122 : vector<1x8xf32> to vector<16x8xf32>
    %124 = arith.addf %120, %123 : vector<16x8xf32>
    %125 = vector.shape_cast %110 : vector<16x8xf32> to vector<2x8x8xf32>
    %126 = vector.shape_cast %117 : vector<16x8xf32> to vector<2x8x8xf32>
    %127 = vector.shape_cast %124 : vector<16x8xf32> to vector<2x8x8xf32>
    %128 = tpu.concatenate %53, %77, %101, %125 in 0 : vector<2x8x8xf32>, vector<2x8x8xf32>, vector<2x8x8xf32>, vector<2x8x8xf32> -> vector<8x8x8xf32>
    %129 = arith.truncf %128 : vector<8x8x8xf32> to vector<8x8x8xbf16>
    %130 = tpu.concatenate %54, %78, %102, %126 in 0 : vector<2x8x8xf32>, vector<2x8x8xf32>, vector<2x8x8xf32>, vector<2x8x8xf32> -> vector<8x8x8xf32>
    %131 = arith.truncf %130 : vector<8x8x8xf32> to vector<8x8x8xbf16>
    %132 = tpu.concatenate %55, %79, %103, %127 in 0 : vector<2x8x8xf32>, vector<2x8x8xf32>, vector<2x8x8xf32>, vector<2x8x8xf32> -> vector<8x8x8xf32>
    %133 = arith.truncf %132 : vector<8x8x8xf32> to vector<8x8x8xbf16>
    "tpu.trace_start"() <{level = 10 : i32, message = "nqd,nkd->nqk"}> : () -> ()
    %cst_92 = arith.constant dense<0.000000e+00> : vector<8x8x8xf32>
    %134 = tpu.matmul %129, %131, %cst_92 {dimension_numbers = #tpu.dot_dimension_numbers<[2], [2], [1], [1], [0, 0, 0, 1, 1, 1], [0], [0]>} : vector<8x8x8xbf16>, vector<8x8x8xbf16>, vector<8x8x8xf32> -> vector<8x8x8xf32>
    "tpu.trace_stop"() : () -> ()
    %cst_93 = arith.constant 0.353553385 : f32
    %135 = vector.broadcast %cst_93 : f32 to vector<8x8x8xf32>
    %136 = arith.mulf %134, %135 : vector<8x8x8xf32>
    %137 = arith.addf %136, %3 : vector<8x8x8xf32>
    %cst_94 = arith.constant dense<0xFF800000> : vector<8x8xf32>
    %138 = vector.multi_reduction <maximumf>, %137, %cst_94 [2] : vector<8x8x8xf32> to vector<8x8xf32>
    %139 = vector.shape_cast %138 : vector<8x8xf32> to vector<8x8x1xf32>
    %140 = vector.broadcast %139 : vector<8x8x1xf32> to vector<8x8x8xf32>
    %141 = arith.subf %137, %140 : vector<8x8x8xf32>
    %142 = math.exp %141 : vector<8x8x8xf32>
    %cst_95 = arith.constant dense<0.000000e+00> : vector<8x8xf32>
    %143 = vector.multi_reduction <add>, %142, %cst_95 [2] : vector<8x8x8xf32> to vector<8x8xf32>
    %144 = vector.shape_cast %143 : vector<8x8xf32> to vector<8x8x1xf32>
    %145 = tpu.reciprocal %144 {approx = true} : vector<8x8x1xf32> -> vector<8x8x1xf32>
    %146 = vector.broadcast %145 : vector<8x8x1xf32> to vector<8x8x8xf32>
    %147 = arith.mulf %142, %146 : vector<8x8x8xf32>
    %148 = arith.truncf %147 : vector<8x8x8xf32> to vector<8x8x8xbf16>
    "tpu.trace_start"() <{level = 10 : i32, message = "nqk,nkd->nqd"}> : () -> ()
    %cst_96 = arith.constant dense<0.000000e+00> : vector<8x8x8xf32>
    %149 = tpu.matmul %148, %133, %cst_96 {dimension_numbers = #tpu.dot_dimension_numbers<[2], [1], [1], [2], [0, 0, 0, 1, 1, 2], [0], [0]>} : vector<8x8x8xbf16>, vector<8x8x8xbf16>, vector<8x8x8xf32> -> vector<8x8x8xf32>
    "tpu.trace_stop"() : () -> ()
    %150 = vector.shape_cast %149 : vector<8x8x8xf32> to vector<4x16x8xf32>
    %151 = arith.truncf %150 : vector<4x16x8xf32> to vector<4x16x8xbf16>
    %c0_97 = arith.constant 0 : index
    %c0_98 = arith.constant 0 : index
    %c0_99 = arith.constant 0 : index
    %152 = vector.load %arg7[%c0_97, %c0_98, %c0_99] : memref<2x1x32xf32, #tpu.memory_space<vmem>>, vector<1x1x32xf32>
    %153 = vector.shape_cast %152 : vector<1x1x32xf32> to vector<1x32xf32>
    %154 = vector.extract_strided_slice %151 {offsets = [0, 0, 0], sizes = [1, 16, 8], strides = [1, 1, 1]} : vector<4x16x8xbf16> to vector<1x16x8xbf16>
    %155 = vector.shape_cast %154 : vector<1x16x8xbf16> to vector<16x8xbf16>
    %c0_100 = arith.constant 0 : index
    %c0_101 = arith.constant 0 : index
    %c0_102 = arith.constant 0 : index
    %156 = vector.load %arg6[%c0_100, %c0_101, %c0_102] : memref<8x8x32xbf16, #tpu.memory_space<vmem>>, vector<1x8x32xbf16>
    %157 = vector.shape_cast %156 : vector<1x8x32xbf16> to vector<8x32xbf16>
    %cst_103 = arith.constant dense<0.000000e+00> : vector<16x32xf32>
    %158 = tpu.matmul %155, %157, %cst_103 {dimension_numbers = #tpu.dot_dimension_numbers<[1], [0], [0], [1], [0, 0, 1, 1], [], []>} : vector<16x8xbf16>, vector<8x32xbf16>, vector<16x32xf32> -> vector<16x32xf32>
    %159 = vector.broadcast %153 : vector<1x32xf32> to vector<16x32xf32>
    %160 = arith.addf %159, %158 : vector<16x32xf32>
    %161 = vector.extract_strided_slice %151 {offsets = [1, 0, 0], sizes = [1, 16, 8], strides = [1, 1, 1]} : vector<4x16x8xbf16> to vector<1x16x8xbf16>
    %162 = vector.shape_cast %161 : vector<1x16x8xbf16> to vector<16x8xbf16>
    %c1_104 = arith.constant 1 : index
    %c0_105 = arith.constant 0 : index
    %c0_106 = arith.constant 0 : index
    %163 = vector.load %arg6[%c1_104, %c0_105, %c0_106] : memref<8x8x32xbf16, #tpu.memory_space<vmem>>, vector<1x8x32xbf16>
    %164 = vector.shape_cast %163 : vector<1x8x32xbf16> to vector<8x32xbf16>
    %cst_107 = arith.constant dense<0.000000e+00> : vector<16x32xf32>
    %165 = tpu.matmul %162, %164, %cst_107 {dimension_numbers = #tpu.dot_dimension_numbers<[1], [0], [0], [1], [0, 0, 1, 1], [], []>} : vector<16x8xbf16>, vector<8x32xbf16>, vector<16x32xf32> -> vector<16x32xf32>
    %166 = arith.addf %160, %165 : vector<16x32xf32>
    %167 = vector.extract_strided_slice %151 {offsets = [2, 0, 0], sizes = [1, 16, 8], strides = [1, 1, 1]} : vector<4x16x8xbf16> to vector<1x16x8xbf16>
    %168 = vector.shape_cast %167 : vector<1x16x8xbf16> to vector<16x8xbf16>
    %c2_108 = arith.constant 2 : index
    %c0_109 = arith.constant 0 : index
    %c0_110 = arith.constant 0 : index
    %169 = vector.load %arg6[%c2_108, %c0_109, %c0_110] : memref<8x8x32xbf16, #tpu.memory_space<vmem>>, vector<1x8x32xbf16>
    %170 = vector.shape_cast %169 : vector<1x8x32xbf16> to vector<8x32xbf16>
    %cst_111 = arith.constant dense<0.000000e+00> : vector<16x32xf32>
    %171 = tpu.matmul %168, %170, %cst_111 {dimension_numbers = #tpu.dot_dimension_numbers<[1], [0], [0], [1], [0, 0, 1, 1], [], []>} : vector<16x8xbf16>, vector<8x32xbf16>, vector<16x32xf32> -> vector<16x32xf32>
    %172 = arith.addf %166, %171 : vector<16x32xf32>
    %173 = vector.extract_strided_slice %151 {offsets = [3, 0, 0], sizes = [1, 16, 8], strides = [1, 1, 1]} : vector<4x16x8xbf16> to vector<1x16x8xbf16>
    %174 = vector.shape_cast %173 : vector<1x16x8xbf16> to vector<16x8xbf16>
    %c3_112 = arith.constant 3 : index
    %c0_113 = arith.constant 0 : index
    %c0_114 = arith.constant 0 : index
    %175 = vector.load %arg6[%c3_112, %c0_113, %c0_114] : memref<8x8x32xbf16, #tpu.memory_space<vmem>>, vector<1x8x32xbf16>
    %176 = vector.shape_cast %175 : vector<1x8x32xbf16> to vector<8x32xbf16>
    %cst_115 = arith.constant dense<0.000000e+00> : vector<16x32xf32>
    %177 = tpu.matmul %174, %176, %cst_115 {dimension_numbers = #tpu.dot_dimension_numbers<[1], [0], [0], [1], [0, 0, 1, 1], [], []>} : vector<16x8xbf16>, vector<8x32xbf16>, vector<16x32xf32> -> vector<16x32xf32>
    %178 = arith.addf %172, %177 : vector<16x32xf32>
    %179 = arith.addf %0, %178 : vector<16x32xf32>
    %180 = vector.extract_strided_slice %6 {offsets = [1, 0], sizes = [1, 32], strides = [1, 1]} : vector<3x32xf32> to vector<1x32xf32>
    %181 = vector.extract_strided_slice %8 {offsets = [1, 0], sizes = [1, 32], strides = [1, 1]} : vector<3x32xf32> to vector<1x32xf32>
    %cst_116 = arith.constant dense<0.000000e+00> : vector<16xf32>
    %182 = vector.multi_reduction <add>, %179, %cst_116 [1] : vector<16x32xf32> to vector<16xf32>
    %183 = vector.shape_cast %182 : vector<16xf32> to vector<16x1xf32>
    %cst_117 = arith.constant 3.200000e+01 : f32
    %184 = vector.broadcast %cst_117 : f32 to vector<16x1xf32>
    %185 = arith.divf %183, %184 : vector<16x1xf32>
    %186 = vector.broadcast %185 : vector<16x1xf32> to vector<16x32xf32>
    %187 = arith.subf %179, %186 : vector<16x32xf32>
    %188 = arith.mulf %187, %187 : vector<16x32xf32>
    %cst_118 = arith.constant dense<0.000000e+00> : vector<16xf32>
    %189 = vector.multi_reduction <add>, %188, %cst_118 [1] : vector<16x32xf32> to vector<16xf32>
    %190 = vector.shape_cast %189 : vector<16xf32> to vector<16x1xf32>
    %cst_119 = arith.constant 3.200000e+01 : f32
    %191 = vector.broadcast %cst_119 : f32 to vector<16x1xf32>
    %192 = arith.divf %190, %191 : vector<16x1xf32>
    %193 = vector.broadcast %180 : vector<1x32xf32> to vector<16x32xf32>
    %194 = arith.mulf %193, %187 : vector<16x32xf32>
    %cst_120 = arith.constant 9.99999997E-7 : f32
    %195 = vector.broadcast %cst_120 : f32 to vector<16x1xf32>
    %196 = arith.addf %192, %195 : vector<16x1xf32>
    %197 = math.rsqrt %196 : vector<16x1xf32>
    %198 = vector.broadcast %197 : vector<16x1xf32> to vector<16x32xf32>
    %199 = arith.mulf %194, %198 : vector<16x32xf32>
    %200 = vector.broadcast %181 : vector<1x32xf32> to vector<16x32xf32>
    %201 = arith.addf %199, %200 : vector<16x32xf32>
    %202 = arith.truncf %201 : vector<16x32xf32> to vector<16x32xbf16>
    %c0_121 = arith.constant 0 : index
    %c0_122 = arith.constant 0 : index
    %c0_123 = arith.constant 0 : index
    %203 = vector.load %arg8[%c0_121, %c0_122, %c0_123] : memref<24x32x8xbf16, #tpu.memory_space<vmem>>, vector<1x32x8xbf16>
    %204 = vector.shape_cast %203 : vector<1x32x8xbf16> to vector<32x8xbf16>
    %cst_124 = arith.constant dense<0.000000e+00> : vector<16x8xf32>
    %205 = tpu.matmul %202, %204, %cst_124 {dimension_numbers = #tpu.dot_dimension_numbers<[1], [0], [0], [1], [0, 0, 1, 1], [], []>} : vector<16x32xbf16>, vector<32x8xbf16>, vector<16x8xf32> -> vector<16x8xf32>
    %c0_125 = arith.constant 0 : index
    %c0_126 = arith.constant 0 : index
    %c0_127 = arith.constant 0 : index
    %206 = vector.load %arg9[%c0_125, %c0_126, %c0_127] : memref<24x1x8xf32, #tpu.memory_space<vmem>>, vector<1x1x8xf32>
    %207 = vector.shape_cast %206 : vector<1x1x8xf32> to vector<1x8xf32>
    %208 = vector.broadcast %207 : vector<1x8xf32> to vector<16x8xf32>
    %209 = arith.addf %205, %208 : vector<16x8xf32>
    %c4_128 = arith.constant 4 : index
    %c0_129 = arith.constant 0 : index
    %c0_130 = arith.constant 0 : index
    %210 = vector.load %arg8[%c4_128, %c0_129, %c0_130] : memref<24x32x8xbf16, #tpu.memory_space<vmem>>, vector<1x32x8xbf16>
    %211 = vector.shape_cast %210 : vector<1x32x8xbf16> to vector<32x8xbf16>
    %cst_131 = arith.constant dense<0.000000e+00> : vector<16x8xf32>
    %212 = tpu.matmul %2, %211, %cst_131 {dimension_numbers = #tpu.dot_dimension_numbers<[1], [0], [0], [1], [0, 0, 1, 1], [], []>} : vector<16x32xbf16>, vector<32x8xbf16>, vector<16x8xf32> -> vector<16x8xf32>
    %c4_132 = arith.constant 4 : index
    %c0_133 = arith.constant 0 : index
    %c0_134 = arith.constant 0 : index
    %213 = vector.load %arg9[%c4_132, %c0_133, %c0_134] : memref<24x1x8xf32, #tpu.memory_space<vmem>>, vector<1x1x8xf32>
    %214 = vector.shape_cast %213 : vector<1x1x8xf32> to vector<1x8xf32>
    %215 = vector.broadcast %214 : vector<1x8xf32> to vector<16x8xf32>
    %216 = arith.addf %212, %215 : vector<16x8xf32>
    %c8_135 = arith.constant 8 : index
    %c0_136 = arith.constant 0 : index
    %c0_137 = arith.constant 0 : index
    %217 = vector.load %arg8[%c8_135, %c0_136, %c0_137] : memref<24x32x8xbf16, #tpu.memory_space<vmem>>, vector<1x32x8xbf16>
    %218 = vector.shape_cast %217 : vector<1x32x8xbf16> to vector<32x8xbf16>
    %cst_138 = arith.constant dense<0.000000e+00> : vector<16x8xf32>
    %219 = tpu.matmul %2, %218, %cst_138 {dimension_numbers = #tpu.dot_dimension_numbers<[1], [0], [0], [1], [0, 0, 1, 1], [], []>} : vector<16x32xbf16>, vector<32x8xbf16>, vector<16x8xf32> -> vector<16x8xf32>
    %c8_139 = arith.constant 8 : index
    %c0_140 = arith.constant 0 : index
    %c0_141 = arith.constant 0 : index
    %220 = vector.load %arg9[%c8_139, %c0_140, %c0_141] : memref<24x1x8xf32, #tpu.memory_space<vmem>>, vector<1x1x8xf32>
    %221 = vector.shape_cast %220 : vector<1x1x8xf32> to vector<1x8xf32>
    %222 = vector.broadcast %221 : vector<1x8xf32> to vector<16x8xf32>
    %223 = arith.addf %219, %222 : vector<16x8xf32>
    %224 = vector.shape_cast %209 : vector<16x8xf32> to vector<2x8x8xf32>
    %225 = vector.shape_cast %216 : vector<16x8xf32> to vector<2x8x8xf32>
    %226 = vector.shape_cast %223 : vector<16x8xf32> to vector<2x8x8xf32>
    %c1_142 = arith.constant 1 : index
    %c0_143 = arith.constant 0 : index
    %c0_144 = arith.constant 0 : index
    %227 = vector.load %arg8[%c1_142, %c0_143, %c0_144] : memref<24x32x8xbf16, #tpu.memory_space<vmem>>, vector<1x32x8xbf16>
    %228 = vector.shape_cast %227 : vector<1x32x8xbf16> to vector<32x8xbf16>
    %cst_145 = arith.constant dense<0.000000e+00> : vector<16x8xf32>
    %229 = tpu.matmul %202, %228, %cst_145 {dimension_numbers = #tpu.dot_dimension_numbers<[1], [0], [0], [1], [0, 0, 1, 1], [], []>} : vector<16x32xbf16>, vector<32x8xbf16>, vector<16x8xf32> -> vector<16x8xf32>
    %c1_146 = arith.constant 1 : index
    %c0_147 = arith.constant 0 : index
    %c0_148 = arith.constant 0 : index
    %230 = vector.load %arg9[%c1_146, %c0_147, %c0_148] : memref<24x1x8xf32, #tpu.memory_space<vmem>>, vector<1x1x8xf32>
    %231 = vector.shape_cast %230 : vector<1x1x8xf32> to vector<1x8xf32>
    %232 = vector.broadcast %231 : vector<1x8xf32> to vector<16x8xf32>
    %233 = arith.addf %229, %232 : vector<16x8xf32>
    %c5_149 = arith.constant 5 : index
    %c0_150 = arith.constant 0 : index
    %c0_151 = arith.constant 0 : index
    %234 = vector.load %arg8[%c5_149, %c0_150, %c0_151] : memref<24x32x8xbf16, #tpu.memory_space<vmem>>, vector<1x32x8xbf16>
    %235 = vector.shape_cast %234 : vector<1x32x8xbf16> to vector<32x8xbf16>
    %cst_152 = arith.constant dense<0.000000e+00> : vector<16x8xf32>
    %236 = tpu.matmul %2, %235, %cst_152 {dimension_numbers = #tpu.dot_dimension_numbers<[1], [0], [0], [1], [0, 0, 1, 1], [], []>} : vector<16x32xbf16>, vector<32x8xbf16>, vector<16x8xf32> -> vector<16x8xf32>
    %c5_153 = arith.constant 5 : index
    %c0_154 = arith.constant 0 : index
    %c0_155 = arith.constant 0 : index
    %237 = vector.load %arg9[%c5_153, %c0_154, %c0_155] : memref<24x1x8xf32, #tpu.memory_space<vmem>>, vector<1x1x8xf32>
    %238 = vector.shape_cast %237 : vector<1x1x8xf32> to vector<1x8xf32>
    %239 = vector.broadcast %238 : vector<1x8xf32> to vector<16x8xf32>
    %240 = arith.addf %236, %239 : vector<16x8xf32>
    %c9_156 = arith.constant 9 : index
    %c0_157 = arith.constant 0 : index
    %c0_158 = arith.constant 0 : index
    %241 = vector.load %arg8[%c9_156, %c0_157, %c0_158] : memref<24x32x8xbf16, #tpu.memory_space<vmem>>, vector<1x32x8xbf16>
    %242 = vector.shape_cast %241 : vector<1x32x8xbf16> to vector<32x8xbf16>
    %cst_159 = arith.constant dense<0.000000e+00> : vector<16x8xf32>
    %243 = tpu.matmul %2, %242, %cst_159 {dimension_numbers = #tpu.dot_dimension_numbers<[1], [0], [0], [1], [0, 0, 1, 1], [], []>} : vector<16x32xbf16>, vector<32x8xbf16>, vector<16x8xf32> -> vector<16x8xf32>
    %c9_160 = arith.constant 9 : index
    %c0_161 = arith.constant 0 : index
    %c0_162 = arith.constant 0 : index
    %244 = vector.load %arg9[%c9_160, %c0_161, %c0_162] : memref<24x1x8xf32, #tpu.memory_space<vmem>>, vector<1x1x8xf32>
    %245 = vector.shape_cast %244 : vector<1x1x8xf32> to vector<1x8xf32>
    %246 = vector.broadcast %245 : vector<1x8xf32> to vector<16x8xf32>
    %247 = arith.addf %243, %246 : vector<16x8xf32>
    %248 = vector.shape_cast %233 : vector<16x8xf32> to vector<2x8x8xf32>
    %249 = vector.shape_cast %240 : vector<16x8xf32> to vector<2x8x8xf32>
    %250 = vector.shape_cast %247 : vector<16x8xf32> to vector<2x8x8xf32>
    %c2_163 = arith.constant 2 : index
    %c0_164 = arith.constant 0 : index
    %c0_165 = arith.constant 0 : index
    %251 = vector.load %arg8[%c2_163, %c0_164, %c0_165] : memref<24x32x8xbf16, #tpu.memory_space<vmem>>, vector<1x32x8xbf16>
    %252 = vector.shape_cast %251 : vector<1x32x8xbf16> to vector<32x8xbf16>
    %cst_166 = arith.constant dense<0.000000e+00> : vector<16x8xf32>
    %253 = tpu.matmul %202, %252, %cst_166 {dimension_numbers = #tpu.dot_dimension_numbers<[1], [0], [0], [1], [0, 0, 1, 1], [], []>} : vector<16x32xbf16>, vector<32x8xbf16>, vector<16x8xf32> -> vector<16x8xf32>
    %c2_167 = arith.constant 2 : index
    %c0_168 = arith.constant 0 : index
    %c0_169 = arith.constant 0 : index
    %254 = vector.load %arg9[%c2_167, %c0_168, %c0_169] : memref<24x1x8xf32, #tpu.memory_space<vmem>>, vector<1x1x8xf32>
    %255 = vector.shape_cast %254 : vector<1x1x8xf32> to vector<1x8xf32>
    %256 = vector.broadcast %255 : vector<1x8xf32> to vector<16x8xf32>
    %257 = arith.addf %253, %256 : vector<16x8xf32>
    %c6_170 = arith.constant 6 : index
    %c0_171 = arith.constant 0 : index
    %c0_172 = arith.constant 0 : index
    %258 = vector.load %arg8[%c6_170, %c0_171, %c0_172] : memref<24x32x8xbf16, #tpu.memory_space<vmem>>, vector<1x32x8xbf16>
    %259 = vector.shape_cast %258 : vector<1x32x8xbf16> to vector<32x8xbf16>
    %cst_173 = arith.constant dense<0.000000e+00> : vector<16x8xf32>
    %260 = tpu.matmul %2, %259, %cst_173 {dimension_numbers = #tpu.dot_dimension_numbers<[1], [0], [0], [1], [0, 0, 1, 1], [], []>} : vector<16x32xbf16>, vector<32x8xbf16>, vector<16x8xf32> -> vector<16x8xf32>
    %c6_174 = arith.constant 6 : index
    %c0_175 = arith.constant 0 : index
    %c0_176 = arith.constant 0 : index
    %261 = vector.load %arg9[%c6_174, %c0_175, %c0_176] : memref<24x1x8xf32, #tpu.memory_space<vmem>>, vector<1x1x8xf32>
    %262 = vector.shape_cast %261 : vector<1x1x8xf32> to vector<1x8xf32>
    %263 = vector.broadcast %262 : vector<1x8xf32> to vector<16x8xf32>
    %264 = arith.addf %260, %263 : vector<16x8xf32>
    %c10_177 = arith.constant 10 : index
    %c0_178 = arith.constant 0 : index
    %c0_179 = arith.constant 0 : index
    %265 = vector.load %arg8[%c10_177, %c0_178, %c0_179] : memref<24x32x8xbf16, #tpu.memory_space<vmem>>, vector<1x32x8xbf16>
    %266 = vector.shape_cast %265 : vector<1x32x8xbf16> to vector<32x8xbf16>
    %cst_180 = arith.constant dense<0.000000e+00> : vector<16x8xf32>
    %267 = tpu.matmul %2, %266, %cst_180 {dimension_numbers = #tpu.dot_dimension_numbers<[1], [0], [0], [1], [0, 0, 1, 1], [], []>} : vector<16x32xbf16>, vector<32x8xbf16>, vector<16x8xf32> -> vector<16x8xf32>
    %c10_181 = arith.constant 10 : index
    %c0_182 = arith.constant 0 : index
    %c0_183 = arith.constant 0 : index
    %268 = vector.load %arg9[%c10_181, %c0_182, %c0_183] : memref<24x1x8xf32, #tpu.memory_space<vmem>>, vector<1x1x8xf32>
    %269 = vector.shape_cast %268 : vector<1x1x8xf32> to vector<1x8xf32>
    %270 = vector.broadcast %269 : vector<1x8xf32> to vector<16x8xf32>
    %271 = arith.addf %267, %270 : vector<16x8xf32>
    %272 = vector.shape_cast %257 : vector<16x8xf32> to vector<2x8x8xf32>
    %273 = vector.shape_cast %264 : vector<16x8xf32> to vector<2x8x8xf32>
    %274 = vector.shape_cast %271 : vector<16x8xf32> to vector<2x8x8xf32>
    %c3_184 = arith.constant 3 : index
    %c0_185 = arith.constant 0 : index
    %c0_186 = arith.constant 0 : index
    %275 = vector.load %arg8[%c3_184, %c0_185, %c0_186] : memref<24x32x8xbf16, #tpu.memory_space<vmem>>, vector<1x32x8xbf16>
    %276 = vector.shape_cast %275 : vector<1x32x8xbf16> to vector<32x8xbf16>
    %cst_187 = arith.constant dense<0.000000e+00> : vector<16x8xf32>
    %277 = tpu.matmul %202, %276, %cst_187 {dimension_numbers = #tpu.dot_dimension_numbers<[1], [0], [0], [1], [0, 0, 1, 1], [], []>} : vector<16x32xbf16>, vector<32x8xbf16>, vector<16x8xf32> -> vector<16x8xf32>
    %c3_188 = arith.constant 3 : index
    %c0_189 = arith.constant 0 : index
    %c0_190 = arith.constant 0 : index
    %278 = vector.load %arg9[%c3_188, %c0_189, %c0_190] : memref<24x1x8xf32, #tpu.memory_space<vmem>>, vector<1x1x8xf32>
    %279 = vector.shape_cast %278 : vector<1x1x8xf32> to vector<1x8xf32>
    %280 = vector.broadcast %279 : vector<1x8xf32> to vector<16x8xf32>
    %281 = arith.addf %277, %280 : vector<16x8xf32>
    %c7_191 = arith.constant 7 : index
    %c0_192 = arith.constant 0 : index
    %c0_193 = arith.constant 0 : index
    %282 = vector.load %arg8[%c7_191, %c0_192, %c0_193] : memref<24x32x8xbf16, #tpu.memory_space<vmem>>, vector<1x32x8xbf16>
    %283 = vector.shape_cast %282 : vector<1x32x8xbf16> to vector<32x8xbf16>
    %cst_194 = arith.constant dense<0.000000e+00> : vector<16x8xf32>
    %284 = tpu.matmul %2, %283, %cst_194 {dimension_numbers = #tpu.dot_dimension_numbers<[1], [0], [0], [1], [0, 0, 1, 1], [], []>} : vector<16x32xbf16>, vector<32x8xbf16>, vector<16x8xf32> -> vector<16x8xf32>
    %c7_195 = arith.constant 7 : index
    %c0_196 = arith.constant 0 : index
    %c0_197 = arith.constant 0 : index
    %285 = vector.load %arg9[%c7_195, %c0_196, %c0_197] : memref<24x1x8xf32, #tpu.memory_space<vmem>>, vector<1x1x8xf32>
    %286 = vector.shape_cast %285 : vector<1x1x8xf32> to vector<1x8xf32>
    %287 = vector.broadcast %286 : vector<1x8xf32> to vector<16x8xf32>
    %288 = arith.addf %284, %287 : vector<16x8xf32>
    %c11_198 = arith.constant 11 : index
    %c0_199 = arith.constant 0 : index
    %c0_200 = arith.constant 0 : index
    %289 = vector.load %arg8[%c11_198, %c0_199, %c0_200] : memref<24x32x8xbf16, #tpu.memory_space<vmem>>, vector<1x32x8xbf16>
    %290 = vector.shape_cast %289 : vector<1x32x8xbf16> to vector<32x8xbf16>
    %cst_201 = arith.constant dense<0.000000e+00> : vector<16x8xf32>
    %291 = tpu.matmul %2, %290, %cst_201 {dimension_numbers = #tpu.dot_dimension_numbers<[1], [0], [0], [1], [0, 0, 1, 1], [], []>} : vector<16x32xbf16>, vector<32x8xbf16>, vector<16x8xf32> -> vector<16x8xf32>
    %c11_202 = arith.constant 11 : index
    %c0_203 = arith.constant 0 : index
    %c0_204 = arith.constant 0 : index
    %292 = vector.load %arg9[%c11_202, %c0_203, %c0_204] : memref<24x1x8xf32, #tpu.memory_space<vmem>>, vector<1x1x8xf32>
    %293 = vector.shape_cast %292 : vector<1x1x8xf32> to vector<1x8xf32>
    %294 = vector.broadcast %293 : vector<1x8xf32> to vector<16x8xf32>
    %295 = arith.addf %291, %294 : vector<16x8xf32>
    %296 = vector.shape_cast %281 : vector<16x8xf32> to vector<2x8x8xf32>
    %297 = vector.shape_cast %288 : vector<16x8xf32> to vector<2x8x8xf32>
    %298 = vector.shape_cast %295 : vector<16x8xf32> to vector<2x8x8xf32>
    %299 = tpu.concatenate %224, %248, %272, %296 in 0 : vector<2x8x8xf32>, vector<2x8x8xf32>, vector<2x8x8xf32>, vector<2x8x8xf32> -> vector<8x8x8xf32>
    %300 = arith.truncf %299 : vector<8x8x8xf32> to vector<8x8x8xbf16>
    %301 = tpu.concatenate %225, %249, %273, %297 in 0 : vector<2x8x8xf32>, vector<2x8x8xf32>, vector<2x8x8xf32>, vector<2x8x8xf32> -> vector<8x8x8xf32>
    %302 = arith.truncf %301 : vector<8x8x8xf32> to vector<8x8x8xbf16>
    %303 = tpu.concatenate %226, %250, %274, %298 in 0 : vector<2x8x8xf32>, vector<2x8x8xf32>, vector<2x8x8xf32>, vector<2x8x8xf32> -> vector<8x8x8xf32>
    %304 = arith.truncf %303 : vector<8x8x8xf32> to vector<8x8x8xbf16>
    "tpu.trace_start"() <{level = 10 : i32, message = "nqd,nkd->nqk"}> : () -> ()
    %cst_205 = arith.constant dense<0.000000e+00> : vector<8x8x8xf32>
    %305 = tpu.matmul %300, %302, %cst_205 {dimension_numbers = #tpu.dot_dimension_numbers<[2], [2], [1], [1], [0, 0, 0, 1, 1, 1], [0], [0]>} : vector<8x8x8xbf16>, vector<8x8x8xbf16>, vector<8x8x8xf32> -> vector<8x8x8xf32>
    "tpu.trace_stop"() : () -> ()
    %cst_206 = arith.constant 0.353553385 : f32
    %306 = vector.broadcast %cst_206 : f32 to vector<8x8x8xf32>
    %307 = arith.mulf %305, %306 : vector<8x8x8xf32>
    %308 = arith.addf %307, %4 : vector<8x8x8xf32>
    %cst_207 = arith.constant dense<0xFF800000> : vector<8x8xf32>
    %309 = vector.multi_reduction <maximumf>, %308, %cst_207 [2] : vector<8x8x8xf32> to vector<8x8xf32>
    %310 = vector.shape_cast %309 : vector<8x8xf32> to vector<8x8x1xf32>
    %311 = vector.broadcast %310 : vector<8x8x1xf32> to vector<8x8x8xf32>
    %312 = arith.subf %308, %311 : vector<8x8x8xf32>
    %313 = math.exp %312 : vector<8x8x8xf32>
    %cst_208 = arith.constant dense<0.000000e+00> : vector<8x8xf32>
    %314 = vector.multi_reduction <add>, %313, %cst_208 [2] : vector<8x8x8xf32> to vector<8x8xf32>
    %315 = vector.shape_cast %314 : vector<8x8xf32> to vector<8x8x1xf32>
    %316 = tpu.reciprocal %315 {approx = true} : vector<8x8x1xf32> -> vector<8x8x1xf32>
    %317 = vector.broadcast %316 : vector<8x8x1xf32> to vector<8x8x8xf32>
    %318 = arith.mulf %313, %317 : vector<8x8x8xf32>
    %319 = arith.truncf %318 : vector<8x8x8xf32> to vector<8x8x8xbf16>
    "tpu.trace_start"() <{level = 10 : i32, message = "nqk,nkd->nqd"}> : () -> ()
    %cst_209 = arith.constant dense<0.000000e+00> : vector<8x8x8xf32>
    %320 = tpu.matmul %319, %304, %cst_209 {dimension_numbers = #tpu.dot_dimension_numbers<[2], [1], [1], [2], [0, 0, 0, 1, 1, 2], [0], [0]>} : vector<8x8x8xbf16>, vector<8x8x8xbf16>, vector<8x8x8xf32> -> vector<8x8x8xf32>
    "tpu.trace_stop"() : () -> ()
    %321 = vector.shape_cast %320 : vector<8x8x8xf32> to vector<4x16x8xf32>
    %322 = arith.truncf %321 : vector<4x16x8xf32> to vector<4x16x8xbf16>
    %c0_210 = arith.constant 0 : index
    %c0_211 = arith.constant 0 : index
    %c0_212 = arith.constant 0 : index
    %323 = vector.load %arg11[%c0_210, %c0_211, %c0_212] : memref<2x1x32xf32, #tpu.memory_space<vmem>>, vector<1x1x32xf32>
    %324 = vector.shape_cast %323 : vector<1x1x32xf32> to vector<1x32xf32>
    %325 = vector.extract_strided_slice %322 {offsets = [0, 0, 0], sizes = [1, 16, 8], strides = [1, 1, 1]} : vector<4x16x8xbf16> to vector<1x16x8xbf16>
    %326 = vector.shape_cast %325 : vector<1x16x8xbf16> to vector<16x8xbf16>
    %c0_213 = arith.constant 0 : index
    %c0_214 = arith.constant 0 : index
    %c0_215 = arith.constant 0 : index
    %327 = vector.load %arg10[%c0_213, %c0_214, %c0_215] : memref<8x8x32xbf16, #tpu.memory_space<vmem>>, vector<1x8x32xbf16>
    %328 = vector.shape_cast %327 : vector<1x8x32xbf16> to vector<8x32xbf16>
    %cst_216 = arith.constant dense<0.000000e+00> : vector<16x32xf32>
    %329 = tpu.matmul %326, %328, %cst_216 {dimension_numbers = #tpu.dot_dimension_numbers<[1], [0], [0], [1], [0, 0, 1, 1], [], []>} : vector<16x8xbf16>, vector<8x32xbf16>, vector<16x32xf32> -> vector<16x32xf32>
    %330 = vector.broadcast %324 : vector<1x32xf32> to vector<16x32xf32>
    %331 = arith.addf %330, %329 : vector<16x32xf32>
    %332 = vector.extract_strided_slice %322 {offsets = [1, 0, 0], sizes = [1, 16, 8], strides = [1, 1, 1]} : vector<4x16x8xbf16> to vector<1x16x8xbf16>
    %333 = vector.shape_cast %332 : vector<1x16x8xbf16> to vector<16x8xbf16>
    %c1_217 = arith.constant 1 : index
    %c0_218 = arith.constant 0 : index
    %c0_219 = arith.constant 0 : index
    %334 = vector.load %arg10[%c1_217, %c0_218, %c0_219] : memref<8x8x32xbf16, #tpu.memory_space<vmem>>, vector<1x8x32xbf16>
    %335 = vector.shape_cast %334 : vector<1x8x32xbf16> to vector<8x32xbf16>
    %cst_220 = arith.constant dense<0.000000e+00> : vector<16x32xf32>
    %336 = tpu.matmul %333, %335, %cst_220 {dimension_numbers = #tpu.dot_dimension_numbers<[1], [0], [0], [1], [0, 0, 1, 1], [], []>} : vector<16x8xbf16>, vector<8x32xbf16>, vector<16x32xf32> -> vector<16x32xf32>
    %337 = arith.addf %331, %336 : vector<16x32xf32>
    %338 = vector.extract_strided_slice %322 {offsets = [2, 0, 0], sizes = [1, 16, 8], strides = [1, 1, 1]} : vector<4x16x8xbf16> to vector<1x16x8xbf16>
    %339 = vector.shape_cast %338 : vector<1x16x8xbf16> to vector<16x8xbf16>
    %c2_221 = arith.constant 2 : index
    %c0_222 = arith.constant 0 : index
    %c0_223 = arith.constant 0 : index
    %340 = vector.load %arg10[%c2_221, %c0_222, %c0_223] : memref<8x8x32xbf16, #tpu.memory_space<vmem>>, vector<1x8x32xbf16>
    %341 = vector.shape_cast %340 : vector<1x8x32xbf16> to vector<8x32xbf16>
    %cst_224 = arith.constant dense<0.000000e+00> : vector<16x32xf32>
    %342 = tpu.matmul %339, %341, %cst_224 {dimension_numbers = #tpu.dot_dimension_numbers<[1], [0], [0], [1], [0, 0, 1, 1], [], []>} : vector<16x8xbf16>, vector<8x32xbf16>, vector<16x32xf32> -> vector<16x32xf32>
    %343 = arith.addf %337, %342 : vector<16x32xf32>
    %344 = vector.extract_strided_slice %322 {offsets = [3, 0, 0], sizes = [1, 16, 8], strides = [1, 1, 1]} : vector<4x16x8xbf16> to vector<1x16x8xbf16>
    %345 = vector.shape_cast %344 : vector<1x16x8xbf16> to vector<16x8xbf16>
    %c3_225 = arith.constant 3 : index
    %c0_226 = arith.constant 0 : index
    %c0_227 = arith.constant 0 : index
    %346 = vector.load %arg10[%c3_225, %c0_226, %c0_227] : memref<8x8x32xbf16, #tpu.memory_space<vmem>>, vector<1x8x32xbf16>
    %347 = vector.shape_cast %346 : vector<1x8x32xbf16> to vector<8x32xbf16>
    %cst_228 = arith.constant dense<0.000000e+00> : vector<16x32xf32>
    %348 = tpu.matmul %345, %347, %cst_228 {dimension_numbers = #tpu.dot_dimension_numbers<[1], [0], [0], [1], [0, 0, 1, 1], [], []>} : vector<16x8xbf16>, vector<8x32xbf16>, vector<16x32xf32> -> vector<16x32xf32>
    %349 = arith.addf %343, %348 : vector<16x32xf32>
    %350 = arith.addf %179, %349 : vector<16x32xf32>
    %351 = vector.extract_strided_slice %6 {offsets = [2, 0], sizes = [1, 32], strides = [1, 1]} : vector<3x32xf32> to vector<1x32xf32>
    %352 = vector.extract_strided_slice %8 {offsets = [2, 0], sizes = [1, 32], strides = [1, 1]} : vector<3x32xf32> to vector<1x32xf32>
    %cst_229 = arith.constant dense<0.000000e+00> : vector<16xf32>
    %353 = vector.multi_reduction <add>, %350, %cst_229 [1] : vector<16x32xf32> to vector<16xf32>
    %354 = vector.shape_cast %353 : vector<16xf32> to vector<16x1xf32>
    %cst_230 = arith.constant 3.200000e+01 : f32
    %355 = vector.broadcast %cst_230 : f32 to vector<16x1xf32>
    %356 = arith.divf %354, %355 : vector<16x1xf32>
    %357 = vector.broadcast %356 : vector<16x1xf32> to vector<16x32xf32>
    %358 = arith.subf %350, %357 : vector<16x32xf32>
    %359 = arith.mulf %358, %358 : vector<16x32xf32>
    %cst_231 = arith.constant dense<0.000000e+00> : vector<16xf32>
    %360 = vector.multi_reduction <add>, %359, %cst_231 [1] : vector<16x32xf32> to vector<16xf32>
    %361 = vector.shape_cast %360 : vector<16xf32> to vector<16x1xf32>
    %cst_232 = arith.constant 3.200000e+01 : f32
    %362 = vector.broadcast %cst_232 : f32 to vector<16x1xf32>
    %363 = arith.divf %361, %362 : vector<16x1xf32>
    %364 = vector.broadcast %351 : vector<1x32xf32> to vector<16x32xf32>
    %365 = arith.mulf %364, %358 : vector<16x32xf32>
    %cst_233 = arith.constant 9.99999997E-7 : f32
    %366 = vector.broadcast %cst_233 : f32 to vector<16x1xf32>
    %367 = arith.addf %363, %366 : vector<16x1xf32>
    %368 = math.rsqrt %367 : vector<16x1xf32>
    %369 = vector.broadcast %368 : vector<16x1xf32> to vector<16x32xf32>
    %370 = arith.mulf %365, %369 : vector<16x32xf32>
    %371 = vector.broadcast %352 : vector<1x32xf32> to vector<16x32xf32>
    %372 = arith.addf %370, %371 : vector<16x32xf32>
    %373 = arith.truncf %372 : vector<16x32xf32> to vector<16x32xbf16>
    %c0_234 = arith.constant 0 : index
    %c0_235 = arith.constant 0 : index
    %c0_236 = arith.constant 0 : index
    %374 = vector.load %arg12[%c0_234, %c0_235, %c0_236] : memref<2x32x64xbf16, #tpu.memory_space<vmem>>, vector<1x32x64xbf16>
    %375 = vector.shape_cast %374 : vector<1x32x64xbf16> to vector<32x64xbf16>
    %cst_237 = arith.constant dense<0.000000e+00> : vector<16x64xf32>
    %376 = tpu.matmul %373, %375, %cst_237 {dimension_numbers = #tpu.dot_dimension_numbers<[1], [0], [0], [1], [0, 0, 1, 1], [], []>} : vector<16x32xbf16>, vector<32x64xbf16>, vector<16x64xf32> -> vector<16x64xf32>
    %c0_238 = arith.constant 0 : index
    %c0_239 = arith.constant 0 : index
    %c0_240 = arith.constant 0 : index
    %377 = vector.load %arg13[%c0_238, %c0_239, %c0_240] : memref<2x1x64xf32, #tpu.memory_space<vmem>>, vector<1x1x64xf32>
    %378 = vector.shape_cast %377 : vector<1x1x64xf32> to vector<1x64xf32>
    %379 = vector.broadcast %378 : vector<1x64xf32> to vector<16x64xf32>
    %380 = arith.addf %376, %379 : vector<16x64xf32>
    %cst_241 = arith.constant 0.000000e+00 : f32
    %381 = vector.broadcast %cst_241 : f32 to vector<16x64xf32>
    %382 = arith.maximumf %380, %381 : vector<16x64xf32>
    %383 = arith.truncf %382 : vector<16x64xf32> to vector<16x64xbf16>
    %c0_242 = arith.constant 0 : index
    %c0_243 = arith.constant 0 : index
    %c0_244 = arith.constant 0 : index
    %384 = vector.load %arg14[%c0_242, %c0_243, %c0_244] : memref<2x64x32xbf16, #tpu.memory_space<vmem>>, vector<1x64x32xbf16>
    %385 = vector.shape_cast %384 : vector<1x64x32xbf16> to vector<64x32xbf16>
    %cst_245 = arith.constant dense<0.000000e+00> : vector<16x32xf32>
    %386 = tpu.matmul %383, %385, %cst_245 {dimension_numbers = #tpu.dot_dimension_numbers<[1], [0], [0], [1], [0, 0, 1, 1], [], []>} : vector<16x64xbf16>, vector<64x32xbf16>, vector<16x32xf32> -> vector<16x32xf32>
    %387 = arith.addf %350, %386 : vector<16x32xf32>
    %c0_246 = arith.constant 0 : index
    %c0_247 = arith.constant 0 : index
    %c0_248 = arith.constant 0 : index
    %388 = vector.load %arg15[%c0_246, %c0_247, %c0_248] : memref<2x1x32xf32, #tpu.memory_space<vmem>>, vector<1x1x32xf32>
    %389 = vector.shape_cast %388 : vector<1x1x32xf32> to vector<1x32xf32>
    %390 = vector.broadcast %389 : vector<1x32xf32> to vector<16x32xf32>
    %391 = arith.addf %387, %390 : vector<16x32xf32>
    %c1_249 = arith.constant 1 : index
    %c0_250 = arith.constant 0 : index
    %c0_251 = arith.constant 0 : index
    %392 = vector.load %arg16[%c1_249, %c0_250, %c0_251] : memref<2x3x32xf32, #tpu.memory_space<vmem>>, vector<1x3x32xf32>
    %393 = vector.shape_cast %392 : vector<1x3x32xf32> to vector<3x32xf32>
    %c1_252 = arith.constant 1 : index
    %c0_253 = arith.constant 0 : index
    %c0_254 = arith.constant 0 : index
    %394 = vector.load %arg17[%c1_252, %c0_253, %c0_254] : memref<2x3x32xf32, #tpu.memory_space<vmem>>, vector<1x3x32xf32>
    %395 = vector.shape_cast %394 : vector<1x3x32xf32> to vector<3x32xf32>
    %396 = vector.extract_strided_slice %393 {offsets = [0, 0], sizes = [1, 32], strides = [1, 1]} : vector<3x32xf32> to vector<1x32xf32>
    %397 = vector.extract_strided_slice %395 {offsets = [0, 0], sizes = [1, 32], strides = [1, 1]} : vector<3x32xf32> to vector<1x32xf32>
    %cst_255 = arith.constant dense<0.000000e+00> : vector<16xf32>
    %398 = vector.multi_reduction <add>, %391, %cst_255 [1] : vector<16x32xf32> to vector<16xf32>
    %399 = vector.shape_cast %398 : vector<16xf32> to vector<16x1xf32>
    %cst_256 = arith.constant 3.200000e+01 : f32
    %400 = vector.broadcast %cst_256 : f32 to vector<16x1xf32>
    %401 = arith.divf %399, %400 : vector<16x1xf32>
    %402 = vector.broadcast %401 : vector<16x1xf32> to vector<16x32xf32>
    %403 = arith.subf %391, %402 : vector<16x32xf32>
    %404 = arith.mulf %403, %403 : vector<16x32xf32>
    %cst_257 = arith.constant dense<0.000000e+00> : vector<16xf32>
    %405 = vector.multi_reduction <add>, %404, %cst_257 [1] : vector<16x32xf32> to vector<16xf32>
    %406 = vector.shape_cast %405 : vector<16xf32> to vector<16x1xf32>
    %cst_258 = arith.constant 3.200000e+01 : f32
    %407 = vector.broadcast %cst_258 : f32 to vector<16x1xf32>
    %408 = arith.divf %406, %407 : vector<16x1xf32>
    %409 = vector.broadcast %396 : vector<1x32xf32> to vector<16x32xf32>
    %410 = arith.mulf %409, %403 : vector<16x32xf32>
    %cst_259 = arith.constant 9.99999997E-7 : f32
    %411 = vector.broadcast %cst_259 : f32 to vector<16x1xf32>
    %412 = arith.addf %408, %411 : vector<16x1xf32>
    %413 = math.rsqrt %412 : vector<16x1xf32>
    %414 = vector.broadcast %413 : vector<16x1xf32> to vector<16x32xf32>
    %415 = arith.mulf %410, %414 : vector<16x32xf32>
    %416 = vector.broadcast %397 : vector<1x32xf32> to vector<16x32xf32>
    %417 = arith.addf %415, %416 : vector<16x32xf32>
    %418 = arith.truncf %417 : vector<16x32xf32> to vector<16x32xbf16>
    %c12 = arith.constant 12 : index
    %c0_260 = arith.constant 0 : index
    %c0_261 = arith.constant 0 : index
    %419 = vector.load %arg4[%c12, %c0_260, %c0_261] : memref<24x32x8xbf16, #tpu.memory_space<vmem>>, vector<1x32x8xbf16>
    %420 = vector.shape_cast %419 : vector<1x32x8xbf16> to vector<32x8xbf16>
    %cst_262 = arith.constant dense<0.000000e+00> : vector<16x8xf32>
    %421 = tpu.matmul %418, %420, %cst_262 {dimension_numbers = #tpu.dot_dimension_numbers<[1], [0], [0], [1], [0, 0, 1, 1], [], []>} : vector<16x32xbf16>, vector<32x8xbf16>, vector<16x8xf32> -> vector<16x8xf32>
    %c12_263 = arith.constant 12 : index
    %c0_264 = arith.constant 0 : index
    %c0_265 = arith.constant 0 : index
    %422 = vector.load %arg5[%c12_263, %c0_264, %c0_265] : memref<24x1x8xf32, #tpu.memory_space<vmem>>, vector<1x1x8xf32>
    %423 = vector.shape_cast %422 : vector<1x1x8xf32> to vector<1x8xf32>
    %424 = vector.broadcast %423 : vector<1x8xf32> to vector<16x8xf32>
    %425 = arith.addf %421, %424 : vector<16x8xf32>
    %c16 = arith.constant 16 : index
    %c0_266 = arith.constant 0 : index
    %c0_267 = arith.constant 0 : index
    %426 = vector.load %arg4[%c16, %c0_266, %c0_267] : memref<24x32x8xbf16, #tpu.memory_space<vmem>>, vector<1x32x8xbf16>
    %427 = vector.shape_cast %426 : vector<1x32x8xbf16> to vector<32x8xbf16>
    %cst_268 = arith.constant dense<0.000000e+00> : vector<16x8xf32>
    %428 = tpu.matmul %418, %427, %cst_268 {dimension_numbers = #tpu.dot_dimension_numbers<[1], [0], [0], [1], [0, 0, 1, 1], [], []>} : vector<16x32xbf16>, vector<32x8xbf16>, vector<16x8xf32> -> vector<16x8xf32>
    %c16_269 = arith.constant 16 : index
    %c0_270 = arith.constant 0 : index
    %c0_271 = arith.constant 0 : index
    %429 = vector.load %arg5[%c16_269, %c0_270, %c0_271] : memref<24x1x8xf32, #tpu.memory_space<vmem>>, vector<1x1x8xf32>
    %430 = vector.shape_cast %429 : vector<1x1x8xf32> to vector<1x8xf32>
    %431 = vector.broadcast %430 : vector<1x8xf32> to vector<16x8xf32>
    %432 = arith.addf %428, %431 : vector<16x8xf32>
    %c20 = arith.constant 20 : index
    %c0_272 = arith.constant 0 : index
    %c0_273 = arith.constant 0 : index
    %433 = vector.load %arg4[%c20, %c0_272, %c0_273] : memref<24x32x8xbf16, #tpu.memory_space<vmem>>, vector<1x32x8xbf16>
    %434 = vector.shape_cast %433 : vector<1x32x8xbf16> to vector<32x8xbf16>
    %cst_274 = arith.constant dense<0.000000e+00> : vector<16x8xf32>
    %435 = tpu.matmul %418, %434, %cst_274 {dimension_numbers = #tpu.dot_dimension_numbers<[1], [0], [0], [1], [0, 0, 1, 1], [], []>} : vector<16x32xbf16>, vector<32x8xbf16>, vector<16x8xf32> -> vector<16x8xf32>
    %c20_275 = arith.constant 20 : index
    %c0_276 = arith.constant 0 : index
    %c0_277 = arith.constant 0 : index
    %436 = vector.load %arg5[%c20_275, %c0_276, %c0_277] : memref<24x1x8xf32, #tpu.memory_space<vmem>>, vector<1x1x8xf32>
    %437 = vector.shape_cast %436 : vector<1x1x8xf32> to vector<1x8xf32>
    %438 = vector.broadcast %437 : vector<1x8xf32> to vector<16x8xf32>
    %439 = arith.addf %435, %438 : vector<16x8xf32>
    %440 = vector.shape_cast %425 : vector<16x8xf32> to vector<2x8x8xf32>
    %441 = vector.shape_cast %432 : vector<16x8xf32> to vector<2x8x8xf32>
    %442 = vector.shape_cast %439 : vector<16x8xf32> to vector<2x8x8xf32>
    %c13 = arith.constant 13 : index
    %c0_278 = arith.constant 0 : index
    %c0_279 = arith.constant 0 : index
    %443 = vector.load %arg4[%c13, %c0_278, %c0_279] : memref<24x32x8xbf16, #tpu.memory_space<vmem>>, vector<1x32x8xbf16>
    %444 = vector.shape_cast %443 : vector<1x32x8xbf16> to vector<32x8xbf16>
    %cst_280 = arith.constant dense<0.000000e+00> : vector<16x8xf32>
    %445 = tpu.matmul %418, %444, %cst_280 {dimension_numbers = #tpu.dot_dimension_numbers<[1], [0], [0], [1], [0, 0, 1, 1], [], []>} : vector<16x32xbf16>, vector<32x8xbf16>, vector<16x8xf32> -> vector<16x8xf32>
    %c13_281 = arith.constant 13 : index
    %c0_282 = arith.constant 0 : index
    %c0_283 = arith.constant 0 : index
    %446 = vector.load %arg5[%c13_281, %c0_282, %c0_283] : memref<24x1x8xf32, #tpu.memory_space<vmem>>, vector<1x1x8xf32>
    %447 = vector.shape_cast %446 : vector<1x1x8xf32> to vector<1x8xf32>
    %448 = vector.broadcast %447 : vector<1x8xf32> to vector<16x8xf32>
    %449 = arith.addf %445, %448 : vector<16x8xf32>
    %c17 = arith.constant 17 : index
    %c0_284 = arith.constant 0 : index
    %c0_285 = arith.constant 0 : index
    %450 = vector.load %arg4[%c17, %c0_284, %c0_285] : memref<24x32x8xbf16, #tpu.memory_space<vmem>>, vector<1x32x8xbf16>
    %451 = vector.shape_cast %450 : vector<1x32x8xbf16> to vector<32x8xbf16>
    %cst_286 = arith.constant dense<0.000000e+00> : vector<16x8xf32>
    %452 = tpu.matmul %418, %451, %cst_286 {dimension_numbers = #tpu.dot_dimension_numbers<[1], [0], [0], [1], [0, 0, 1, 1], [], []>} : vector<16x32xbf16>, vector<32x8xbf16>, vector<16x8xf32> -> vector<16x8xf32>
    %c17_287 = arith.constant 17 : index
    %c0_288 = arith.constant 0 : index
    %c0_289 = arith.constant 0 : index
    %453 = vector.load %arg5[%c17_287, %c0_288, %c0_289] : memref<24x1x8xf32, #tpu.memory_space<vmem>>, vector<1x1x8xf32>
    %454 = vector.shape_cast %453 : vector<1x1x8xf32> to vector<1x8xf32>
    %455 = vector.broadcast %454 : vector<1x8xf32> to vector<16x8xf32>
    %456 = arith.addf %452, %455 : vector<16x8xf32>
    %c21 = arith.constant 21 : index
    %c0_290 = arith.constant 0 : index
    %c0_291 = arith.constant 0 : index
    %457 = vector.load %arg4[%c21, %c0_290, %c0_291] : memref<24x32x8xbf16, #tpu.memory_space<vmem>>, vector<1x32x8xbf16>
    %458 = vector.shape_cast %457 : vector<1x32x8xbf16> to vector<32x8xbf16>
    %cst_292 = arith.constant dense<0.000000e+00> : vector<16x8xf32>
    %459 = tpu.matmul %418, %458, %cst_292 {dimension_numbers = #tpu.dot_dimension_numbers<[1], [0], [0], [1], [0, 0, 1, 1], [], []>} : vector<16x32xbf16>, vector<32x8xbf16>, vector<16x8xf32> -> vector<16x8xf32>
    %c21_293 = arith.constant 21 : index
    %c0_294 = arith.constant 0 : index
    %c0_295 = arith.constant 0 : index
    %460 = vector.load %arg5[%c21_293, %c0_294, %c0_295] : memref<24x1x8xf32, #tpu.memory_space<vmem>>, vector<1x1x8xf32>
    %461 = vector.shape_cast %460 : vector<1x1x8xf32> to vector<1x8xf32>
    %462 = vector.broadcast %461 : vector<1x8xf32> to vector<16x8xf32>
    %463 = arith.addf %459, %462 : vector<16x8xf32>
    %464 = vector.shape_cast %449 : vector<16x8xf32> to vector<2x8x8xf32>
    %465 = vector.shape_cast %456 : vector<16x8xf32> to vector<2x8x8xf32>
    %466 = vector.shape_cast %463 : vector<16x8xf32> to vector<2x8x8xf32>
    %c14 = arith.constant 14 : index
    %c0_296 = arith.constant 0 : index
    %c0_297 = arith.constant 0 : index
    %467 = vector.load %arg4[%c14, %c0_296, %c0_297] : memref<24x32x8xbf16, #tpu.memory_space<vmem>>, vector<1x32x8xbf16>
    %468 = vector.shape_cast %467 : vector<1x32x8xbf16> to vector<32x8xbf16>
    %cst_298 = arith.constant dense<0.000000e+00> : vector<16x8xf32>
    %469 = tpu.matmul %418, %468, %cst_298 {dimension_numbers = #tpu.dot_dimension_numbers<[1], [0], [0], [1], [0, 0, 1, 1], [], []>} : vector<16x32xbf16>, vector<32x8xbf16>, vector<16x8xf32> -> vector<16x8xf32>
    %c14_299 = arith.constant 14 : index
    %c0_300 = arith.constant 0 : index
    %c0_301 = arith.constant 0 : index
    %470 = vector.load %arg5[%c14_299, %c0_300, %c0_301] : memref<24x1x8xf32, #tpu.memory_space<vmem>>, vector<1x1x8xf32>
    %471 = vector.shape_cast %470 : vector<1x1x8xf32> to vector<1x8xf32>
    %472 = vector.broadcast %471 : vector<1x8xf32> to vector<16x8xf32>
    %473 = arith.addf %469, %472 : vector<16x8xf32>
    %c18 = arith.constant 18 : index
    %c0_302 = arith.constant 0 : index
    %c0_303 = arith.constant 0 : index
    %474 = vector.load %arg4[%c18, %c0_302, %c0_303] : memref<24x32x8xbf16, #tpu.memory_space<vmem>>, vector<1x32x8xbf16>
    %475 = vector.shape_cast %474 : vector<1x32x8xbf16> to vector<32x8xbf16>
    %cst_304 = arith.constant dense<0.000000e+00> : vector<16x8xf32>
    %476 = tpu.matmul %418, %475, %cst_304 {dimension_numbers = #tpu.dot_dimension_numbers<[1], [0], [0], [1], [0, 0, 1, 1], [], []>} : vector<16x32xbf16>, vector<32x8xbf16>, vector<16x8xf32> -> vector<16x8xf32>
    %c18_305 = arith.constant 18 : index
    %c0_306 = arith.constant 0 : index
    %c0_307 = arith.constant 0 : index
    %477 = vector.load %arg5[%c18_305, %c0_306, %c0_307] : memref<24x1x8xf32, #tpu.memory_space<vmem>>, vector<1x1x8xf32>
    %478 = vector.shape_cast %477 : vector<1x1x8xf32> to vector<1x8xf32>
    %479 = vector.broadcast %478 : vector<1x8xf32> to vector<16x8xf32>
    %480 = arith.addf %476, %479 : vector<16x8xf32>
    %c22 = arith.constant 22 : index
    %c0_308 = arith.constant 0 : index
    %c0_309 = arith.constant 0 : index
    %481 = vector.load %arg4[%c22, %c0_308, %c0_309] : memref<24x32x8xbf16, #tpu.memory_space<vmem>>, vector<1x32x8xbf16>
    %482 = vector.shape_cast %481 : vector<1x32x8xbf16> to vector<32x8xbf16>
    %cst_310 = arith.constant dense<0.000000e+00> : vector<16x8xf32>
    %483 = tpu.matmul %418, %482, %cst_310 {dimension_numbers = #tpu.dot_dimension_numbers<[1], [0], [0], [1], [0, 0, 1, 1], [], []>} : vector<16x32xbf16>, vector<32x8xbf16>, vector<16x8xf32> -> vector<16x8xf32>
    %c22_311 = arith.constant 22 : index
    %c0_312 = arith.constant 0 : index
    %c0_313 = arith.constant 0 : index
    %484 = vector.load %arg5[%c22_311, %c0_312, %c0_313] : memref<24x1x8xf32, #tpu.memory_space<vmem>>, vector<1x1x8xf32>
    %485 = vector.shape_cast %484 : vector<1x1x8xf32> to vector<1x8xf32>
    %486 = vector.broadcast %485 : vector<1x8xf32> to vector<16x8xf32>
    %487 = arith.addf %483, %486 : vector<16x8xf32>
    %488 = vector.shape_cast %473 : vector<16x8xf32> to vector<2x8x8xf32>
    %489 = vector.shape_cast %480 : vector<16x8xf32> to vector<2x8x8xf32>
    %490 = vector.shape_cast %487 : vector<16x8xf32> to vector<2x8x8xf32>
    %c15 = arith.constant 15 : index
    %c0_314 = arith.constant 0 : index
    %c0_315 = arith.constant 0 : index
    %491 = vector.load %arg4[%c15, %c0_314, %c0_315] : memref<24x32x8xbf16, #tpu.memory_space<vmem>>, vector<1x32x8xbf16>
    %492 = vector.shape_cast %491 : vector<1x32x8xbf16> to vector<32x8xbf16>
    %cst_316 = arith.constant dense<0.000000e+00> : vector<16x8xf32>
    %493 = tpu.matmul %418, %492, %cst_316 {dimension_numbers = #tpu.dot_dimension_numbers<[1], [0], [0], [1], [0, 0, 1, 1], [], []>} : vector<16x32xbf16>, vector<32x8xbf16>, vector<16x8xf32> -> vector<16x8xf32>
    %c15_317 = arith.constant 15 : index
    %c0_318 = arith.constant 0 : index
    %c0_319 = arith.constant 0 : index
    %494 = vector.load %arg5[%c15_317, %c0_318, %c0_319] : memref<24x1x8xf32, #tpu.memory_space<vmem>>, vector<1x1x8xf32>
    %495 = vector.shape_cast %494 : vector<1x1x8xf32> to vector<1x8xf32>
    %496 = vector.broadcast %495 : vector<1x8xf32> to vector<16x8xf32>
    %497 = arith.addf %493, %496 : vector<16x8xf32>
    %c19 = arith.constant 19 : index
    %c0_320 = arith.constant 0 : index
    %c0_321 = arith.constant 0 : index
    %498 = vector.load %arg4[%c19, %c0_320, %c0_321] : memref<24x32x8xbf16, #tpu.memory_space<vmem>>, vector<1x32x8xbf16>
    %499 = vector.shape_cast %498 : vector<1x32x8xbf16> to vector<32x8xbf16>
    %cst_322 = arith.constant dense<0.000000e+00> : vector<16x8xf32>
    %500 = tpu.matmul %418, %499, %cst_322 {dimension_numbers = #tpu.dot_dimension_numbers<[1], [0], [0], [1], [0, 0, 1, 1], [], []>} : vector<16x32xbf16>, vector<32x8xbf16>, vector<16x8xf32> -> vector<16x8xf32>
    %c19_323 = arith.constant 19 : index
    %c0_324 = arith.constant 0 : index
    %c0_325 = arith.constant 0 : index
    %501 = vector.load %arg5[%c19_323, %c0_324, %c0_325] : memref<24x1x8xf32, #tpu.memory_space<vmem>>, vector<1x1x8xf32>
    %502 = vector.shape_cast %501 : vector<1x1x8xf32> to vector<1x8xf32>
    %503 = vector.broadcast %502 : vector<1x8xf32> to vector<16x8xf32>
    %504 = arith.addf %500, %503 : vector<16x8xf32>
    %c23 = arith.constant 23 : index
    %c0_326 = arith.constant 0 : index
    %c0_327 = arith.constant 0 : index
    %505 = vector.load %arg4[%c23, %c0_326, %c0_327] : memref<24x32x8xbf16, #tpu.memory_space<vmem>>, vector<1x32x8xbf16>
    %506 = vector.shape_cast %505 : vector<1x32x8xbf16> to vector<32x8xbf16>
    %cst_328 = arith.constant dense<0.000000e+00> : vector<16x8xf32>
    %507 = tpu.matmul %418, %506, %cst_328 {dimension_numbers = #tpu.dot_dimension_numbers<[1], [0], [0], [1], [0, 0, 1, 1], [], []>} : vector<16x32xbf16>, vector<32x8xbf16>, vector<16x8xf32> -> vector<16x8xf32>
    %c23_329 = arith.constant 23 : index
    %c0_330 = arith.constant 0 : index
    %c0_331 = arith.constant 0 : index
    %508 = vector.load %arg5[%c23_329, %c0_330, %c0_331] : memref<24x1x8xf32, #tpu.memory_space<vmem>>, vector<1x1x8xf32>
    %509 = vector.shape_cast %508 : vector<1x1x8xf32> to vector<1x8xf32>
    %510 = vector.broadcast %509 : vector<1x8xf32> to vector<16x8xf32>
    %511 = arith.addf %507, %510 : vector<16x8xf32>
    %512 = vector.shape_cast %497 : vector<16x8xf32> to vector<2x8x8xf32>
    %513 = vector.shape_cast %504 : vector<16x8xf32> to vector<2x8x8xf32>
    %514 = vector.shape_cast %511 : vector<16x8xf32> to vector<2x8x8xf32>
    %515 = tpu.concatenate %440, %464, %488, %512 in 0 : vector<2x8x8xf32>, vector<2x8x8xf32>, vector<2x8x8xf32>, vector<2x8x8xf32> -> vector<8x8x8xf32>
    %516 = arith.truncf %515 : vector<8x8x8xf32> to vector<8x8x8xbf16>
    %517 = tpu.concatenate %441, %465, %489, %513 in 0 : vector<2x8x8xf32>, vector<2x8x8xf32>, vector<2x8x8xf32>, vector<2x8x8xf32> -> vector<8x8x8xf32>
    %518 = arith.truncf %517 : vector<8x8x8xf32> to vector<8x8x8xbf16>
    %519 = tpu.concatenate %442, %466, %490, %514 in 0 : vector<2x8x8xf32>, vector<2x8x8xf32>, vector<2x8x8xf32>, vector<2x8x8xf32> -> vector<8x8x8xf32>
    %520 = arith.truncf %519 : vector<8x8x8xf32> to vector<8x8x8xbf16>
    "tpu.trace_start"() <{level = 10 : i32, message = "nqd,nkd->nqk"}> : () -> ()
    %cst_332 = arith.constant dense<0.000000e+00> : vector<8x8x8xf32>
    %521 = tpu.matmul %516, %518, %cst_332 {dimension_numbers = #tpu.dot_dimension_numbers<[2], [2], [1], [1], [0, 0, 0, 1, 1, 1], [0], [0]>} : vector<8x8x8xbf16>, vector<8x8x8xbf16>, vector<8x8x8xf32> -> vector<8x8x8xf32>
    "tpu.trace_stop"() : () -> ()
    %cst_333 = arith.constant 0.353553385 : f32
    %522 = vector.broadcast %cst_333 : f32 to vector<8x8x8xf32>
    %523 = arith.mulf %521, %522 : vector<8x8x8xf32>
    %524 = arith.addf %523, %3 : vector<8x8x8xf32>
    %cst_334 = arith.constant dense<0xFF800000> : vector<8x8xf32>
    %525 = vector.multi_reduction <maximumf>, %524, %cst_334 [2] : vector<8x8x8xf32> to vector<8x8xf32>
    %526 = vector.shape_cast %525 : vector<8x8xf32> to vector<8x8x1xf32>
    %527 = vector.broadcast %526 : vector<8x8x1xf32> to vector<8x8x8xf32>
    %528 = arith.subf %524, %527 : vector<8x8x8xf32>
    %529 = math.exp %528 : vector<8x8x8xf32>
    %cst_335 = arith.constant dense<0.000000e+00> : vector<8x8xf32>
    %530 = vector.multi_reduction <add>, %529, %cst_335 [2] : vector<8x8x8xf32> to vector<8x8xf32>
    %531 = vector.shape_cast %530 : vector<8x8xf32> to vector<8x8x1xf32>
    %532 = tpu.reciprocal %531 {approx = true} : vector<8x8x1xf32> -> vector<8x8x1xf32>
    %533 = vector.broadcast %532 : vector<8x8x1xf32> to vector<8x8x8xf32>
    %534 = arith.mulf %529, %533 : vector<8x8x8xf32>
    %535 = arith.truncf %534 : vector<8x8x8xf32> to vector<8x8x8xbf16>
    "tpu.trace_start"() <{level = 10 : i32, message = "nqk,nkd->nqd"}> : () -> ()
    %cst_336 = arith.constant dense<0.000000e+00> : vector<8x8x8xf32>
    %536 = tpu.matmul %535, %520, %cst_336 {dimension_numbers = #tpu.dot_dimension_numbers<[2], [1], [1], [2], [0, 0, 0, 1, 1, 2], [0], [0]>} : vector<8x8x8xbf16>, vector<8x8x8xbf16>, vector<8x8x8xf32> -> vector<8x8x8xf32>
    "tpu.trace_stop"() : () -> ()
    %537 = vector.shape_cast %536 : vector<8x8x8xf32> to vector<4x16x8xf32>
    %538 = arith.truncf %537 : vector<4x16x8xf32> to vector<4x16x8xbf16>
    %c1_337 = arith.constant 1 : index
    %c0_338 = arith.constant 0 : index
    %c0_339 = arith.constant 0 : index
    %539 = vector.load %arg7[%c1_337, %c0_338, %c0_339] : memref<2x1x32xf32, #tpu.memory_space<vmem>>, vector<1x1x32xf32>
    %540 = vector.shape_cast %539 : vector<1x1x32xf32> to vector<1x32xf32>
    %541 = vector.extract_strided_slice %538 {offsets = [0, 0, 0], sizes = [1, 16, 8], strides = [1, 1, 1]} : vector<4x16x8xbf16> to vector<1x16x8xbf16>
    %542 = vector.shape_cast %541 : vector<1x16x8xbf16> to vector<16x8xbf16>
    %c4_340 = arith.constant 4 : index
    %c0_341 = arith.constant 0 : index
    %c0_342 = arith.constant 0 : index
    %543 = vector.load %arg6[%c4_340, %c0_341, %c0_342] : memref<8x8x32xbf16, #tpu.memory_space<vmem>>, vector<1x8x32xbf16>
    %544 = vector.shape_cast %543 : vector<1x8x32xbf16> to vector<8x32xbf16>
    %cst_343 = arith.constant dense<0.000000e+00> : vector<16x32xf32>
    %545 = tpu.matmul %542, %544, %cst_343 {dimension_numbers = #tpu.dot_dimension_numbers<[1], [0], [0], [1], [0, 0, 1, 1], [], []>} : vector<16x8xbf16>, vector<8x32xbf16>, vector<16x32xf32> -> vector<16x32xf32>
    %546 = vector.broadcast %540 : vector<1x32xf32> to vector<16x32xf32>
    %547 = arith.addf %546, %545 : vector<16x32xf32>
    %548 = vector.extract_strided_slice %538 {offsets = [1, 0, 0], sizes = [1, 16, 8], strides = [1, 1, 1]} : vector<4x16x8xbf16> to vector<1x16x8xbf16>
    %549 = vector.shape_cast %548 : vector<1x16x8xbf16> to vector<16x8xbf16>
    %c5_344 = arith.constant 5 : index
    %c0_345 = arith.constant 0 : index
    %c0_346 = arith.constant 0 : index
    %550 = vector.load %arg6[%c5_344, %c0_345, %c0_346] : memref<8x8x32xbf16, #tpu.memory_space<vmem>>, vector<1x8x32xbf16>
    %551 = vector.shape_cast %550 : vector<1x8x32xbf16> to vector<8x32xbf16>
    %cst_347 = arith.constant dense<0.000000e+00> : vector<16x32xf32>
    %552 = tpu.matmul %549, %551, %cst_347 {dimension_numbers = #tpu.dot_dimension_numbers<[1], [0], [0], [1], [0, 0, 1, 1], [], []>} : vector<16x8xbf16>, vector<8x32xbf16>, vector<16x32xf32> -> vector<16x32xf32>
    %553 = arith.addf %547, %552 : vector<16x32xf32>
    %554 = vector.extract_strided_slice %538 {offsets = [2, 0, 0], sizes = [1, 16, 8], strides = [1, 1, 1]} : vector<4x16x8xbf16> to vector<1x16x8xbf16>
    %555 = vector.shape_cast %554 : vector<1x16x8xbf16> to vector<16x8xbf16>
    %c6_348 = arith.constant 6 : index
    %c0_349 = arith.constant 0 : index
    %c0_350 = arith.constant 0 : index
    %556 = vector.load %arg6[%c6_348, %c0_349, %c0_350] : memref<8x8x32xbf16, #tpu.memory_space<vmem>>, vector<1x8x32xbf16>
    %557 = vector.shape_cast %556 : vector<1x8x32xbf16> to vector<8x32xbf16>
    %cst_351 = arith.constant dense<0.000000e+00> : vector<16x32xf32>
    %558 = tpu.matmul %555, %557, %cst_351 {dimension_numbers = #tpu.dot_dimension_numbers<[1], [0], [0], [1], [0, 0, 1, 1], [], []>} : vector<16x8xbf16>, vector<8x32xbf16>, vector<16x32xf32> -> vector<16x32xf32>
    %559 = arith.addf %553, %558 : vector<16x32xf32>
    %560 = vector.extract_strided_slice %538 {offsets = [3, 0, 0], sizes = [1, 16, 8], strides = [1, 1, 1]} : vector<4x16x8xbf16> to vector<1x16x8xbf16>
    %561 = vector.shape_cast %560 : vector<1x16x8xbf16> to vector<16x8xbf16>
    %c7_352 = arith.constant 7 : index
    %c0_353 = arith.constant 0 : index
    %c0_354 = arith.constant 0 : index
    %562 = vector.load %arg6[%c7_352, %c0_353, %c0_354] : memref<8x8x32xbf16, #tpu.memory_space<vmem>>, vector<1x8x32xbf16>
    %563 = vector.shape_cast %562 : vector<1x8x32xbf16> to vector<8x32xbf16>
    %cst_355 = arith.constant dense<0.000000e+00> : vector<16x32xf32>
    %564 = tpu.matmul %561, %563, %cst_355 {dimension_numbers = #tpu.dot_dimension_numbers<[1], [0], [0], [1], [0, 0, 1, 1], [], []>} : vector<16x8xbf16>, vector<8x32xbf16>, vector<16x32xf32> -> vector<16x32xf32>
    %565 = arith.addf %559, %564 : vector<16x32xf32>
    %566 = arith.addf %391, %565 : vector<16x32xf32>
    %567 = vector.extract_strided_slice %393 {offsets = [1, 0], sizes = [1, 32], strides = [1, 1]} : vector<3x32xf32> to vector<1x32xf32>
    %568 = vector.extract_strided_slice %395 {offsets = [1, 0], sizes = [1, 32], strides = [1, 1]} : vector<3x32xf32> to vector<1x32xf32>
    %cst_356 = arith.constant dense<0.000000e+00> : vector<16xf32>
    %569 = vector.multi_reduction <add>, %566, %cst_356 [1] : vector<16x32xf32> to vector<16xf32>
    %570 = vector.shape_cast %569 : vector<16xf32> to vector<16x1xf32>
    %cst_357 = arith.constant 3.200000e+01 : f32
    %571 = vector.broadcast %cst_357 : f32 to vector<16x1xf32>
    %572 = arith.divf %570, %571 : vector<16x1xf32>
    %573 = vector.broadcast %572 : vector<16x1xf32> to vector<16x32xf32>
    %574 = arith.subf %566, %573 : vector<16x32xf32>
    %575 = arith.mulf %574, %574 : vector<16x32xf32>
    %cst_358 = arith.constant dense<0.000000e+00> : vector<16xf32>
    %576 = vector.multi_reduction <add>, %575, %cst_358 [1] : vector<16x32xf32> to vector<16xf32>
    %577 = vector.shape_cast %576 : vector<16xf32> to vector<16x1xf32>
    %cst_359 = arith.constant 3.200000e+01 : f32
    %578 = vector.broadcast %cst_359 : f32 to vector<16x1xf32>
    %579 = arith.divf %577, %578 : vector<16x1xf32>
    %580 = vector.broadcast %567 : vector<1x32xf32> to vector<16x32xf32>
    %581 = arith.mulf %580, %574 : vector<16x32xf32>
    %cst_360 = arith.constant 9.99999997E-7 : f32
    %582 = vector.broadcast %cst_360 : f32 to vector<16x1xf32>
    %583 = arith.addf %579, %582 : vector<16x1xf32>
    %584 = math.rsqrt %583 : vector<16x1xf32>
    %585 = vector.broadcast %584 : vector<16x1xf32> to vector<16x32xf32>
    %586 = arith.mulf %581, %585 : vector<16x32xf32>
    %587 = vector.broadcast %568 : vector<1x32xf32> to vector<16x32xf32>
    %588 = arith.addf %586, %587 : vector<16x32xf32>
    %589 = arith.truncf %588 : vector<16x32xf32> to vector<16x32xbf16>
    %c12_361 = arith.constant 12 : index
    %c0_362 = arith.constant 0 : index
    %c0_363 = arith.constant 0 : index
    %590 = vector.load %arg8[%c12_361, %c0_362, %c0_363] : memref<24x32x8xbf16, #tpu.memory_space<vmem>>, vector<1x32x8xbf16>
    %591 = vector.shape_cast %590 : vector<1x32x8xbf16> to vector<32x8xbf16>
    %cst_364 = arith.constant dense<0.000000e+00> : vector<16x8xf32>
    %592 = tpu.matmul %589, %591, %cst_364 {dimension_numbers = #tpu.dot_dimension_numbers<[1], [0], [0], [1], [0, 0, 1, 1], [], []>} : vector<16x32xbf16>, vector<32x8xbf16>, vector<16x8xf32> -> vector<16x8xf32>
    %c12_365 = arith.constant 12 : index
    %c0_366 = arith.constant 0 : index
    %c0_367 = arith.constant 0 : index
    %593 = vector.load %arg9[%c12_365, %c0_366, %c0_367] : memref<24x1x8xf32, #tpu.memory_space<vmem>>, vector<1x1x8xf32>
    %594 = vector.shape_cast %593 : vector<1x1x8xf32> to vector<1x8xf32>
    %595 = vector.broadcast %594 : vector<1x8xf32> to vector<16x8xf32>
    %596 = arith.addf %592, %595 : vector<16x8xf32>
    %c16_368 = arith.constant 16 : index
    %c0_369 = arith.constant 0 : index
    %c0_370 = arith.constant 0 : index
    %597 = vector.load %arg8[%c16_368, %c0_369, %c0_370] : memref<24x32x8xbf16, #tpu.memory_space<vmem>>, vector<1x32x8xbf16>
    %598 = vector.shape_cast %597 : vector<1x32x8xbf16> to vector<32x8xbf16>
    %cst_371 = arith.constant dense<0.000000e+00> : vector<16x8xf32>
    %599 = tpu.matmul %2, %598, %cst_371 {dimension_numbers = #tpu.dot_dimension_numbers<[1], [0], [0], [1], [0, 0, 1, 1], [], []>} : vector<16x32xbf16>, vector<32x8xbf16>, vector<16x8xf32> -> vector<16x8xf32>
    %c16_372 = arith.constant 16 : index
    %c0_373 = arith.constant 0 : index
    %c0_374 = arith.constant 0 : index
    %600 = vector.load %arg9[%c16_372, %c0_373, %c0_374] : memref<24x1x8xf32, #tpu.memory_space<vmem>>, vector<1x1x8xf32>
    %601 = vector.shape_cast %600 : vector<1x1x8xf32> to vector<1x8xf32>
    %602 = vector.broadcast %601 : vector<1x8xf32> to vector<16x8xf32>
    %603 = arith.addf %599, %602 : vector<16x8xf32>
    %c20_375 = arith.constant 20 : index
    %c0_376 = arith.constant 0 : index
    %c0_377 = arith.constant 0 : index
    %604 = vector.load %arg8[%c20_375, %c0_376, %c0_377] : memref<24x32x8xbf16, #tpu.memory_space<vmem>>, vector<1x32x8xbf16>
    %605 = vector.shape_cast %604 : vector<1x32x8xbf16> to vector<32x8xbf16>
    %cst_378 = arith.constant dense<0.000000e+00> : vector<16x8xf32>
    %606 = tpu.matmul %2, %605, %cst_378 {dimension_numbers = #tpu.dot_dimension_numbers<[1], [0], [0], [1], [0, 0, 1, 1], [], []>} : vector<16x32xbf16>, vector<32x8xbf16>, vector<16x8xf32> -> vector<16x8xf32>
    %c20_379 = arith.constant 20 : index
    %c0_380 = arith.constant 0 : index
    %c0_381 = arith.constant 0 : index
    %607 = vector.load %arg9[%c20_379, %c0_380, %c0_381] : memref<24x1x8xf32, #tpu.memory_space<vmem>>, vector<1x1x8xf32>
    %608 = vector.shape_cast %607 : vector<1x1x8xf32> to vector<1x8xf32>
    %609 = vector.broadcast %608 : vector<1x8xf32> to vector<16x8xf32>
    %610 = arith.addf %606, %609 : vector<16x8xf32>
    %611 = vector.shape_cast %596 : vector<16x8xf32> to vector<2x8x8xf32>
    %612 = vector.shape_cast %603 : vector<16x8xf32> to vector<2x8x8xf32>
    %613 = vector.shape_cast %610 : vector<16x8xf32> to vector<2x8x8xf32>
    %c13_382 = arith.constant 13 : index
    %c0_383 = arith.constant 0 : index
    %c0_384 = arith.constant 0 : index
    %614 = vector.load %arg8[%c13_382, %c0_383, %c0_384] : memref<24x32x8xbf16, #tpu.memory_space<vmem>>, vector<1x32x8xbf16>
    %615 = vector.shape_cast %614 : vector<1x32x8xbf16> to vector<32x8xbf16>
    %cst_385 = arith.constant dense<0.000000e+00> : vector<16x8xf32>
    %616 = tpu.matmul %589, %615, %cst_385 {dimension_numbers = #tpu.dot_dimension_numbers<[1], [0], [0], [1], [0, 0, 1, 1], [], []>} : vector<16x32xbf16>, vector<32x8xbf16>, vector<16x8xf32> -> vector<16x8xf32>
    %c13_386 = arith.constant 13 : index
    %c0_387 = arith.constant 0 : index
    %c0_388 = arith.constant 0 : index
    %617 = vector.load %arg9[%c13_386, %c0_387, %c0_388] : memref<24x1x8xf32, #tpu.memory_space<vmem>>, vector<1x1x8xf32>
    %618 = vector.shape_cast %617 : vector<1x1x8xf32> to vector<1x8xf32>
    %619 = vector.broadcast %618 : vector<1x8xf32> to vector<16x8xf32>
    %620 = arith.addf %616, %619 : vector<16x8xf32>
    %c17_389 = arith.constant 17 : index
    %c0_390 = arith.constant 0 : index
    %c0_391 = arith.constant 0 : index
    %621 = vector.load %arg8[%c17_389, %c0_390, %c0_391] : memref<24x32x8xbf16, #tpu.memory_space<vmem>>, vector<1x32x8xbf16>
    %622 = vector.shape_cast %621 : vector<1x32x8xbf16> to vector<32x8xbf16>
    %cst_392 = arith.constant dense<0.000000e+00> : vector<16x8xf32>
    %623 = tpu.matmul %2, %622, %cst_392 {dimension_numbers = #tpu.dot_dimension_numbers<[1], [0], [0], [1], [0, 0, 1, 1], [], []>} : vector<16x32xbf16>, vector<32x8xbf16>, vector<16x8xf32> -> vector<16x8xf32>
    %c17_393 = arith.constant 17 : index
    %c0_394 = arith.constant 0 : index
    %c0_395 = arith.constant 0 : index
    %624 = vector.load %arg9[%c17_393, %c0_394, %c0_395] : memref<24x1x8xf32, #tpu.memory_space<vmem>>, vector<1x1x8xf32>
    %625 = vector.shape_cast %624 : vector<1x1x8xf32> to vector<1x8xf32>
    %626 = vector.broadcast %625 : vector<1x8xf32> to vector<16x8xf32>
    %627 = arith.addf %623, %626 : vector<16x8xf32>
    %c21_396 = arith.constant 21 : index
    %c0_397 = arith.constant 0 : index
    %c0_398 = arith.constant 0 : index
    %628 = vector.load %arg8[%c21_396, %c0_397, %c0_398] : memref<24x32x8xbf16, #tpu.memory_space<vmem>>, vector<1x32x8xbf16>
    %629 = vector.shape_cast %628 : vector<1x32x8xbf16> to vector<32x8xbf16>
    %cst_399 = arith.constant dense<0.000000e+00> : vector<16x8xf32>
    %630 = tpu.matmul %2, %629, %cst_399 {dimension_numbers = #tpu.dot_dimension_numbers<[1], [0], [0], [1], [0, 0, 1, 1], [], []>} : vector<16x32xbf16>, vector<32x8xbf16>, vector<16x8xf32> -> vector<16x8xf32>
    %c21_400 = arith.constant 21 : index
    %c0_401 = arith.constant 0 : index
    %c0_402 = arith.constant 0 : index
    %631 = vector.load %arg9[%c21_400, %c0_401, %c0_402] : memref<24x1x8xf32, #tpu.memory_space<vmem>>, vector<1x1x8xf32>
    %632 = vector.shape_cast %631 : vector<1x1x8xf32> to vector<1x8xf32>
    %633 = vector.broadcast %632 : vector<1x8xf32> to vector<16x8xf32>
    %634 = arith.addf %630, %633 : vector<16x8xf32>
    %635 = vector.shape_cast %620 : vector<16x8xf32> to vector<2x8x8xf32>
    %636 = vector.shape_cast %627 : vector<16x8xf32> to vector<2x8x8xf32>
    %637 = vector.shape_cast %634 : vector<16x8xf32> to vector<2x8x8xf32>
    %c14_403 = arith.constant 14 : index
    %c0_404 = arith.constant 0 : index
    %c0_405 = arith.constant 0 : index
    %638 = vector.load %arg8[%c14_403, %c0_404, %c0_405] : memref<24x32x8xbf16, #tpu.memory_space<vmem>>, vector<1x32x8xbf16>
    %639 = vector.shape_cast %638 : vector<1x32x8xbf16> to vector<32x8xbf16>
    %cst_406 = arith.constant dense<0.000000e+00> : vector<16x8xf32>
    %640 = tpu.matmul %589, %639, %cst_406 {dimension_numbers = #tpu.dot_dimension_numbers<[1], [0], [0], [1], [0, 0, 1, 1], [], []>} : vector<16x32xbf16>, vector<32x8xbf16>, vector<16x8xf32> -> vector<16x8xf32>
    %c14_407 = arith.constant 14 : index
    %c0_408 = arith.constant 0 : index
    %c0_409 = arith.constant 0 : index
    %641 = vector.load %arg9[%c14_407, %c0_408, %c0_409] : memref<24x1x8xf32, #tpu.memory_space<vmem>>, vector<1x1x8xf32>
    %642 = vector.shape_cast %641 : vector<1x1x8xf32> to vector<1x8xf32>
    %643 = vector.broadcast %642 : vector<1x8xf32> to vector<16x8xf32>
    %644 = arith.addf %640, %643 : vector<16x8xf32>
    %c18_410 = arith.constant 18 : index
    %c0_411 = arith.constant 0 : index
    %c0_412 = arith.constant 0 : index
    %645 = vector.load %arg8[%c18_410, %c0_411, %c0_412] : memref<24x32x8xbf16, #tpu.memory_space<vmem>>, vector<1x32x8xbf16>
    %646 = vector.shape_cast %645 : vector<1x32x8xbf16> to vector<32x8xbf16>
    %cst_413 = arith.constant dense<0.000000e+00> : vector<16x8xf32>
    %647 = tpu.matmul %2, %646, %cst_413 {dimension_numbers = #tpu.dot_dimension_numbers<[1], [0], [0], [1], [0, 0, 1, 1], [], []>} : vector<16x32xbf16>, vector<32x8xbf16>, vector<16x8xf32> -> vector<16x8xf32>
    %c18_414 = arith.constant 18 : index
    %c0_415 = arith.constant 0 : index
    %c0_416 = arith.constant 0 : index
    %648 = vector.load %arg9[%c18_414, %c0_415, %c0_416] : memref<24x1x8xf32, #tpu.memory_space<vmem>>, vector<1x1x8xf32>
    %649 = vector.shape_cast %648 : vector<1x1x8xf32> to vector<1x8xf32>
    %650 = vector.broadcast %649 : vector<1x8xf32> to vector<16x8xf32>
    %651 = arith.addf %647, %650 : vector<16x8xf32>
    %c22_417 = arith.constant 22 : index
    %c0_418 = arith.constant 0 : index
    %c0_419 = arith.constant 0 : index
    %652 = vector.load %arg8[%c22_417, %c0_418, %c0_419] : memref<24x32x8xbf16, #tpu.memory_space<vmem>>, vector<1x32x8xbf16>
    %653 = vector.shape_cast %652 : vector<1x32x8xbf16> to vector<32x8xbf16>
    %cst_420 = arith.constant dense<0.000000e+00> : vector<16x8xf32>
    %654 = tpu.matmul %2, %653, %cst_420 {dimension_numbers = #tpu.dot_dimension_numbers<[1], [0], [0], [1], [0, 0, 1, 1], [], []>} : vector<16x32xbf16>, vector<32x8xbf16>, vector<16x8xf32> -> vector<16x8xf32>
    %c22_421 = arith.constant 22 : index
    %c0_422 = arith.constant 0 : index
    %c0_423 = arith.constant 0 : index
    %655 = vector.load %arg9[%c22_421, %c0_422, %c0_423] : memref<24x1x8xf32, #tpu.memory_space<vmem>>, vector<1x1x8xf32>
    %656 = vector.shape_cast %655 : vector<1x1x8xf32> to vector<1x8xf32>
    %657 = vector.broadcast %656 : vector<1x8xf32> to vector<16x8xf32>
    %658 = arith.addf %654, %657 : vector<16x8xf32>
    %659 = vector.shape_cast %644 : vector<16x8xf32> to vector<2x8x8xf32>
    %660 = vector.shape_cast %651 : vector<16x8xf32> to vector<2x8x8xf32>
    %661 = vector.shape_cast %658 : vector<16x8xf32> to vector<2x8x8xf32>
    %c15_424 = arith.constant 15 : index
    %c0_425 = arith.constant 0 : index
    %c0_426 = arith.constant 0 : index
    %662 = vector.load %arg8[%c15_424, %c0_425, %c0_426] : memref<24x32x8xbf16, #tpu.memory_space<vmem>>, vector<1x32x8xbf16>
    %663 = vector.shape_cast %662 : vector<1x32x8xbf16> to vector<32x8xbf16>
    %cst_427 = arith.constant dense<0.000000e+00> : vector<16x8xf32>
    %664 = tpu.matmul %589, %663, %cst_427 {dimension_numbers = #tpu.dot_dimension_numbers<[1], [0], [0], [1], [0, 0, 1, 1], [], []>} : vector<16x32xbf16>, vector<32x8xbf16>, vector<16x8xf32> -> vector<16x8xf32>
    %c15_428 = arith.constant 15 : index
    %c0_429 = arith.constant 0 : index
    %c0_430 = arith.constant 0 : index
    %665 = vector.load %arg9[%c15_428, %c0_429, %c0_430] : memref<24x1x8xf32, #tpu.memory_space<vmem>>, vector<1x1x8xf32>
    %666 = vector.shape_cast %665 : vector<1x1x8xf32> to vector<1x8xf32>
    %667 = vector.broadcast %666 : vector<1x8xf32> to vector<16x8xf32>
    %668 = arith.addf %664, %667 : vector<16x8xf32>
    %c19_431 = arith.constant 19 : index
    %c0_432 = arith.constant 0 : index
    %c0_433 = arith.constant 0 : index
    %669 = vector.load %arg8[%c19_431, %c0_432, %c0_433] : memref<24x32x8xbf16, #tpu.memory_space<vmem>>, vector<1x32x8xbf16>
    %670 = vector.shape_cast %669 : vector<1x32x8xbf16> to vector<32x8xbf16>
    %cst_434 = arith.constant dense<0.000000e+00> : vector<16x8xf32>
    %671 = tpu.matmul %2, %670, %cst_434 {dimension_numbers = #tpu.dot_dimension_numbers<[1], [0], [0], [1], [0, 0, 1, 1], [], []>} : vector<16x32xbf16>, vector<32x8xbf16>, vector<16x8xf32> -> vector<16x8xf32>
    %c19_435 = arith.constant 19 : index
    %c0_436 = arith.constant 0 : index
    %c0_437 = arith.constant 0 : index
    %672 = vector.load %arg9[%c19_435, %c0_436, %c0_437] : memref<24x1x8xf32, #tpu.memory_space<vmem>>, vector<1x1x8xf32>
    %673 = vector.shape_cast %672 : vector<1x1x8xf32> to vector<1x8xf32>
    %674 = vector.broadcast %673 : vector<1x8xf32> to vector<16x8xf32>
    %675 = arith.addf %671, %674 : vector<16x8xf32>
    %c23_438 = arith.constant 23 : index
    %c0_439 = arith.constant 0 : index
    %c0_440 = arith.constant 0 : index
    %676 = vector.load %arg8[%c23_438, %c0_439, %c0_440] : memref<24x32x8xbf16, #tpu.memory_space<vmem>>, vector<1x32x8xbf16>
    %677 = vector.shape_cast %676 : vector<1x32x8xbf16> to vector<32x8xbf16>
    %cst_441 = arith.constant dense<0.000000e+00> : vector<16x8xf32>
    %678 = tpu.matmul %2, %677, %cst_441 {dimension_numbers = #tpu.dot_dimension_numbers<[1], [0], [0], [1], [0, 0, 1, 1], [], []>} : vector<16x32xbf16>, vector<32x8xbf16>, vector<16x8xf32> -> vector<16x8xf32>
    %c23_442 = arith.constant 23 : index
    %c0_443 = arith.constant 0 : index
    %c0_444 = arith.constant 0 : index
    %679 = vector.load %arg9[%c23_442, %c0_443, %c0_444] : memref<24x1x8xf32, #tpu.memory_space<vmem>>, vector<1x1x8xf32>
    %680 = vector.shape_cast %679 : vector<1x1x8xf32> to vector<1x8xf32>
    %681 = vector.broadcast %680 : vector<1x8xf32> to vector<16x8xf32>
    %682 = arith.addf %678, %681 : vector<16x8xf32>
    %683 = vector.shape_cast %668 : vector<16x8xf32> to vector<2x8x8xf32>
    %684 = vector.shape_cast %675 : vector<16x8xf32> to vector<2x8x8xf32>
    %685 = vector.shape_cast %682 : vector<16x8xf32> to vector<2x8x8xf32>
    %686 = tpu.concatenate %611, %635, %659, %683 in 0 : vector<2x8x8xf32>, vector<2x8x8xf32>, vector<2x8x8xf32>, vector<2x8x8xf32> -> vector<8x8x8xf32>
    %687 = arith.truncf %686 : vector<8x8x8xf32> to vector<8x8x8xbf16>
    %688 = tpu.concatenate %612, %636, %660, %684 in 0 : vector<2x8x8xf32>, vector<2x8x8xf32>, vector<2x8x8xf32>, vector<2x8x8xf32> -> vector<8x8x8xf32>
    %689 = arith.truncf %688 : vector<8x8x8xf32> to vector<8x8x8xbf16>
    %690 = tpu.concatenate %613, %637, %661, %685 in 0 : vector<2x8x8xf32>, vector<2x8x8xf32>, vector<2x8x8xf32>, vector<2x8x8xf32> -> vector<8x8x8xf32>
    %691 = arith.truncf %690 : vector<8x8x8xf32> to vector<8x8x8xbf16>
    "tpu.trace_start"() <{level = 10 : i32, message = "nqd,nkd->nqk"}> : () -> ()
    %cst_445 = arith.constant dense<0.000000e+00> : vector<8x8x8xf32>
    %692 = tpu.matmul %687, %689, %cst_445 {dimension_numbers = #tpu.dot_dimension_numbers<[2], [2], [1], [1], [0, 0, 0, 1, 1, 1], [0], [0]>} : vector<8x8x8xbf16>, vector<8x8x8xbf16>, vector<8x8x8xf32> -> vector<8x8x8xf32>
    "tpu.trace_stop"() : () -> ()
    %cst_446 = arith.constant 0.353553385 : f32
    %693 = vector.broadcast %cst_446 : f32 to vector<8x8x8xf32>
    %694 = arith.mulf %692, %693 : vector<8x8x8xf32>
    %695 = arith.addf %694, %4 : vector<8x8x8xf32>
    %cst_447 = arith.constant dense<0xFF800000> : vector<8x8xf32>
    %696 = vector.multi_reduction <maximumf>, %695, %cst_447 [2] : vector<8x8x8xf32> to vector<8x8xf32>
    %697 = vector.shape_cast %696 : vector<8x8xf32> to vector<8x8x1xf32>
    %698 = vector.broadcast %697 : vector<8x8x1xf32> to vector<8x8x8xf32>
    %699 = arith.subf %695, %698 : vector<8x8x8xf32>
    %700 = math.exp %699 : vector<8x8x8xf32>
    %cst_448 = arith.constant dense<0.000000e+00> : vector<8x8xf32>
    %701 = vector.multi_reduction <add>, %700, %cst_448 [2] : vector<8x8x8xf32> to vector<8x8xf32>
    %702 = vector.shape_cast %701 : vector<8x8xf32> to vector<8x8x1xf32>
    %703 = tpu.reciprocal %702 {approx = true} : vector<8x8x1xf32> -> vector<8x8x1xf32>
    %704 = vector.broadcast %703 : vector<8x8x1xf32> to vector<8x8x8xf32>
    %705 = arith.mulf %700, %704 : vector<8x8x8xf32>
    %706 = arith.truncf %705 : vector<8x8x8xf32> to vector<8x8x8xbf16>
    "tpu.trace_start"() <{level = 10 : i32, message = "nqk,nkd->nqd"}> : () -> ()
    %cst_449 = arith.constant dense<0.000000e+00> : vector<8x8x8xf32>
    %707 = tpu.matmul %706, %691, %cst_449 {dimension_numbers = #tpu.dot_dimension_numbers<[2], [1], [1], [2], [0, 0, 0, 1, 1, 2], [0], [0]>} : vector<8x8x8xbf16>, vector<8x8x8xbf16>, vector<8x8x8xf32> -> vector<8x8x8xf32>
    "tpu.trace_stop"() : () -> ()
    %708 = vector.shape_cast %707 : vector<8x8x8xf32> to vector<4x16x8xf32>
    %709 = arith.truncf %708 : vector<4x16x8xf32> to vector<4x16x8xbf16>
    %c1_450 = arith.constant 1 : index
    %c0_451 = arith.constant 0 : index
    %c0_452 = arith.constant 0 : index
    %710 = vector.load %arg11[%c1_450, %c0_451, %c0_452] : memref<2x1x32xf32, #tpu.memory_space<vmem>>, vector<1x1x32xf32>
    %711 = vector.shape_cast %710 : vector<1x1x32xf32> to vector<1x32xf32>
    %712 = vector.extract_strided_slice %709 {offsets = [0, 0, 0], sizes = [1, 16, 8], strides = [1, 1, 1]} : vector<4x16x8xbf16> to vector<1x16x8xbf16>
    %713 = vector.shape_cast %712 : vector<1x16x8xbf16> to vector<16x8xbf16>
    %c4_453 = arith.constant 4 : index
    %c0_454 = arith.constant 0 : index
    %c0_455 = arith.constant 0 : index
    %714 = vector.load %arg10[%c4_453, %c0_454, %c0_455] : memref<8x8x32xbf16, #tpu.memory_space<vmem>>, vector<1x8x32xbf16>
    %715 = vector.shape_cast %714 : vector<1x8x32xbf16> to vector<8x32xbf16>
    %cst_456 = arith.constant dense<0.000000e+00> : vector<16x32xf32>
    %716 = tpu.matmul %713, %715, %cst_456 {dimension_numbers = #tpu.dot_dimension_numbers<[1], [0], [0], [1], [0, 0, 1, 1], [], []>} : vector<16x8xbf16>, vector<8x32xbf16>, vector<16x32xf32> -> vector<16x32xf32>
    %717 = vector.broadcast %711 : vector<1x32xf32> to vector<16x32xf32>
    %718 = arith.addf %717, %716 : vector<16x32xf32>
    %719 = vector.extract_strided_slice %709 {offsets = [1, 0, 0], sizes = [1, 16, 8], strides = [1, 1, 1]} : vector<4x16x8xbf16> to vector<1x16x8xbf16>
    %720 = vector.shape_cast %719 : vector<1x16x8xbf16> to vector<16x8xbf16>
    %c5_457 = arith.constant 5 : index
    %c0_458 = arith.constant 0 : index
    %c0_459 = arith.constant 0 : index
    %721 = vector.load %arg10[%c5_457, %c0_458, %c0_459] : memref<8x8x32xbf16, #tpu.memory_space<vmem>>, vector<1x8x32xbf16>
    %722 = vector.shape_cast %721 : vector<1x8x32xbf16> to vector<8x32xbf16>
    %cst_460 = arith.constant dense<0.000000e+00> : vector<16x32xf32>
    %723 = tpu.matmul %720, %722, %cst_460 {dimension_numbers = #tpu.dot_dimension_numbers<[1], [0], [0], [1], [0, 0, 1, 1], [], []>} : vector<16x8xbf16>, vector<8x32xbf16>, vector<16x32xf32> -> vector<16x32xf32>
    %724 = arith.addf %718, %723 : vector<16x32xf32>
    %725 = vector.extract_strided_slice %709 {offsets = [2, 0, 0], sizes = [1, 16, 8], strides = [1, 1, 1]} : vector<4x16x8xbf16> to vector<1x16x8xbf16>
    %726 = vector.shape_cast %725 : vector<1x16x8xbf16> to vector<16x8xbf16>
    %c6_461 = arith.constant 6 : index
    %c0_462 = arith.constant 0 : index
    %c0_463 = arith.constant 0 : index
    %727 = vector.load %arg10[%c6_461, %c0_462, %c0_463] : memref<8x8x32xbf16, #tpu.memory_space<vmem>>, vector<1x8x32xbf16>
    %728 = vector.shape_cast %727 : vector<1x8x32xbf16> to vector<8x32xbf16>
    %cst_464 = arith.constant dense<0.000000e+00> : vector<16x32xf32>
    %729 = tpu.matmul %726, %728, %cst_464 {dimension_numbers = #tpu.dot_dimension_numbers<[1], [0], [0], [1], [0, 0, 1, 1], [], []>} : vector<16x8xbf16>, vector<8x32xbf16>, vector<16x32xf32> -> vector<16x32xf32>
    %730 = arith.addf %724, %729 : vector<16x32xf32>
    %731 = vector.extract_strided_slice %709 {offsets = [3, 0, 0], sizes = [1, 16, 8], strides = [1, 1, 1]} : vector<4x16x8xbf16> to vector<1x16x8xbf16>
    %732 = vector.shape_cast %731 : vector<1x16x8xbf16> to vector<16x8xbf16>
    %c7_465 = arith.constant 7 : index
    %c0_466 = arith.constant 0 : index
    %c0_467 = arith.constant 0 : index
    %733 = vector.load %arg10[%c7_465, %c0_466, %c0_467] : memref<8x8x32xbf16, #tpu.memory_space<vmem>>, vector<1x8x32xbf16>
    %734 = vector.shape_cast %733 : vector<1x8x32xbf16> to vector<8x32xbf16>
    %cst_468 = arith.constant dense<0.000000e+00> : vector<16x32xf32>
    %735 = tpu.matmul %732, %734, %cst_468 {dimension_numbers = #tpu.dot_dimension_numbers<[1], [0], [0], [1], [0, 0, 1, 1], [], []>} : vector<16x8xbf16>, vector<8x32xbf16>, vector<16x32xf32> -> vector<16x32xf32>
    %736 = arith.addf %730, %735 : vector<16x32xf32>
    %737 = arith.addf %566, %736 : vector<16x32xf32>
    %738 = vector.extract_strided_slice %393 {offsets = [2, 0], sizes = [1, 32], strides = [1, 1]} : vector<3x32xf32> to vector<1x32xf32>
    %739 = vector.extract_strided_slice %395 {offsets = [2, 0], sizes = [1, 32], strides = [1, 1]} : vector<3x32xf32> to vector<1x32xf32>
    %cst_469 = arith.constant dense<0.000000e+00> : vector<16xf32>
    %740 = vector.multi_reduction <add>, %737, %cst_469 [1] : vector<16x32xf32> to vector<16xf32>
    %741 = vector.shape_cast %740 : vector<16xf32> to vector<16x1xf32>
    %cst_470 = arith.constant 3.200000e+01 : f32
    %742 = vector.broadcast %cst_470 : f32 to vector<16x1xf32>
    %743 = arith.divf %741, %742 : vector<16x1xf32>
    %744 = vector.broadcast %743 : vector<16x1xf32> to vector<16x32xf32>
    %745 = arith.subf %737, %744 : vector<16x32xf32>
    %746 = arith.mulf %745, %745 : vector<16x32xf32>
    %cst_471 = arith.constant dense<0.000000e+00> : vector<16xf32>
    %747 = vector.multi_reduction <add>, %746, %cst_471 [1] : vector<16x32xf32> to vector<16xf32>
    %748 = vector.shape_cast %747 : vector<16xf32> to vector<16x1xf32>
    %cst_472 = arith.constant 3.200000e+01 : f32
    %749 = vector.broadcast %cst_472 : f32 to vector<16x1xf32>
    %750 = arith.divf %748, %749 : vector<16x1xf32>
    %751 = vector.broadcast %738 : vector<1x32xf32> to vector<16x32xf32>
    %752 = arith.mulf %751, %745 : vector<16x32xf32>
    %cst_473 = arith.constant 9.99999997E-7 : f32
    %753 = vector.broadcast %cst_473 : f32 to vector<16x1xf32>
    %754 = arith.addf %750, %753 : vector<16x1xf32>
    %755 = math.rsqrt %754 : vector<16x1xf32>
    %756 = vector.broadcast %755 : vector<16x1xf32> to vector<16x32xf32>
    %757 = arith.mulf %752, %756 : vector<16x32xf32>
    %758 = vector.broadcast %739 : vector<1x32xf32> to vector<16x32xf32>
    %759 = arith.addf %757, %758 : vector<16x32xf32>
    %760 = arith.truncf %759 : vector<16x32xf32> to vector<16x32xbf16>
    %c1_474 = arith.constant 1 : index
    %c0_475 = arith.constant 0 : index
    %c0_476 = arith.constant 0 : index
    %761 = vector.load %arg12[%c1_474, %c0_475, %c0_476] : memref<2x32x64xbf16, #tpu.memory_space<vmem>>, vector<1x32x64xbf16>
    %762 = vector.shape_cast %761 : vector<1x32x64xbf16> to vector<32x64xbf16>
    %cst_477 = arith.constant dense<0.000000e+00> : vector<16x64xf32>
    %763 = tpu.matmul %760, %762, %cst_477 {dimension_numbers = #tpu.dot_dimension_numbers<[1], [0], [0], [1], [0, 0, 1, 1], [], []>} : vector<16x32xbf16>, vector<32x64xbf16>, vector<16x64xf32> -> vector<16x64xf32>
    %c1_478 = arith.constant 1 : index
    %c0_479 = arith.constant 0 : index
    %c0_480 = arith.constant 0 : index
    %764 = vector.load %arg13[%c1_478, %c0_479, %c0_480] : memref<2x1x64xf32, #tpu.memory_space<vmem>>, vector<1x1x64xf32>
    %765 = vector.shape_cast %764 : vector<1x1x64xf32> to vector<1x64xf32>
    %766 = vector.broadcast %765 : vector<1x64xf32> to vector<16x64xf32>
    %767 = arith.addf %763, %766 : vector<16x64xf32>
    %cst_481 = arith.constant 0.000000e+00 : f32
    %768 = vector.broadcast %cst_481 : f32 to vector<16x64xf32>
    %769 = arith.maximumf %767, %768 : vector<16x64xf32>
    %770 = arith.truncf %769 : vector<16x64xf32> to vector<16x64xbf16>
    %c1_482 = arith.constant 1 : index
    %c0_483 = arith.constant 0 : index
    %c0_484 = arith.constant 0 : index
    %771 = vector.load %arg14[%c1_482, %c0_483, %c0_484] : memref<2x64x32xbf16, #tpu.memory_space<vmem>>, vector<1x64x32xbf16>
    %772 = vector.shape_cast %771 : vector<1x64x32xbf16> to vector<64x32xbf16>
    %cst_485 = arith.constant dense<0.000000e+00> : vector<16x32xf32>
    %773 = tpu.matmul %770, %772, %cst_485 {dimension_numbers = #tpu.dot_dimension_numbers<[1], [0], [0], [1], [0, 0, 1, 1], [], []>} : vector<16x64xbf16>, vector<64x32xbf16>, vector<16x32xf32> -> vector<16x32xf32>
    %774 = arith.addf %737, %773 : vector<16x32xf32>
    %c1_486 = arith.constant 1 : index
    %c0_487 = arith.constant 0 : index
    %c0_488 = arith.constant 0 : index
    %775 = vector.load %arg15[%c1_486, %c0_487, %c0_488] : memref<2x1x32xf32, #tpu.memory_space<vmem>>, vector<1x1x32xf32>
    %776 = vector.shape_cast %775 : vector<1x1x32xf32> to vector<1x32xf32>
    %777 = vector.broadcast %776 : vector<1x32xf32> to vector<16x32xf32>
    %778 = arith.addf %774, %777 : vector<16x32xf32>
    %c0_489 = arith.constant 0 : index
    %c0_490 = arith.constant 0 : index
    %779 = vector.load %arg18[%c0_489, %c0_490] : memref<1x32xf32, #tpu.memory_space<vmem>>, vector<1x32xf32>
    %c0_491 = arith.constant 0 : index
    %c0_492 = arith.constant 0 : index
    %780 = vector.load %arg19[%c0_491, %c0_492] : memref<1x32xf32, #tpu.memory_space<vmem>>, vector<1x32xf32>
    %cst_493 = arith.constant dense<0.000000e+00> : vector<16xf32>
    %781 = vector.multi_reduction <add>, %778, %cst_493 [1] : vector<16x32xf32> to vector<16xf32>
    %782 = vector.shape_cast %781 : vector<16xf32> to vector<16x1xf32>
    %cst_494 = arith.constant 3.200000e+01 : f32
    %783 = vector.broadcast %cst_494 : f32 to vector<16x1xf32>
    %784 = arith.divf %782, %783 : vector<16x1xf32>
    %785 = vector.broadcast %784 : vector<16x1xf32> to vector<16x32xf32>
    %786 = arith.subf %778, %785 : vector<16x32xf32>
    %787 = arith.mulf %786, %786 : vector<16x32xf32>
    %cst_495 = arith.constant dense<0.000000e+00> : vector<16xf32>
    %788 = vector.multi_reduction <add>, %787, %cst_495 [1] : vector<16x32xf32> to vector<16xf32>
    %789 = vector.shape_cast %788 : vector<16xf32> to vector<16x1xf32>
    %cst_496 = arith.constant 3.200000e+01 : f32
    %790 = vector.broadcast %cst_496 : f32 to vector<16x1xf32>
    %791 = arith.divf %789, %790 : vector<16x1xf32>
    %792 = vector.broadcast %779 : vector<1x32xf32> to vector<16x32xf32>
    %793 = arith.mulf %792, %786 : vector<16x32xf32>
    %cst_497 = arith.constant 9.99999997E-7 : f32
    %794 = vector.broadcast %cst_497 : f32 to vector<16x1xf32>
    %795 = arith.addf %791, %794 : vector<16x1xf32>
    %796 = math.rsqrt %795 : vector<16x1xf32>
    %797 = vector.broadcast %796 : vector<16x1xf32> to vector<16x32xf32>
    %798 = arith.mulf %793, %797 : vector<16x32xf32>
    %799 = vector.broadcast %780 : vector<1x32xf32> to vector<16x32xf32>
    %800 = arith.addf %798, %799 : vector<16x32xf32>
    %c0_498 = arith.constant 0 : index
    %c0_499 = arith.constant 0 : index
    %801 = vector.load %arg20[%c0_498, %c0_499] : memref<16x32xf32, #tpu.memory_space<vmem>>, vector<16x32xf32>
    tpu.vector_store %arg20[%c0_498, %c0_499], %800 {strides = array<i32>} : memref<16x32xf32, #tpu.memory_space<vmem>>, vector<16x32xf32>,
    return
  }
}

</mosaic_0001>

<bundles_post_ra>
// kernel: decoder_forward.1
= control target key start
LH: loop header
LB: loop body
LE: loop exit
PB: predicated region body
PF: predicated region fallthrough
CT: control target
= control target key end

     0   :  { %s7168_s0 = inlined_call_operand.vmem [shape: f32[16,32], index: 0, kind: input, shape index: {}]   ;;  %s7169_s1 = inlined_call_operand.vmem [shape: f32[16,32], index: 1, kind: input, shape index: {}]   ;;  %s7170_s2 = inlined_call_operand.vmem [shape: f32[8,8,8], index: 2, kind: input, shape index: {}]   ;;  %s7171_s3 = inlined_call_operand.vmem [shape: f32[8,8,8], index: 3, kind: input, shape index: {}]   ;;  %s7172_s4 = inlined_call_operand.vmem [shape: bf16[24,32,8], index: 4, kind: input, shape index: {}]   ;;  %s7173_s5 = inlined_call_operand.vmem [shape: f32[24,1,8], index: 5, kind: input, shape index: {}]   ;;  %s7174_s6 = inlined_call_operand.vmem [shape: bf16[8,8,32], index: 6, kind: input, shape index: {}]   ;;  %s7175_s7 = inlined_call_operand.vmem [shape: f32[2,1,32], index: 7, kind: input, shape index: {}]   ;;  %s7176_s8 = inlined_call_operand.vmem [shape: bf16[24,32,8], index: 8, kind: input, shape index: {}]   ;;  %s7177_s9 = inlined_call_operand.vmem [shape: f32[24,1,8], index: 9, kind: input, shape index: {}]   ;;  %s7178_s10 = inlined_call_operand.vmem [shape: bf16[8,8,32], index: 10, kind: input, shape index: {}]   ;;  %s7179_s11 = inlined_call_operand.vmem [shape: f32[2,1,32], index: 11, kind: input, shape index: {}]   ;;  %s7180_s12 = inlined_call_operand.vmem [shape: bf16[2,32,64], index: 12, kind: input, shape index: {}]   ;;  %s7181_s13 = inlined_call_operand.vmem [shape: f32[2,1,64], index: 13, kind: input, shape index: {}]   ;;  %s7182_s14 = inlined_call_operand.vmem [shape: bf16[2,64,32], index: 14, kind: input, shape index: {}]   ;;  %s7183_s15 = inlined_call_operand.vmem [shape: f32[2,1,32], index: 15, kind: input, shape index: {}]   ;;  %s7184_s16 = inlined_call_operand.vmem [shape: f32[2,3,32], index: 16, kind: input, shape index: {}]   ;;  %s7185_s17 = inlined_call_operand.vmem [shape: f32[2,3,32], index: 17, kind: input, shape index: {}]   ;;  %s7186_s18 = inlined_call_operand.vmem [shape: f32[1,32], index: 18, kind: input, shape index: {}]   ;;  %s7187_s19 = inlined_call_operand.vmem [shape: f32[1,32], index: 19, kind: input, shape index: {}]   ;;  %s7188_s20 = inlined_call_operand.hbm [shape: f32[16,32], index: 20, kind: output, shape index: {}]  }
   0x1   :  { %7194 = sst [smem:[#allocation5_spill]] %s7168_s0 }
   0x2   :  { %7195 = sst [smem:[#allocation6_spill]] %s7169_s1 }
   0x3   :  { %7196 = sst [smem:[#allocation7_spill]] %s7170_s2 }
   0x4   :  { %7197 = sst [smem:[#allocation8_spill]] %s7171_s3 }
   0x5   :  { %7198 = sst [smem:[#allocation9_spill]] %s7172_s4 }
   0x6   :  { %s7199_s23 = sld [smem:[#allocation5_spill]]  ;;  %vm90_vm0 = vcmask 261120  }
   0xc   :  { %v67_v0 = vld [vmem:[%s7199_s23] sm:$0xff]  ;;  %v68_v1 = vld [vmem:[%s7199_s23 + $0x8] sm:$0xff] }
   0xd   :  { %v91_v2 = vsel %vm90_vm0, %v67_v0, 0.0  ;;  %v94_v3 = vsel %vm90_vm0, %v68_v1, 0.0 }
   0xe   :  { %92 = vadd.xlane.f32.xlu0 %v91_v2 }
  0x16   :  { %95 = vadd.xlane.f32.xlu0 %v94_v3 }
  0x17   :  { %25 = vsyncpa [#allocation3], 0  ;;  %v5906_v4 = vmov 32.0   ;;  %s7200_s26 = sld [smem:[#allocation9_spill]]  ;;  %v6090_v49 = vld [vmem:[%s7184_s16] sm:$0x7] }
  0x18   :  { %5700 = vrcp.f32 %v5906_v4  ;;  %v118_v53 = vperm.slane %v6090_v49, 0  ;;  %v6096_v55 = vld [vmem:[%s7185_s17] sm:$0x7]  ;;  %vm606_vm8 = vcmask 64512   ;;  %vm874_vm9 = vcmask 1043456   ;;  %s7201_s25 = sld [smem:[#allocation7_spill]] }
  0x19   :  { %v145_v61 = vperm.slane %v6096_v55, 0  ;;  %s7202_s22 = sld [smem:[#allocation6_spill]] }
  0x1a   :  { %s7203_s30 = sld [smem:[#allocation8_spill]] }
  0x1d   :  { %v5531_v21 = vld [vmem:[%s7200_s26 + $0x8] sm:$0xff]  ;;  %v5537_v24 = vld [vmem:[%s7200_s26 + $0x18] sm:$0xff]  ;;  %v5530_v26 = vld [vmem:[%s7200_s26] sm:$0xff] }
  0x1e   :  { %v5701_v5 = vpop.eup %5700  ;;  %v5533_v22 = vld [vmem:[%s7200_s26 + $0x48] sm:$0xff]  ;;  %178 = vmatpush.bf16.msra.mxu0 %v5531_v21  ;;  %286 = vmatpush.bf16.msra.mxu3 %v5537_v24  ;;  %v5532_v27 = vld [vmem:[%s7200_s26 + $0x40] sm:$0xff]  ;;  %v5536_v30 = vld [vmem:[%s7200_s26 + $0x10] sm:$0xff] }
  0x1f   :  { %v98_v6 = vmul.f32 32.0, %v5701_v5  ;;  %vm102_vm1 = vweird.f32 %v5701_v5  ;;  %v5535_v23 = vld [vmem:[%s7200_s26 + $0x88] sm:$0xff]  ;;  %214 = vmatpush.bf16.msra.mxu1 %v5533_v22  ;;  %v5534_v28 = vld [vmem:[%s7200_s26 + $0x80] sm:$0xff]  ;;  %v5539_v32 = vld [vmem:[%s7200_s26 + $0x58] sm:$0xff] }
  0x20   :  { %250 = vmatpush.bf16.msra.mxu2 %v5535_v23  ;;  %v5541_v33 = vld [vmem:[%s7200_s26 + $0x98] sm:$0xff]  ;;  %v5543_v34 = vld [vmem:[%s7200_s26 + $0x28] sm:$0xff]  ;;  %v5538_v37 = vld [vmem:[%s7200_s26 + $0x50] sm:$0xff] }
  0x21   :  { %v99_v7 = vsub.f32 1.0, %v98_v6  ;;  %v5545_v35 = vld [vmem:[%s7200_s26 + $0x68] sm:$0xff]  ;;  %v5540_v38 = vld [vmem:[%s7200_s26 + $0x90] sm:$0xff]  ;;  %v5542_v40 = vld [vmem:[%s7200_s26 + $0x20] sm:$0xff] }
  0x22   :  { %179 = vmatpush.bf16.msra.mxu0 %v5530_v26  ;;  %287 = vmatpush.bf16.msra.mxu3 %v5536_v30  ;;  %v5544_v41 = vld [vmem:[%s7200_s26 + $0x60] sm:$0xff]  ;;  %v5547_v4 = vld [vmem:[%s7200_s26 + $0xa8] sm:$0xff]  ;;  %v5551_v6 = vld [vmem:[%s7200_s26 + $0x78] sm:$0xff] }
  0x23   :  { %v100_v8 = vmul.f32 %v5701_v5, %v99_v7  ;;  %215 = vmatpush.bf16.msra.mxu1 %v5532_v27  ;;  %v5553_v7 = vld [vmem:[%s7200_s26 + $0xb8] sm:$0xff] }
  0x24   :  { %251 = vmatpush.bf16.msra.mxu2 %v5534_v28 }
  0x25   :  { %v101_v9 = vadd.f32 %v5701_v5, %v100_v8  ;;  %v5546_v8 = vld [vmem:[%s7200_s26 + $0xa0] sm:$0xff] }
  0x26   :  { %322 = vmatpush.bf16.msrb.mxu0 %v5539_v32  ;;  %430 = vmatpush.bf16.msrb.mxu3 %v5545_v35 }
  0x27   :  { %v6023_v10 = vsel %vm102_vm1, %v5701_v5, %v101_v9  ;;  %358 = vmatpush.bf16.msrb.mxu1 %v5541_v33  ;;  %v5549_v5 = vld [vmem:[%s7200_s26 + $0x38] sm:$0xff]  ;;  %v5548_v9 = vld [vmem:[%s7200_s26 + $0x30] sm:$0xff] }
  0x28   :  { %394 = vmatpush.bf16.msrb.mxu2 %v5543_v34  ;;  %v5644_v34 = vld [vmem:[%s7173_s5 + $0x8] ss:$0 sm:$0xff] }
  0x2a   :  { %323 = vmatpush.bf16.msrb.mxu0 %v5538_v37  ;;  %431 = vmatpush.bf16.msrb.mxu3 %v5544_v41 }
  0x2b   :  { %359 = vmatpush.bf16.msrb.mxu1 %v5540_v38 }
  0x2c   :  { %395 = vmatpush.bf16.msrb.mxu2 %v5542_v40  ;;  %v5649_v40 = vld [vmem:[%s7173_s5 + $0x6] ss:$0 sm:$0xff] }
  0x81   :  { %v93_v11 = vpop.xlane.xlu0 %92 }
  0x82   :  { %v104_v12 = vmul.f32 %v6023_v10, %v93_v11  ;;  %v5550_v11 = vld [vmem:[%s7200_s26 + $0x70] sm:$0xff] }
  0x84   :  { %v6026_v13 = vsub.f32 %v67_v0, %v104_v12  ;;  %v5552_v12 = vld [vmem:[%s7200_s26 + $0xb0] sm:$0xff] }
  0x86   :  { %v108_v14 = vmul.f32 %v6026_v13, %v6026_v13  ;;  %v119_v58 = vmul.f32 %v118_v53, %v6026_v13  ;;  %v5643_v13 = vld [vmem:[%s7173_s5 + $0x4] ss:$0 sm:$0xff] }
  0x88   :  { %v110_v15 = vsel %vm90_vm0, %v108_v14, 0.0 }
  0x89   :  { %111 = vadd.xlane.f32.xlu1 %v110_v15  ;;  %v96_v16 = vpop.xlane.xlu0 %95 }
  0x8a   :  { %v105_v17 = vmul.f32 %v6023_v10, %v96_v16 }
  0x8c   :  { %v6032_v18 = vsub.f32 %v68_v1, %v105_v17  ;;  %v5642_v17 = vld [vmem:[%s7173_s5] ss:$0 sm:$0xff] }
  0x8e   :  { %v109_v19 = vmul.f32 %v6032_v18, %v6032_v18  ;;  %v120_v60 = vmul.f32 %v118_v53, %v6032_v18 }
  0x90   :  { %v113_v20 = vsel %vm90_vm0, %v109_v19, 0.0 }
  0x91   :  { %114 = vadd.xlane.f32.xlu1 %v113_v20 }
  0xfc   :  { %v112_v25 = vpop.xlane.xlu1 %111 }
  0xfd   :  { %v116_v29 = vmul.f32 %v112_v25, %v6023_v10 }
  0xff   :  { %v121_v31 = vadd.f32 1e-06, %v116_v29  ;;  %v5646_v29 = vld [vmem:[%s7173_s5 + $0x5] ss:$0 sm:$0xff] }
 0x101   :  { %5702 = vrsqrt.f32 %v121_v31  ;;  %vm129_vm3 = vweird.f32 %v121_v31 }
 0x104   :  { %v115_v36 = vpop.xlane.xlu1 %114 }
 0x105   :  { %v117_v39 = vmul.f32 %v115_v36, %v6023_v10  ;;  %v5645_v36 = vld [vmem:[%s7173_s5 + $0x1] ss:$0 sm:$0xff] }
 0x107   :  { %v5703_v42 = vpop.eup %5702  ;;  %v122_v43 = vadd.f32 1e-06, %v117_v39 }
 0x108   :  { %v124_v44 = vmul.f32 %v5703_v42, %v121_v31  ;;  %vm130_vm2 = vweird.f32 %v5703_v42 }
 0x109   :  { %5704 = vrsqrt.f32 %v122_v43  ;;  %vm131_vm4 = vmor %vm129_vm3, %vm130_vm2  ;;  %vm139_vm6 = vweird.f32 %v122_v43 }
 0x10a   :  { %v125_v45 = vmul.f32 %v5703_v42, %v124_v44 }
 0x10c   :  { %v126_v46 = vmul.f32 0.5, %v125_v45 }
 0x10e   :  { %v127_v47 = vsub.f32 1.5, %v126_v46 }
 0x10f   :  { %v5705_v48 = vpop.eup %5704 }
 0x110   :  { %v134_v50 = vmul.f32 %v5705_v48, %v122_v43  ;;  %v128_v51 = vmul.f32 %v5703_v42, %v127_v47  ;;  %vm140_vm5 = vweird.f32 %v5705_v48 }
 0x111   :  { %vm141_vm7 = vmor %vm139_vm6, %vm140_vm5 }
 0x112   :  { %v135_v52 = vmul.f32 %v5705_v48, %v134_v50  ;;  %v132_v56 = vsel %vm131_vm4, %v5703_v42, %v128_v51  ;;  %v5648_v51 = vld [vmem:[%s7173_s5 + $0x2] ss:$0 sm:$0xff] }
 0x113   :  { %v143_v62 = vmul.f32 %v132_v56, %v119_v58 }
 0x114   :  { %v136_v54 = vmul.f32 0.5, %v135_v52 }
 0x115   :  { %v146_v1 = vadd.f32 %v145_v61, %v143_v62 }
 0x116   :  { %v137_v57 = vsub.f32 1.5, %v136_v54 }
 0x118   :  { %v138_v59 = vmul.f32 %v5705_v48, %v137_v57 }
 0x11a   :  { %v142_v63 = vsel %vm141_vm7, %v5705_v48, %v138_v59  ;;  %vm2332_vm7 = vcmask 523264  }
 0x11b   :  { %v144_v0 = vmul.f32 %v142_v63, %v120_v60  ;;  %v5650_v60 = vld [vmem:[%s7173_s5 + $0xa] ss:$0 sm:$0xff] }
 0x11d   :  { %v147_v2 = vadd.f32 %v145_v61, %v144_v0 }
 0x11f   :  { %v148_v3 = vpack.c.bf16 %v147_v2, %v146_v1 }
 0x121   :  { %4712 = vmatmul.msk.bf16.vlgmr.msra.gmra.mxu0 %vm90_vm0, %v148_v3  ;;  %4726 = vmatmul.msk.bf16.vlgmr.msra.gmra.mxu1 %vm90_vm0, %v148_v3 }
 0x122   :  { %4740 = vmatmul.msk.bf16.vlgmr.msra.gmra.mxu2 %vm90_vm0, %v148_v3  ;;  %4754 = vmatmul.msk.bf16.vlgmr.msra.gmra.mxu3 %vm90_vm0, %v148_v3 }
 0x123   :  { %466 = vmatpush.bf16.msra.mxu0 %v5547_v4  ;;  %502 = vmatpush.bf16.msra.mxu1 %v5549_v5  ;;  %v5647_v5 = vld [vmem:[%s7173_s5 + $0x9] ss:$0 sm:$0xff] }
 0x124   :  { %538 = vmatpush.bf16.msra.mxu2 %v5551_v6  ;;  %574 = vmatpush.bf16.msra.mxu3 %v5553_v7 }
 0x127   :  { %467 = vmatpush.bf16.msra.mxu0 %v5546_v8  ;;  %503 = vmatpush.bf16.msra.mxu1 %v5548_v9 }
 0x128   :  { %539 = vmatpush.bf16.msra.mxu2 %v5550_v11  ;;  %575 = vmatpush.bf16.msra.mxu3 %v5552_v12 }
 0x131   :  { %4768 = vmatmul.msk.bf16.vlgmr.msrb.gmra.mxu0 %vm90_vm0, %v148_v3  ;;  %4782 = vmatmul.msk.bf16.vlgmr.msrb.gmra.mxu1 %vm90_vm0, %v148_v3 }
 0x132   :  { %4796 = vmatmul.msk.bf16.vlgmr.msrb.gmra.mxu2 %vm90_vm0, %v148_v3  ;;  %4810 = vmatmul.msk.bf16.vlgmr.msrb.gmra.mxu3 %vm90_vm0, %v148_v3 }
 0x141   :  { %4824 = vmatmul.msk.bf16.vlgmr.msra.gmra.mxu0 %vm90_vm0, %v148_v3  ;;  %4838 = vmatmul.msk.bf16.vlgmr.msra.gmra.mxu1 %vm90_vm0, %v148_v3 }
 0x142   :  { %4852 = vmatmul.msk.bf16.vlgmr.msra.gmra.mxu2 %vm90_vm0, %v148_v3  ;;  %4866 = vmatmul.msk.bf16.vlgmr.msra.gmra.mxu3 %vm90_vm0, %v148_v3 }
 0x19e   :  { %v181_v14 = vpop.f32.mrf.mxu0  ;;  %v217_v15 = vpop.f32.mrf.mxu1 }
 0x19f   :  { %v218_v16 = vadd.f32 %v5643_v13, %v217_v15  ;;  %v182_v20 = vadd.f32 %v5642_v17, %v181_v14 }
 0x1a1   :  { %v590_v18 = vpack.c.bf16 %v218_v16, %v218_v16  ;;  %v582_v26 = vpack.c.bf16 %v182_v20, %v182_v20 }
 0x1a3   :  { %v611_v19 = vsel %vm606_vm8, %v590_v18, 0 }
 0x1a4   :  { %620 = vmatpush.bf16.xpose.msrb.mxu0 %v611_v19 }
 0x1a5   :  { %v253_v21 = vpop.f32.mrf.mxu2  ;;  %v289_v22 = vpop.f32.mrf.mxu3 }
 0x1a6   :  { %v183_v23 = vpop.f32.mrf.mxu0  ;;  %v219_v24 = vpop.f32.mrf.mxu1  ;;  %v254_v41 = vadd.f32 %v5644_v34, %v253_v21  ;;  %v290_v43 = vadd.f32 %v5645_v36, %v289_v22  ;;  %v5653_v21 = vld [vmem:[%s7173_s5 + $0xb] ss:$0 sm:$0xff] }
 0x1a7   :  { %v220_v25 = vadd.f32 %v5643_v13, %v219_v24  ;;  %v184_v30 = vadd.f32 %v5642_v17, %v183_v23  ;;  %v5652_v13 = vld [vmem:[%s7173_s5 + $0x7] ss:$0 sm:$0xff] }
 0x1a8   :  { %v598_v48 = vpack.c.bf16 %v254_v41, %v254_v41  ;;  %v584_v53 = vpack.c.bf16 %v290_v43, %v290_v43 }
 0x1a9   :  { %v591_v27 = vpack.c.bf16 %v220_v25, %v220_v25  ;;  %v583_v37 = vpack.c.bf16 %v184_v30, %v184_v30 }
 0x1aa   :  { %v876_v57 = vsel %vm874_vm9, %v598_v48, 0 }
 0x1ab   :  { %4867 = vmatmul.msk.bf16.vlgmr.msrb.gmra.mxu0 %vm606_vm8, %v582_v26  ;;  %v630_v28 = vsel %vm606_vm8, %v591_v27, 0  ;;  %v5651_v27 = vld [vmem:[%s7173_s5 + $0x3] ss:$0 sm:$0xff] }
 0x1ac   :  { %639 = vmatpush.bf16.xpose.msrb.mxu1 %v630_v28 }
 0x1ad   :  { %v255_v31 = vpop.f32.mrf.mxu2  ;;  %v291_v32 = vpop.f32.mrf.mxu3 }
 0x1ae   :  { %v325_v33 = vpop.f32.mrf.mxu0  ;;  %v361_v39 = vpop.f32.mrf.mxu1  ;;  %v256_v58 = vadd.f32 %v5644_v34, %v255_v31  ;;  %v292_v63 = vadd.f32 %v5645_v36, %v291_v32 }
 0x1af   :  { %v326_v35 = vadd.f32 %v5646_v29, %v325_v33  ;;  %v362_v14 = vadd.f32 %v5647_v5, %v361_v39 }
 0x1b0   :  { %v599_v4 = vpack.c.bf16 %v256_v58, %v256_v58  ;;  %v585_v9 = vpack.c.bf16 %v292_v63, %v292_v63 }
 0x1b1   :  { %v592_v38 = vpack.c.bf16 %v326_v35, %v326_v35  ;;  %v600_v23 = vpack.c.bf16 %v362_v14, %v362_v14 }
 0x1b2   :  { %v895_v16 = vsel %vm874_vm9, %v599_v4, 0 }
 0x1b3   :  { %v649_v42 = vsel %vm606_vm8, %v592_v38, 0  ;;  %4868 = vmatmul.msk.bf16.vlgmr.msrb.gmra.mxu1 %vm606_vm8, %v583_v37  ;;  %v914_v32 = vsel %vm874_vm9, %v600_v23, 0 }
 0x1b4   :  { %658 = vmatpush.bf16.xpose.msrb.mxu2 %v649_v42 }
 0x1b5   :  { %v397_v44 = vpop.f32.mrf.mxu2  ;;  %v433_v45 = vpop.f32.mrf.mxu3 }
 0x1b6   :  { %v434_v46 = vadd.f32 %v5649_v40, %v433_v45  ;;  %v327_v47 = vpop.f32.mrf.mxu0  ;;  %v398_v61 = vadd.f32 %v5648_v51, %v397_v44  ;;  %v363_v62 = vpop.f32.mrf.mxu1 }
 0x1b7   :  { %v328_v50 = vadd.f32 %v5646_v29, %v327_v47  ;;  %v364_v33 = vadd.f32 %v5647_v5, %v363_v62 }
 0x1b8   :  { %v594_v52 = vpack.c.bf16 %v434_v46, %v434_v46  ;;  %v586_v7 = vpack.c.bf16 %v398_v61, %v398_v61  ;;  %v73_v61 = vld [vmem:[%s7201_s25 + $0x8] sm:$0xff] }
 0x1b9   :  { %v593_v54 = vpack.c.bf16 %v328_v50, %v328_v50  ;;  %v601_v39 = vpack.c.bf16 %v364_v33, %v364_v33 }
 0x1ba   :  { %v687_v56 = vsel %vm606_vm8, %v594_v52, 0 }
 0x1bb   :  { %696 = vmatpush.bf16.xpose.msra.mxu0 %v687_v56  ;;  %4869 = vmatmul.msk.bf16.vlgmr.msrb.gmra.mxu2 %vm606_vm8, %v584_v53  ;;  %v668_v59 = vsel %vm606_vm8, %v593_v54, 0  ;;  %v933_v47 = vsel %vm874_vm9, %v601_v39, 0  ;;  %v72_v54 = vld [vmem:[%s7201_s25] sm:$0xff] }
 0x1bc   :  { %677 = vmatpush.bf16.xpose.msrb.mxu3 %v668_v59 }
 0x1bd   :  { %v399_v0 = vpop.f32.mrf.mxu2  ;;  %v435_v1 = vpop.f32.mrf.mxu3 }
 0x1be   :  { %v436_v2 = vadd.f32 %v5649_v40, %v435_v1  ;;  %v469_v3 = vpop.f32.mrf.mxu0  ;;  %v400_v17 = vadd.f32 %v5648_v51, %v399_v0  ;;  %v505_v24 = vpop.f32.mrf.mxu1 }
 0x1bf   :  { %v470_v6 = vadd.f32 %v5650_v60, %v469_v3  ;;  %v506_v35 = vadd.f32 %v5651_v27, %v505_v24  ;;  %v74_v3 = vld [vmem:[%s7201_s25 + $0x10] sm:$0xff] }
 0x1c0   :  { %v595_v8 = vpack.c.bf16 %v436_v2, %v436_v2  ;;  %v587_v26 = vpack.c.bf16 %v400_v17, %v400_v17  ;;  %v78_v24 = vld [vmem:[%s7201_s25 + $0x30] sm:$0xff] }
 0x1c1   :  { %v602_v11 = vpack.c.bf16 %v470_v6, %v470_v6  ;;  %v588_v41 = vpack.c.bf16 %v506_v35, %v506_v35  ;;  %v76_v6 = vld [vmem:[%s7201_s25 + $0x20] sm:$0xff] }
 0x1c2   :  { %4871 = vmatmul.msk.bf16.vlgmr.msra.gmra.mxu0 %vm606_vm8, %v586_v7  ;;  %v706_v12 = vsel %vm606_vm8, %v595_v8, 0 }
 0x1c3   :  { %885 = vmatpush.bf16.msrb.mxu0 %v876_v57  ;;  %v952_v15 = vsel %vm874_vm9, %v602_v11, 0  ;;  %715 = vmatpush.bf16.xpose.msra.mxu1 %v706_v12 }
 0x1c4   :  { %4870 = vmatmul.msk.bf16.vlgmr.msrb.gmra.mxu3 %vm606_vm8, %v585_v9 }
 0x1c5   :  { %v541_v18 = vpop.f32.mrf.mxu2  ;;  %v577_v19 = vpop.f32.mrf.mxu3 }
 0x1c6   :  { %v542_v20 = vadd.f32 %v5652_v13, %v541_v18  ;;  %v471_v22 = vpop.f32.mrf.mxu0  ;;  %v578_v31 = vadd.f32 %v5653_v21, %v577_v19  ;;  %v507_v43 = vpop.f32.mrf.mxu1 }
 0x1c7   :  { %961 = vmatpush.bf16.msra.mxu0 %v952_v15  ;;  %v472_v25 = vadd.f32 %v5650_v60, %v471_v22  ;;  %v508_v48 = vadd.f32 %v5651_v27, %v507_v43  ;;  %v75_v15 = vld [vmem:[%s7201_s25 + $0x18] sm:$0xff] }
 0x1c8   :  { %v596_v28 = vpack.c.bf16 %v542_v20, %v542_v20  ;;  %v604_v37 = vpack.c.bf16 %v578_v31, %v578_v31 }
 0x1c9   :  { %v603_v29 = vpack.c.bf16 %v472_v25, %v472_v25  ;;  %v589_v51 = vpack.c.bf16 %v508_v48, %v508_v48 }
 0x1ca   :  { %v725_v30 = vsel %vm606_vm8, %v596_v28, 0  ;;  %4872 = vmatmul.msk.bf16.vlgmr.msra.gmra.mxu1 %vm606_vm8, %v587_v26  ;;  %v990_v44 = vsel %vm874_vm9, %v604_v37, 0 }
 0x1cb   :  { %904 = vmatpush.bf16.msrb.mxu1 %v895_v16  ;;  %734 = vmatpush.bf16.xpose.msra.mxu2 %v725_v30  ;;  %v971_v34 = vsel %vm874_vm9, %v603_v29, 0  ;;  %v77_v29 = vld [vmem:[%s7201_s25 + $0x28] sm:$0xff] }
 0x1cd   :  { %v543_v36 = vpop.f32.mrf.mxu2  ;;  %v579_v40 = vpop.f32.mrf.mxu3 }
 0x1ce   :  { %v544_v38 = vadd.f32 %v5652_v13, %v543_v36  ;;  %v580_v45 = vadd.f32 %v5653_v21, %v579_v40 }
 0x1cf   :  { %980 = vmatpush.bf16.msra.mxu1 %v971_v34 }
 0x1d0   :  { %v597_v42 = vpack.c.bf16 %v544_v38, %v544_v38  ;;  %v605_v50 = vpack.c.bf16 %v580_v45, %v580_v45 }
 0x1d2   :  { %4873 = vmatmul.msk.bf16.vlgmr.msra.gmra.mxu2 %vm606_vm8, %v588_v41  ;;  %v744_v46 = vsel %vm606_vm8, %v597_v42, 0  ;;  %v1009_v52 = vsel %vm874_vm9, %v605_v50, 0 }
 0x1d3   :  { %923 = vmatpush.bf16.msrb.mxu2 %v914_v32  ;;  %753 = vmatpush.bf16.xpose.msra.mxu3 %v744_v46  ;;  %v79_v32 = vld [vmem:[%s7201_s25 + $0x38] sm:$0xff] }
 0x1d7   :  { %999 = vmatpush.bf16.msra.mxu2 %v990_v44 }
 0x1da   :  { %4874 = vmatmul.msk.bf16.vlgmr.msra.gmra.mxu3 %vm606_vm8, %v589_v51 }
 0x1db   :  { %942 = vmatpush.bf16.msrb.mxu3 %v933_v47 }
 0x1df   :  { %1018 = vmatpush.bf16.msra.mxu3 %v1009_v52 }
 0x228   :  { %v622_v53 = vpop.f32.mrf.mxu0 }
 0x229   :  { %v759_v56 = vmul.f32 0.35355338, %v622_v53 }
 0x22b   :  { %v767_v57 = vadd.f32 %v759_v56, %v72_v54 }
 0x22d   :  { %v775_v58 = vsel %vm606_vm8, %v767_v57, -inf }
 0x22e   :  { %776 = vmax.xlane.f32.xlu0 %v775_v58 }
 0x230   :  { %v624_v59 = vpop.f32.mrf.mxu0  ;;  %v641_v60 = vpop.f32.mrf.mxu1 }
 0x231   :  { %v760_v62 = vmul.f32 0.35355338, %v641_v60 }
 0x233   :  { %v768_v63 = vadd.f32 %v760_v62, %v73_v61 }
 0x235   :  { %v778_v0 = vsel %vm606_vm8, %v768_v63, -inf }
 0x236   :  { %779 = vmax.xlane.f32.xlu1 %v778_v0 }
 0x238   :  { %v643_v1 = vpop.f32.mrf.mxu1 }
 0x23e   :  { %v660_v2 = vpop.f32.mrf.mxu2 }
 0x23f   :  { %v761_v4 = vmul.f32 0.35355338, %v660_v2  ;;  %v698_v5 = vpop.f32.mrf.mxu0 }
 0x240   :  { %v763_v7 = vmul.f32 0.35355338, %v698_v5 }
 0x241   :  { %v769_v8 = vadd.f32 %v761_v4, %v74_v3 }
 0x242   :  { %v771_v9 = vadd.f32 %v763_v7, %v76_v6 }
 0x243   :  { %v781_v11 = vsel %vm606_vm8, %v769_v8, -inf }
 0x244   :  { %782 = vmax.xlane.f32.xlu2 %v781_v11  ;;  %v787_v12 = vsel %vm606_vm8, %v771_v9, -inf }
 0x245   :  { %788 = vmax.xlane.f32.xlu1 %v787_v12 }
 0x246   :  { %v662_v13 = vpop.f32.mrf.mxu2 }
 0x247   :  { %v679_v14 = vpop.f32.mrf.mxu3  ;;  %v700_v17 = vpop.f32.mrf.mxu0 }
 0x248   :  { %v762_v16 = vmul.f32 0.35355338, %v679_v14  ;;  %v717_v18 = vpop.f32.mrf.mxu1 }
 0x249   :  { %v764_v27 = vmul.f32 0.35355338, %v717_v18 }
 0x24a   :  { %v770_v19 = vadd.f32 %v762_v16, %v75_v15 }
 0x24b   :  { %v772_v34 = vadd.f32 %v764_v27, %v77_v29 }
 0x24c   :  { %v784_v20 = vsel %vm606_vm8, %v770_v19, -inf }
 0x24d   :  { %785 = vmax.xlane.f32.xlu2 %v784_v20  ;;  %v790_v36 = vsel %vm606_vm8, %v772_v34, -inf }
 0x24f   :  { %v681_v21 = vpop.f32.mrf.mxu3 }
 0x250   :  { %v719_v22 = vpop.f32.mrf.mxu1 }
 0x255   :  { %v736_v23 = vpop.f32.mrf.mxu2 }
 0x256   :  { %v765_v25 = vmul.f32 0.35355338, %v736_v23 }
 0x258   :  { %v773_v26 = vadd.f32 %v765_v25, %v78_v24 }
 0x25a   :  { %v793_v28 = vsel %vm606_vm8, %v773_v26, -inf }
 0x25b   :  { %794 = vmax.xlane.f32.xlu2 %v793_v28 }
 0x25d   :  { %v738_v30 = vpop.f32.mrf.mxu2  ;;  %v755_v31 = vpop.f32.mrf.mxu3 }
 0x25e   :  { %v766_v33 = vmul.f32 0.35355338, %v755_v31 }
 0x260   :  { %v774_v35 = vadd.f32 %v766_v33, %v79_v32 }
 0x262   :  { %v796_v37 = vsel %vm606_vm8, %v774_v35, -inf }
 0x263   :  { %791 = vmax.xlane.f32.xlu2 %v790_v36  ;;  %797 = vmax.xlane.f32.xlu0 %v796_v37 }
 0x265   :  { %v757_v38 = vpop.f32.mrf.mxu3 }
 0x2a1   :  { %v777_v39 = vpop.xlane.xlu0 %776 }
 0x2a2   :  { %v799_v40 = vsub.f32 %v767_v57, %v777_v39 }
 0x2a4   :  { %v807_v41 = vmul.f32 1.442695, %v799_v40 }
 0x2a6   :  { %5706 = vpow2.f32 %v807_v41 }
 0x2a9   :  { %v780_v44 = vpop.xlane.xlu1 %779 }
 0x2aa   :  { %v800_v47 = vsub.f32 %v768_v63, %v780_v44 }
 0x2ac   :  { %v5707_v42 = vpop.eup %5706  ;;  %v809_v50 = vmul.f32 1.442695, %v800_v47 }
 0x2ad   :  { %v823_v43 = vsel %vm606_vm8, %v5707_v42, 0.0 }
 0x2ae   :  { %824 = vadd.xlane.f32.xlu2 %v823_v43 }
 0x2b7   :  { %v783_v45 = vpop.xlane.xlu2 %782 }
 0x2b8   :  { %v801_v46 = vsub.f32 %v769_v8, %v783_v45  ;;  %v789_v51 = vpop.xlane.xlu1 %788 }
 0x2b9   :  { %v803_v56 = vsub.f32 %v771_v9, %v789_v51 }
 0x2ba   :  { %v811_v48 = vmul.f32 1.442695, %v801_v46 }
 0x2bb   :  { %v815_v59 = vmul.f32 1.442695, %v803_v56  ;;  %v4884_v56 = vld [vmem:[%s7174_s6 + $0x4] sm:$0xf] }
 0x2bc   :  { %5708 = vpow2.f32 %v811_v48 }
 0x2bd   :  { %5710 = vpow2.f32 %v809_v50 }
 0x2c0   :  { %v786_v52 = vpop.xlane.xlu2 %785 }
 0x2c1   :  { %v802_v53 = vsub.f32 %v770_v19, %v786_v52  ;;  %v1033_v52 = vld [vmem:[%s7174_s6] sm:$0xf] }
 0x2c2   :  { %v5709_v54 = vpop.eup %5708 }
 0x2c3   :  { %v813_v57 = vmul.f32 1.442695, %v802_v53  ;;  %v829_v58 = vsel %vm606_vm8, %v5709_v54, 0.0  ;;  %v5711_v60 = vpop.eup %5710  ;;  %v1043_v53 = vsel %vm874_vm9, %v1033_v52, 0 }
 0x2c4   :  { %830 = vadd.xlane.f32.xlu0 %v829_v58  ;;  %v826_v62 = vsel %vm606_vm8, %v5711_v60, 0.0  ;;  %v4886_v58 = vld [vmem:[%s7174_s6 + $0x8] sm:$0xf] }
 0x2c5   :  { %5712 = vpow2.f32 %v813_v57  ;;  %v1075_v57 = vsel %vm874_vm9, %v4884_v56, 0 }
 0x2c6   :  { %5714 = vpow2.f32 %v815_v59  ;;  %v1104_v59 = vsel %vm874_vm9, %v4886_v58, 0  ;;  %v5557_v58 = vld [vmem:[%s7176_s8 + $0x48] sm:$0xff] }
 0x2cb   :  { %v5713_v61 = vpop.eup %5712 }
 0x2cc   :  { %v832_v63 = vsel %vm606_vm8, %v5713_v61, 0.0  ;;  %827 = vadd.xlane.f32.xlu0 %v826_v62  ;;  %v5715_v2 = vpop.eup %5714 }
 0x2cd   :  { %833 = vadd.xlane.f32.xlu1 %v832_v63  ;;  %v835_v4 = vsel %vm606_vm8, %v5715_v2, 0.0  ;;  %v4888_v63 = vld [vmem:[%s7174_s6 + $0xc] sm:$0xf] }
 0x2ce   :  { %v795_v0 = vpop.xlane.xlu2 %794 }
 0x2cf   :  { %v805_v1 = vsub.f32 %v773_v26, %v795_v0 }
 0x2d1   :  { %v819_v3 = vmul.f32 1.442695, %v805_v1  ;;  %v1133_v1 = vsel %vm874_vm9, %v4888_v63, 0 }
 0x2d3   :  { %5716 = vpow2.f32 %v819_v3 }
 0x2d4   :  { %836 = vadd.xlane.f32.xlu0 %v835_v4 }
 0x2d6   :  { %v792_v5 = vpop.xlane.xlu2 %791  ;;  %v798_v6 = vpop.xlane.xlu0 %797 }
 0x2d7   :  { %v804_v7 = vsub.f32 %v772_v34, %v792_v5  ;;  %v806_v8 = vsub.f32 %v774_v35, %v798_v6 }
 0x2d9   :  { %v5717_v9 = vpop.eup %5716  ;;  %v817_v11 = vmul.f32 1.442695, %v804_v7  ;;  %v821_v12 = vmul.f32 1.442695, %v806_v8 }
 0x2da   :  { %v841_v13 = vsel %vm606_vm8, %v5717_v9, 0.0 }
 0x2db   :  { %5718 = vpow2.f32 %v817_v11  ;;  %842 = vadd.xlane.f32.xlu1 %v841_v13 }
 0x2dc   :  { %5720 = vpow2.f32 %v821_v12 }
 0x2e1   :  { %v5719_v14 = vpop.eup %5718 }
 0x2e2   :  { %v5721_v15 = vpop.eup %5720  ;;  %v838_v16 = vsel %vm606_vm8, %v5719_v14, 0.0 }
 0x2e3   :  { %v844_v17 = vsel %vm606_vm8, %v5721_v15, 0.0  ;;  %839 = vadd.xlane.f32.xlu1 %v838_v16 }
 0x2e4   :  { %845 = vadd.xlane.f32.xlu2 %v844_v17 }
 0x321   :  { %v825_v18 = vpop.xlane.xlu2 %824 }
 0x322   :  { %5722 = vrcp.f32 %v825_v18 }
 0x328   :  { %v5723_v19 = vpop.eup %5722 }
 0x329   :  { %v855_v20 = vmul.f32 %v5723_v19, %v5707_v42 }
 0x32b   :  { %v863_v21 = vpack.c.bf16 %v855_v20, %v855_v20 }
 0x32d   :  { %4875 = vmatmul.msk.bf16.vlgmr.msrb.gmra.mxu0 %vm606_vm8, %v863_v21 }
 0x32e   :  { %1052 = vmatpush.bf16.msrb.mxu0 %v1043_v53 }
 0x337   :  { %v831_v22 = vpop.xlane.xlu0 %830 }
 0x338   :  { %5724 = vrcp.f32 %v831_v22 }
 0x33e   :  { %v5725_v23 = vpop.eup %5724 }
 0x33f   :  { %v857_v24 = vmul.f32 %v5725_v23, %v5709_v54  ;;  %v828_v25 = vpop.xlane.xlu0 %827 }
 0x340   :  { %v834_v26 = vpop.xlane.xlu1 %833  ;;  %5726 = vrcp.f32 %v828_v25 }
 0x341   :  { %v865_v27 = vpack.c.bf16 %v857_v24, %v857_v24  ;;  %5728 = vrcp.f32 %v834_v26 }
 0x343   :  { %4877 = vmatmul.msk.bf16.vlgmr.msrb.gmra.mxu2 %vm606_vm8, %v865_v27 }
 0x344   :  { %1113 = vmatpush.bf16.msrb.mxu2 %v1104_v59 }
 0x346   :  { %v5727_v28 = vpop.eup %5726 }
 0x347   :  { %v5729_v29 = vpop.eup %5728  ;;  %v856_v30 = vmul.f32 %v5727_v28, %v5711_v60  ;;  %v837_v31 = vpop.xlane.xlu0 %836 }
 0x348   :  { %v858_v32 = vmul.f32 %v5729_v29, %v5713_v61  ;;  %5730 = vrcp.f32 %v837_v31 }
 0x349   :  { %v864_v33 = vpack.c.bf16 %v856_v30, %v856_v30 }
 0x34a   :  { %v866_v34 = vpack.c.bf16 %v858_v32, %v858_v32 }
 0x34b   :  { %4876 = vmatmul.msk.bf16.vlgmr.msrb.gmra.mxu1 %vm606_vm8, %v864_v33 }
 0x34c   :  { %4878 = vmatmul.msk.bf16.vlgmr.msrb.gmra.mxu3 %vm606_vm8, %v866_v34  ;;  %1084 = vmatpush.bf16.msrb.mxu1 %v1075_v57  ;;  %v5654_v34 = vld [vmem:[%s7175_s7] ss:$0 sm:$0xff] }
 0x34d   :  { %1142 = vmatpush.bf16.msrb.mxu3 %v1133_v1 }
 0x34e   :  { %v5731_v35 = vpop.eup %5730  ;;  %v843_v36 = vpop.xlane.xlu1 %842 }
 0x34f   :  { %v859_v37 = vmul.f32 %v5731_v35, %v5715_v2  ;;  %5732 = vrcp.f32 %v843_v36 }
 0x351   :  { %v867_v38 = vpack.c.bf16 %v859_v37, %v859_v37 }
 0x353   :  { %4879 = vmatmul.msk.bf16.vlgmr.msra.gmra.mxu0 %vm606_vm8, %v867_v38 }
 0x355   :  { %v5733_v39 = vpop.eup %5732 }
 0x356   :  { %v861_v40 = vmul.f32 %v5733_v39, %v5717_v9  ;;  %v840_v41 = vpop.xlane.xlu1 %839 }
 0x357   :  { %v846_v42 = vpop.xlane.xlu2 %845  ;;  %5734 = vrcp.f32 %v840_v41 }
 0x358   :  { %v869_v43 = vpack.c.bf16 %v861_v40, %v861_v40  ;;  %5736 = vrcp.f32 %v846_v42 }
 0x35a   :  { %4881 = vmatmul.msk.bf16.vlgmr.msra.gmra.mxu2 %vm606_vm8, %v869_v43 }
 0x35d   :  { %v5735_v44 = vpop.eup %5734 }
 0x35e   :  { %v5737_v45 = vpop.eup %5736  ;;  %v860_v46 = vmul.f32 %v5735_v44, %v5719_v14 }
 0x35f   :  { %v862_v47 = vmul.f32 %v5737_v45, %v5721_v15  ;;  %v5858_v45 = vld [vmem:[%s7199_s23] sm:$0xff] }
 0x360   :  { %v868_v48 = vpack.c.bf16 %v860_v46, %v860_v46 }
 0x361   :  { %v870_v50 = vpack.c.bf16 %v862_v47, %v862_v47 }
 0x362   :  { %4880 = vmatmul.msk.bf16.vlgmr.msra.gmra.mxu1 %vm606_vm8, %v868_v48 }
 0x363   :  { %4882 = vmatmul.msk.bf16.vlgmr.msra.gmra.mxu3 %vm606_vm8, %v870_v50  ;;  %1272 = vmatpush.bf16.msra.mxu1 %v5557_v58 }
 0x3aa   :  { %v887_v51 = vpop.f32.mrf.mxu0 }
 0x3ab   :  { %v1024_v61 = vpack.c.bf16 %v887_v51, %v887_v51 }
 0x3ad   :  { %v1036_v2 = vunpack.c.l.b16 %v1024_v61 }
 0x3b2   :  { %v889_v54 = vpop.f32.mrf.mxu0 }
 0x3b3   :  { %v5859_v54 = vld [vmem:[%s7199_s23 + $0x8] sm:$0xff] }
 0x3c6   :  { %v925_v60 = vpop.f32.mrf.mxu2 }
 0x3c7   :  { %v1026_v5 = vpack.c.bf16 %v925_v60, %v925_v60 }
 0x3c8   :  { %v906_v62 = vpop.f32.mrf.mxu1 }
 0x3c9   :  { %v1025_v0 = vpack.c.bf16 %v906_v62, %v906_v62  ;;  %v1068_v12 = vunpack.c.l.b16 %v1026_v5  ;;  %v5556_v5 = vld [vmem:[%s7176_s8 + $0x40] sm:$0xff] }
 0x3ca   :  { %1273 = vmatpush.bf16.msra.mxu1 %v5556_v5  ;;  %v5577_v5 = vld [vmem:[%s7176_s8 + $0xb8] sm:$0xff] }
 0x3cb   :  { %v1037_v3 = vunpack.c.l.b16 %v1025_v0 }
 0x3cd   :  { %v1038_v4 = vpack.c.b16 %v1037_v3, %v1036_v2 }
 0x3ce   :  { %v927_v6 = vpop.f32.mrf.mxu2 }
 0x3cf   :  { %v944_v7 = vpop.f32.mrf.mxu3  ;;  %4883 = vmatmul.msk.bf16.vlgmr.msrb.gmra.mxu0 %vm606_vm8, %v1038_v4  ;;  %v69_v6 = vld [vmem:[%s7202_s22] sm:$0xff] }
 0x3d0   :  { %v1027_v8 = vpack.c.bf16 %v944_v7, %v944_v7  ;;  %v908_v9 = vpop.f32.mrf.mxu1  ;;  %v963_v11 = vpop.f32.mrf.mxu0  ;;  %v70_v7 = vld [vmem:[%s7202_s22 + $0x8] sm:$0xff] }
 0x3d1   :  { %v1028_v18 = vpack.c.bf16 %v963_v11, %v963_v11  ;;  %v5559_v9 = vld [vmem:[%s7176_s8 + $0x88] sm:$0xff]  ;;  %v5565_v11 = vld [vmem:[%s7176_s8 + $0x98] sm:$0xff] }
 0x3d2   :  { %v1069_v13 = vunpack.c.l.b16 %v1027_v8  ;;  %v6308_v8 = vpack.c.bf16 %v70_v7, %v69_v6  ;;  %1308 = vmatpush.bf16.msra.mxu2 %v5559_v9  ;;  %v5576_v7 = vld [vmem:[%s7176_s8 + $0xb0] sm:$0xff] }
 0x3d3   :  { %v1097_v21 = vunpack.c.l.b16 %v1028_v18 }
 0x3d4   :  { %v1070_v14 = vpack.c.b16 %v1069_v13, %v1068_v12  ;;  %v5558_v12 = vld [vmem:[%s7176_s8 + $0x80] sm:$0xff]  ;;  %v5564_v13 = vld [vmem:[%s7176_s8 + $0x90] sm:$0xff] }
 0x3d6   :  { %4885 = vmatmul.msk.bf16.vlgmr.msrb.gmra.mxu1 %vm606_vm8, %v1070_v14  ;;  %1309 = vmatpush.bf16.msra.mxu2 %v5558_v12  ;;  %v5555_v14 = vld [vmem:[%s7176_s8 + $0x8] sm:$0xff]  ;;  %v5658_v12 = vld [vmem:[%s7177_s9] ss:$0 sm:$0xff] }
 0x3d7   :  { %v946_v15 = vpop.f32.mrf.mxu3  ;;  %1416 = vmatpush.bf16.msrb.mxu1 %v5565_v11  ;;  %1233 = vmatpush.bf16.msra.mxu0 %v5555_v14 }
 0x3d8   :  { %v965_v16 = vpop.f32.mrf.mxu0  ;;  %v5561_v15 = vld [vmem:[%s7176_s8 + $0x18] sm:$0xff] }
 0x3d9   :  { %v5567_v16 = vld [vmem:[%s7176_s8 + $0x28] sm:$0xff]  ;;  %1344 = vmatpush.bf16.msra.mxu3 %v5561_v15 }
 0x3db   :  { %1417 = vmatpush.bf16.msrb.mxu1 %v5564_v13 }
 0x3dd   :  { %v1001_v17 = vpop.f32.mrf.mxu2 }
 0x3de   :  { %v1030_v24 = vpack.c.bf16 %v1001_v17, %v1001_v17  ;;  %v5573_v17 = vld [vmem:[%s7176_s8 + $0x38] sm:$0xff] }
 0x3df   :  { %v982_v19 = vpop.f32.mrf.mxu1 }
 0x3e0   :  { %v1029_v20 = vpack.c.bf16 %v982_v19, %v982_v19  ;;  %v1126_v29 = vunpack.c.l.b16 %v1030_v24  ;;  %v5554_v19 = vld [vmem:[%s7176_s8] sm:$0xff] }
 0x3e1   :  { %1234 = vmatpush.bf16.msra.mxu0 %v5554_v19 }
 0x3e2   :  { %v1098_v22 = vunpack.c.l.b16 %v1029_v20  ;;  %v5560_v20 = vld [vmem:[%s7176_s8 + $0x10] sm:$0xff] }
 0x3e3   :  { %1345 = vmatpush.bf16.msra.mxu3 %v5560_v20 }
 0x3e4   :  { %v1099_v23 = vpack.c.b16 %v1098_v22, %v1097_v21  ;;  %v5566_v21 = vld [vmem:[%s7176_s8 + $0x20] sm:$0xff] }
 0x3e5   :  { %v1003_v25 = vpop.f32.mrf.mxu2 }
 0x3e6   :  { %v1020_v26 = vpop.f32.mrf.mxu3  ;;  %4887 = vmatmul.msk.bf16.vlgmr.msrb.gmra.mxu2 %vm606_vm8, %v1099_v23  ;;  %4912 = vmatmul.msk.bf16.vlgmr.msra.gmra.mxu1 %vm90_vm0, %v6308_v8  ;;  %v5572_v23 = vld [vmem:[%s7176_s8 + $0x30] sm:$0xff]  ;;  %v5563_v25 = vld [vmem:[%s7176_s8 + $0x58] sm:$0xff] }
 0x3e7   :  { %v1031_v27 = vpack.c.bf16 %v1020_v26, %v1020_v26  ;;  %v984_v28 = vpop.f32.mrf.mxu1  ;;  %1452 = vmatpush.bf16.msrb.mxu2 %v5567_v16  ;;  %1560 = vmatpush.bf16.msra.mxu1 %v5573_v17  ;;  %v5569_v26 = vld [vmem:[%s7176_s8 + $0x68] sm:$0xff] }
 0x3e8   :  { %1380 = vmatpush.bf16.msrb.mxu0 %v5563_v25  ;;  %v5656_v25 = vld [vmem:[%s7177_s9 + $0x9] ss:$0 sm:$0xff] }
 0x3e9   :  { %v1127_v30 = vunpack.c.l.b16 %v1031_v27  ;;  %v5575_v27 = vld [vmem:[%s7176_s8 + $0x78] sm:$0xff] }
 0x3eb   :  { %v1128_v31 = vpack.c.b16 %v1127_v30, %v1126_v29  ;;  %1453 = vmatpush.bf16.msrb.mxu2 %v5566_v21  ;;  %1561 = vmatpush.bf16.msra.mxu1 %v5572_v23  ;;  %v5562_v29 = vld [vmem:[%s7176_s8 + $0x50] sm:$0xff]  ;;  %v5568_v30 = vld [vmem:[%s7176_s8 + $0x60] sm:$0xff] }
 0x3ec   :  { %1381 = vmatpush.bf16.msrb.mxu0 %v5562_v29  ;;  %v5662_v21 = vld [vmem:[%s7177_s9 + $0x5] ss:$0 sm:$0xff]  ;;  %v5660_v29 = vld [vmem:[%s7177_s9 + $0x1] ss:$0 sm:$0xff] }
 0x3ed   :  { %4889 = vmatmul.msk.bf16.vlgmr.msrb.gmra.mxu3 %vm606_vm8, %v1128_v31 }
 0x3ee   :  { %v1022_v32 = vpop.f32.mrf.mxu3  ;;  %1488 = vmatpush.bf16.msrb.mxu3 %v5569_v26  ;;  %v5657_v26 = vld [vmem:[%s7177_s9 + $0x8] ss:$0 sm:$0xff] }
 0x3ef   :  { %v5574_v32 = vld [vmem:[%s7176_s8 + $0x70] sm:$0xff] }
 0x3f2   :  { %1489 = vmatpush.bf16.msrb.mxu3 %v5568_v30 }
 0x3f6   :  { %4926 = vmatmul.msk.bf16.vlgmr.msra.gmra.mxu2 %vm90_vm0, %v6308_v8  ;;  %4968 = vmatmul.msk.bf16.vlgmr.msrb.gmra.mxu1 %vm90_vm0, %v6308_v8 }
 0x3f7   :  { %1596 = vmatpush.bf16.msra.mxu2 %v5575_v27 }
 0x3fb   :  { %1597 = vmatpush.bf16.msra.mxu2 %v5574_v32 }
 0x44c   :  { %v1054_v33 = vpop.f32.mrf.mxu0 }
 0x44d   :  { %v1062_v37 = vadd.f32 %v5654_v34, %v1054_v33 }
 0x453   :  { %v1086_v35 = vpop.f32.mrf.mxu1 }
 0x454   :  { %v1091_v38 = vadd.f32 %v1086_v35, %v1062_v37  ;;  %v1056_v40 = vpop.f32.mrf.mxu0 }
 0x455   :  { %v1063_v44 = vadd.f32 %v5654_v34, %v1056_v40 }
 0x45b   :  { %v1088_v43 = vpop.f32.mrf.mxu1 }
 0x45c   :  { %v1092_v48 = vadd.f32 %v1088_v43, %v1063_v44  ;;  %v1173_v43 = vperm.slane %v6090_v49, 1 }
 0x469   :  { %v1115_v36 = vpop.f32.mrf.mxu2 }
 0x46a   :  { %v1120_v39 = vadd.f32 %v1115_v36, %v1091_v38 }
 0x470   :  { %v1144_v41 = vpop.f32.mrf.mxu3 }
 0x471   :  { %v1149_v42 = vadd.f32 %v1144_v41, %v1120_v39  ;;  %v1117_v47 = vpop.f32.mrf.mxu2 }
 0x472   :  { %v1121_v51 = vadd.f32 %v1117_v47, %v1092_v48 }
 0x473   :  { %v6271_v46 = vadd.f32 %v5858_v45, %v1149_v42 }
 0x475   :  { %v1153_v50 = vsel %vm90_vm0, %v6271_v46, 0.0 }
 0x476   :  { %1154 = vadd.xlane.f32.xlu2 %v1153_v50 }
 0x478   :  { %v1146_v52 = vpop.f32.mrf.mxu3 }
 0x479   :  { %v1150_v53 = vadd.f32 %v1146_v52, %v1121_v51  ;;  %v1200_v52 = vperm.slane %v6096_v55, 1  ;;  %v5571_v55 = vld [vmem:[%s7176_s8 + $0xa8] sm:$0xff]  ;;  %v1311_v9 = vpop.f32.mrf.mxu2 }
 0x47b   :  { %v6278_v56 = vadd.f32 %v5859_v54, %v1150_v53 }
 0x47d   :  { %v1156_v57 = vsel %vm90_vm0, %v6278_v56, 0.0 }
 0x47e   :  { %1157 = vadd.xlane.f32.xlu0 %v1156_v57 }
 0x481   :  { %v1313_v11 = vpop.f32.mrf.mxu2 }
 0x4e9   :  { %v1155_v59 = vpop.xlane.xlu2 %1154 }
 0x4ea   :  { %v1159_v60 = vmul.f32 %v1155_v59, %v6023_v10 }
 0x4ec   :  { %v6287_v61 = vsub.f32 %v6271_v46, %v1159_v60  ;;  %v5570_v60 = vld [vmem:[%s7176_s8 + $0xa0] sm:$0xff] }
 0x4ee   :  { %v1163_v62 = vmul.f32 %v6287_v61, %v6287_v61  ;;  %v1174_v48 = vmul.f32 %v1173_v43, %v6287_v61  ;;  %v5655_v61 = vld [vmem:[%s7177_s9 + $0x4] ss:$0 sm:$0xff] }
 0x4f0   :  { %v1165_v63 = vsel %vm90_vm0, %v1163_v62, 0.0  ;;  %v1275_v62 = vpop.f32.mrf.mxu1 }
 0x4f1   :  { %1166 = vadd.xlane.f32.xlu1 %v1165_v63  ;;  %v1158_v0 = vpop.xlane.xlu0 %1157  ;;  %v1276_v63 = vadd.f32 %v5655_v61, %v1275_v62 }
 0x4f2   :  { %v1160_v1 = vmul.f32 %v1158_v0, %v6023_v10 }
 0x4f3   :  { %v1648_v0 = vpack.c.bf16 %v1276_v63, %v1276_v63 }
 0x4f4   :  { %v6294_v2 = vsub.f32 %v6278_v56, %v1160_v1 }
 0x4f5   :  { %v1668_v1 = vsel %vm606_vm8, %v1648_v0, 0 }
 0x4f6   :  { %v1164_v3 = vmul.f32 %v6294_v2, %v6294_v2  ;;  %v1175_v51 = vmul.f32 %v1173_v43, %v6294_v2 }
 0x4f8   :  { %v1168_v4 = vsel %vm90_vm0, %v1164_v3, 0.0  ;;  %v1277_v2 = vpop.f32.mrf.mxu1 }
 0x4f9   :  { %1169 = vadd.xlane.f32.xlu2 %v1168_v4  ;;  %v1278_v3 = vadd.f32 %v5655_v61, %v1277_v2 }
 0x4fb   :  { %v1649_v4 = vpack.c.bf16 %v1278_v3, %v1278_v3 }
 0x4fd   :  { %v1687_v6 = vsel %vm606_vm8, %v1649_v4, 0 }
 0x4fe   :  { %1696 = vmatpush.bf16.xpose.msrb.mxu1 %v1687_v6 }
 0x564   :  { %v1167_v18 = vpop.xlane.xlu1 %1166 }
 0x565   :  { %v1171_v22 = vmul.f32 %v1167_v18, %v6023_v10 }
 0x567   :  { %v1176_v24 = vadd.f32 1e-06, %v1171_v22  ;;  %v1419_v22 = vpop.f32.mrf.mxu1 }
 0x568   :  { %v1420_v32 = vadd.f32 %v5656_v25, %v1419_v22 }
 0x569   :  { %5738 = vrsqrt.f32 %v1176_v24  ;;  %vm1184_vm11 = vweird.f32 %v1176_v24 }
 0x56c   :  { %v1170_v28 = vpop.xlane.xlu2 %1169 }
 0x56d   :  { %v1172_v31 = vmul.f32 %v1170_v28, %v6023_v10 }
 0x56f   :  { %v5739_v33 = vpop.eup %5738  ;;  %v1177_v34 = vadd.f32 1e-06, %v1172_v31  ;;  %v5663_v31 = vld [vmem:[%s7177_s9 + $0x6] ss:$0 sm:$0xff] }
 0x570   :  { %v1179_v35 = vmul.f32 %v5739_v33, %v1176_v24  ;;  %vm1185_vm10 = vweird.f32 %v5739_v33 }
 0x571   :  { %5740 = vrsqrt.f32 %v1177_v34  ;;  %vm1186_vm12 = vmor %vm1184_vm11, %vm1185_vm10  ;;  %vm1194_vm14 = vweird.f32 %v1177_v34 }
 0x572   :  { %v1180_v36 = vmul.f32 %v5739_v33, %v1179_v35 }
 0x574   :  { %v1181_v37 = vmul.f32 0.5, %v1180_v36 }
 0x576   :  { %v1182_v38 = vsub.f32 1.5, %v1181_v37 }
 0x577   :  { %v5741_v39 = vpop.eup %5740 }
 0x578   :  { %v1189_v40 = vmul.f32 %v5741_v39, %v1177_v34  ;;  %v1183_v41 = vmul.f32 %v5739_v33, %v1182_v38  ;;  %vm1195_vm13 = vweird.f32 %v5741_v39  ;;  %v5664_v34 = vld [vmem:[%s7177_s9 + $0x7] ss:$0 sm:$0xff] }
 0x579   :  { %vm1196_vm15 = vmor %vm1194_vm14, %vm1195_vm13 }
 0x57a   :  { %v1190_v42 = vmul.f32 %v5741_v39, %v1189_v40  ;;  %v1187_v45 = vsel %vm1186_vm12, %v5739_v33, %v1183_v41  ;;  %v1312_v33 = vadd.f32 %v5657_v26, %v1311_v9  ;;  %v1658_v40 = vpack.c.bf16 %v1420_v32, %v1420_v32  ;;  %v5659_v9 = vld [vmem:[%s7177_s9 + $0x3] ss:$0 sm:$0xff] }
 0x57b   :  { %v1198_v53 = vmul.f32 %v1187_v45, %v1174_v48  ;;  %v5661_v45 = vld [vmem:[%s7177_s9 + $0x2] ss:$0 sm:$0xff] }
 0x57c   :  { %v1191_v44 = vmul.f32 0.5, %v1190_v42  ;;  %v1656_v41 = vpack.c.bf16 %v1312_v33, %v1312_v33  ;;  %v1421_v42 = vpop.f32.mrf.mxu1 }
 0x57d   :  { %v1201_v58 = vadd.f32 %v1200_v52, %v1198_v53 }
 0x57e   :  { %v1192_v47 = vsub.f32 1.5, %v1191_v44 }
 0x580   :  { %v1193_v50 = vmul.f32 %v5741_v39, %v1192_v47 }
 0x582   :  { %v1197_v54 = vsel %vm1196_vm15, %v5741_v39, %v1193_v50 }
 0x583   :  { %v1199_v57 = vmul.f32 %v1197_v54, %v1175_v51  ;;  %v1970_v54 = vsel %vm874_vm9, %v1658_v40, 0 }
 0x585   :  { %v1202_v49 = vadd.f32 %v1200_v52, %v1199_v57  ;;  %v1932_v57 = vsel %vm874_vm9, %v1656_v41, 0 }
 0x587   :  { %v1203_v59 = vpack.c.bf16 %v1202_v49, %v1201_v58  ;;  %v1314_v58 = vadd.f32 %v5657_v26, %v1313_v11 }
 0x589   :  { %4898 = vmatmul.msk.bf16.vlgmr.msra.gmra.mxu0 %vm90_vm0, %v1203_v59  ;;  %4940 = vmatmul.msk.bf16.vlgmr.msra.gmra.mxu3 %vm90_vm0, %v1203_v59 }
 0x58a   :  { %4982 = vmatmul.msk.bf16.vlgmr.msrb.gmra.mxu2 %vm90_vm0, %v1203_v59  ;;  %5024 = vmatmul.msk.bf16.vlgmr.msra.gmra.mxu1 %vm90_vm0, %v1203_v59 }
 0x58b   :  { %1524 = vmatpush.bf16.msra.mxu0 %v5571_v55  ;;  %1632 = vmatpush.bf16.msra.mxu3 %v5577_v5 }
 0x58f   :  { %1525 = vmatpush.bf16.msra.mxu0 %v5570_v60  ;;  %1633 = vmatpush.bf16.msra.mxu3 %v5576_v7  ;;  %v1422_v60 = vadd.f32 %v5656_v25, %v1421_v42  ;;  %v80_v42 = vld [vmem:[%s7203_s30] sm:$0xff] }
 0x591   :  { %v1659_v5 = vpack.c.bf16 %v1422_v60, %v1422_v60 }
 0x599   :  { %4954 = vmatmul.msk.bf16.vlgmr.msrb.gmra.mxu0 %vm90_vm0, %v6308_v8  ;;  %4996 = vmatmul.msk.bf16.vlgmr.msrb.gmra.mxu3 %vm90_vm0, %v6308_v8 }
 0x59a   :  { %5038 = vmatmul.msk.bf16.vlgmr.msra.gmra.mxu2 %vm90_vm0, %v6308_v8  ;;  %1677 = vmatpush.bf16.xpose.msrb.mxu0 %v1668_v1  ;;  %v1657_v1 = vpack.c.bf16 %v1314_v58, %v1314_v58 }
 0x5a9   :  { %5010 = vmatmul.msk.bf16.vlgmr.msra.gmra.mxu0 %vm90_vm0, %v6308_v8  ;;  %5052 = vmatmul.msk.bf16.vlgmr.msra.gmra.mxu3 %vm90_vm0, %v6308_v8 }
 0x606   :  { %v1236_v13 = vpop.f32.mrf.mxu0 }
 0x607   :  { %v1237_v14 = vadd.f32 %v5658_v12, %v1236_v13  ;;  %v1563_v6 = vpop.f32.mrf.mxu1 }
 0x609   :  { %v1640_v15 = vpack.c.bf16 %v1237_v14, %v1237_v14  ;;  %v1951_v14 = vsel %vm874_vm9, %v1657_v1, 0 }
 0x60b   :  { %5053 = vmatmul.msk.bf16.vlgmr.msrb.gmra.mxu0 %vm606_vm8, %v1640_v15 }
 0x60c   :  { %v1347_v16 = vpop.f32.mrf.mxu3 }
 0x60d   :  { %v1455_v17 = vpop.f32.mrf.mxu2  ;;  %v1348_v37 = vadd.f32 %v5660_v29, %v1347_v16  ;;  %v1989_v16 = vsel %vm874_vm9, %v1659_v5, 0 }
 0x60e   :  { %v1238_v18 = vpop.f32.mrf.mxu0  ;;  %v1456_v59 = vadd.f32 %v5661_v45, %v1455_v17  ;;  %v1564_v17 = vadd.f32 %v5659_v9, %v1563_v6  ;;  %v84_v6 = vld [vmem:[%s7203_s30 + $0x20] sm:$0xff] }
 0x60f   :  { %v1239_v19 = vadd.f32 %v5658_v12, %v1238_v18  ;;  %v1642_v51 = vpack.c.bf16 %v1348_v37, %v1348_v37 }
 0x610   :  { %v1644_v3 = vpack.c.bf16 %v1456_v59, %v1456_v59  ;;  %v81_v59 = vld [vmem:[%s7203_s30 + $0x8] sm:$0xff] }
 0x611   :  { %v1641_v20 = vpack.c.bf16 %v1239_v19, %v1239_v19  ;;  %v1646_v19 = vpack.c.bf16 %v1564_v17, %v1564_v17 }
 0x613   :  { %5054 = vmatmul.msk.bf16.vlgmr.msrb.gmra.mxu1 %vm606_vm8, %v1641_v20  ;;  %v1565_v20 = vpop.f32.mrf.mxu1 }
 0x614   :  { %v1349_v23 = vpop.f32.mrf.mxu3 }
 0x615   :  { %v1457_v24 = vpop.f32.mrf.mxu2  ;;  %v1350_v62 = vadd.f32 %v5660_v29, %v1349_v23  ;;  %v5665_v23 = vld [vmem:[%s7177_s9 + $0xa] ss:$0 sm:$0xff] }
 0x616   :  { %v1383_v27 = vpop.f32.mrf.mxu0  ;;  %v1458_v15 = vadd.f32 %v5661_v45, %v1457_v24 }
 0x617   :  { %v1384_v28 = vadd.f32 %v5662_v21, %v1383_v27  ;;  %v1643_v11 = vpack.c.bf16 %v1350_v62, %v1350_v62 }
 0x618   :  { %v1645_v18 = vpack.c.bf16 %v1458_v15, %v1458_v15 }
 0x619   :  { %v1650_v30 = vpack.c.bf16 %v1384_v28, %v1384_v28  ;;  %v5666_v28 = vld [vmem:[%s7177_s9 + $0xb] ss:$0 sm:$0xff] }
 0x61b   :  { %v1706_v35 = vsel %vm606_vm8, %v1650_v30, 0 }
 0x61c   :  { %v1491_v36 = vpop.f32.mrf.mxu3  ;;  %1715 = vmatpush.bf16.xpose.msrb.mxu2 %v1706_v35 }
 0x61d   :  { %v1492_v38 = vadd.f32 %v5663_v31, %v1491_v36  ;;  %v1599_v39 = vpop.f32.mrf.mxu2 }
 0x61e   :  { %v1600_v43 = vadd.f32 %v5664_v34, %v1599_v39  ;;  %v1385_v44 = vpop.f32.mrf.mxu0 }
 0x61f   :  { %v1652_v47 = vpack.c.bf16 %v1492_v38, %v1492_v38  ;;  %v1386_v48 = vadd.f32 %v5662_v21, %v1385_v44  ;;  %v1566_v21 = vadd.f32 %v5659_v9, %v1565_v20 }
 0x620   :  { %v1654_v50 = vpack.c.bf16 %v1600_v43, %v1600_v43 }
 0x621   :  { %v1744_v52 = vsel %vm606_vm8, %v1652_v47, 0  ;;  %v1651_v53 = vpack.c.bf16 %v1386_v48, %v1386_v48  ;;  %v1647_v22 = vpack.c.bf16 %v1566_v21, %v1566_v21 }
 0x622   :  { %v1782_v49 = vsel %vm606_vm8, %v1654_v50, 0  ;;  %1753 = vmatpush.bf16.xpose.msra.mxu0 %v1744_v52 }
 0x623   :  { %5055 = vmatmul.msk.bf16.vlgmr.msrb.gmra.mxu2 %vm606_vm8, %v1642_v51  ;;  %v1725_v55 = vsel %vm606_vm8, %v1651_v53, 0  ;;  %v82_v53 = vld [vmem:[%s7203_s30 + $0x10] sm:$0xff] }
 0x624   :  { %1791 = vmatpush.bf16.xpose.msra.mxu2 %v1782_v49  ;;  %v1493_v61 = vpop.f32.mrf.mxu3  ;;  %1734 = vmatpush.bf16.xpose.msrb.mxu3 %v1725_v55 }
 0x625   :  { %v1494_v63 = vadd.f32 %v5663_v31, %v1493_v61  ;;  %v1601_v0 = vpop.f32.mrf.mxu2  ;;  %v83_v61 = vld [vmem:[%s7203_s30 + $0x18] sm:$0xff] }
 0x626   :  { %v1602_v2 = vadd.f32 %v5664_v34, %v1601_v0  ;;  %v1527_v24 = vpop.f32.mrf.mxu0 }
 0x627   :  { %v1653_v4 = vpack.c.bf16 %v1494_v63, %v1494_v63  ;;  %v1528_v25 = vadd.f32 %v5665_v23, %v1527_v24 }
 0x628   :  { %v1655_v7 = vpack.c.bf16 %v1602_v2, %v1602_v2 }
 0x629   :  { %5057 = vmatmul.msk.bf16.vlgmr.msra.gmra.mxu0 %vm606_vm8, %v1644_v3  ;;  %v1763_v12 = vsel %vm606_vm8, %v1653_v4, 0  ;;  %v1660_v26 = vpack.c.bf16 %v1528_v25, %v1528_v25 }
 0x62a   :  { %1941 = vmatpush.bf16.msrb.mxu0 %v1932_v57  ;;  %1772 = vmatpush.bf16.xpose.msra.mxu1 %v1763_v12  ;;  %v1801_v13 = vsel %vm606_vm8, %v1655_v7, 0 }
 0x62b   :  { %5056 = vmatmul.msk.bf16.vlgmr.msrb.gmra.mxu3 %vm606_vm8, %v1643_v11  ;;  %v2008_v27 = vsel %vm874_vm9, %v1660_v26, 0  ;;  %v86_v11 = vld [vmem:[%s7203_s30 + $0x30] sm:$0xff] }
 0x62c   :  { %1979 = vmatpush.bf16.msrb.mxu2 %v1970_v54  ;;  %1810 = vmatpush.bf16.xpose.msra.mxu3 %v1801_v13  ;;  %v1635_v29 = vpop.f32.mrf.mxu3 }
 0x62d   :  { %v1636_v30 = vadd.f32 %v5666_v28, %v1635_v29 }
 0x62e   :  { %2017 = vmatpush.bf16.msra.mxu0 %v2008_v27  ;;  %v1529_v33 = vpop.f32.mrf.mxu0 }
 0x62f   :  { %v1662_v31 = vpack.c.bf16 %v1636_v30, %v1636_v30  ;;  %v1530_v34 = vadd.f32 %v5665_v23, %v1529_v33 }
 0x631   :  { %5058 = vmatmul.msk.bf16.vlgmr.msra.gmra.mxu1 %vm606_vm8, %v1645_v18  ;;  %v2046_v32 = vsel %vm874_vm9, %v1662_v31, 0  ;;  %v1661_v38 = vpack.c.bf16 %v1530_v34, %v1530_v34 }
 0x632   :  { %1960 = vmatpush.bf16.msrb.mxu1 %v1951_v14 }
 0x633   :  { %5059 = vmatmul.msk.bf16.vlgmr.msra.gmra.mxu2 %vm606_vm8, %v1646_v19  ;;  %v2027_v40 = vsel %vm874_vm9, %v1661_v38, 0  ;;  %v85_v19 = vld [vmem:[%s7203_s30 + $0x28] sm:$0xff] }
 0x634   :  { %1998 = vmatpush.bf16.msrb.mxu3 %v1989_v16  ;;  %2055 = vmatpush.bf16.msra.mxu2 %v2046_v32  ;;  %v1637_v35 = vpop.f32.mrf.mxu3 }
 0x635   :  { %v1638_v36 = vadd.f32 %v5666_v28, %v1637_v35 }
 0x636   :  { %2036 = vmatpush.bf16.msra.mxu1 %v2027_v40 }
 0x637   :  { %v1663_v37 = vpack.c.bf16 %v1638_v36, %v1638_v36 }
 0x639   :  { %v2065_v39 = vsel %vm874_vm9, %v1663_v37, 0 }
 0x63b   :  { %5060 = vmatmul.msk.bf16.vlgmr.msra.gmra.mxu3 %vm606_vm8, %v1647_v22  ;;  %v87_v22 = vld [vmem:[%s7203_s30 + $0x38] sm:$0xff] }
 0x63c   :  { %2074 = vmatpush.bf16.msra.mxu3 %v2065_v39 }
 0x688   :  { %v1679_v41 = vpop.f32.mrf.mxu0 }
 0x689   :  { %v1816_v43 = vmul.f32 0.35355338, %v1679_v41 }
 0x68b   :  { %v1824_v44 = vadd.f32 %v1816_v43, %v80_v42 }
 0x68d   :  { %v1832_v45 = vsel %vm606_vm8, %v1824_v44, -inf }
 0x68e   :  { %1833 = vmax.xlane.f32.xlu2 %v1832_v45 }
 0x690   :  { %v1681_v47 = vpop.f32.mrf.mxu0  ;;  %v1698_v48 = vpop.f32.mrf.mxu1 }
 0x691   :  { %v1817_v58 = vmul.f32 0.35355338, %v1698_v48 }
 0x693   :  { %v1825_v1 = vadd.f32 %v1817_v58, %v81_v59 }
 0x695   :  { %v1835_v5 = vsel %vm606_vm8, %v1825_v1, -inf }
 0x698   :  { %v1700_v50 = vpop.f32.mrf.mxu1 }
 0x6a6   :  { %v1717_v51 = vpop.f32.mrf.mxu2  ;;  %v1755_v52 = vpop.f32.mrf.mxu0 }
 0x6a7   :  { %v1818_v54 = vmul.f32 0.35355338, %v1717_v51  ;;  %v1820_v3 = vmul.f32 0.35355338, %v1755_v52 }
 0x6a9   :  { %v1826_v57 = vadd.f32 %v1818_v54, %v82_v53  ;;  %v1828_v14 = vadd.f32 %v1820_v3, %v84_v6 }
 0x6ab   :  { %v1838_v49 = vsel %vm606_vm8, %v1826_v57, -inf  ;;  %v1844_v18 = vsel %vm606_vm8, %v1828_v14, -inf }
 0x6ac   :  { %1839 = vmax.xlane.f32.xlu0 %v1838_v49 }
 0x6ae   :  { %v1719_v55 = vpop.f32.mrf.mxu2  ;;  %v1736_v60 = vpop.f32.mrf.mxu3 }
 0x6af   :  { %v1819_v62 = vmul.f32 0.35355338, %v1736_v60  ;;  %v1757_v63 = vpop.f32.mrf.mxu0  ;;  %v1774_v0 = vpop.f32.mrf.mxu1 }
 0x6b0   :  { %v1821_v16 = vmul.f32 0.35355338, %v1774_v0 }
 0x6b1   :  { %v1827_v2 = vadd.f32 %v1819_v62, %v83_v61 }
 0x6b2   :  { %v1829_v24 = vadd.f32 %v1821_v16, %v85_v19 }
 0x6b3   :  { %v1841_v4 = vsel %vm606_vm8, %v1827_v2, -inf }
 0x6b4   :  { %1842 = vmax.xlane.f32.xlu1 %v1841_v4  ;;  %1836 = vmax.xlane.f32.xlu0 %v1835_v5  ;;  %v1847_v26 = vsel %vm606_vm8, %v1829_v24, -inf }
 0x6b6   :  { %v1738_v7 = vpop.f32.mrf.mxu3  ;;  %v1793_v9 = vpop.f32.mrf.mxu2 }
 0x6b7   :  { %v1776_v12 = vpop.f32.mrf.mxu1  ;;  %v1822_v13 = vmul.f32 0.35355338, %v1793_v9 }
 0x6b9   :  { %v1830_v15 = vadd.f32 %v1822_v13, %v86_v11 }
 0x6bb   :  { %v1850_v17 = vsel %vm606_vm8, %v1830_v15, -inf }
 0x6bc   :  { %1851 = vmax.xlane.f32.xlu1 %v1850_v17  ;;  %1845 = vmax.xlane.f32.xlu0 %v1844_v18 }
 0x6be   :  { %v1795_v20 = vpop.f32.mrf.mxu2  ;;  %v1812_v21 = vpop.f32.mrf.mxu3 }
 0x6bf   :  { %v1823_v23 = vmul.f32 0.35355338, %v1812_v21 }
 0x6c1   :  { %v1831_v25 = vadd.f32 %v1823_v23, %v87_v22 }
 0x6c3   :  { %v1853_v27 = vsel %vm606_vm8, %v1831_v25, -inf }
 0x6c4   :  { %1848 = vmax.xlane.f32.xlu1 %v1847_v26  ;;  %1854 = vmax.xlane.f32.xlu2 %v1853_v27 }
 0x6c6   :  { %v1814_v28 = vpop.f32.mrf.mxu3 }
 0x701   :  { %v1834_v29 = vpop.xlane.xlu2 %1833 }
 0x702   :  { %v1856_v30 = vsub.f32 %v1824_v44, %v1834_v29 }
 0x704   :  { %v1864_v31 = vmul.f32 1.442695, %v1856_v30 }
 0x706   :  { %5742 = vpow2.f32 %v1864_v31 }
 0x70c   :  { %v5743_v32 = vpop.eup %5742 }
 0x70d   :  { %v1880_v33 = vsel %vm606_vm8, %v5743_v32, 0.0 }
 0x70e   :  { %1881 = vadd.xlane.f32.xlu1 %v1880_v33 }
 0x71f   :  { %v1840_v34 = vpop.xlane.xlu0 %1839 }
 0x720   :  { %v1858_v35 = vsub.f32 %v1826_v57, %v1840_v34 }
 0x722   :  { %v1868_v36 = vmul.f32 1.442695, %v1858_v35 }
 0x724   :  { %5744 = vpow2.f32 %v1868_v36 }
 0x727   :  { %v1843_v37 = vpop.xlane.xlu1 %1842  ;;  %v1837_v38 = vpop.xlane.xlu0 %1836 }
 0x728   :  { %v1859_v39 = vsub.f32 %v1827_v2, %v1843_v37  ;;  %v1857_v40 = vsub.f32 %v1825_v1, %v1837_v38 }
 0x72a   :  { %v5745_v41 = vpop.eup %5744  ;;  %v1870_v42 = vmul.f32 1.442695, %v1859_v39  ;;  %v1866_v43 = vmul.f32 1.442695, %v1857_v40 }
 0x72b   :  { %v1886_v45 = vsel %vm606_vm8, %v5745_v41, 0.0 }
 0x72c   :  { %5746 = vpow2.f32 %v1870_v42  ;;  %1887 = vadd.xlane.f32.xlu2 %v1886_v45 }
 0x72d   :  { %5748 = vpow2.f32 %v1866_v43  ;;  %v2089_v43 = vld [vmem:[%s7178_s10] sm:$0xf] }
 0x72e   :  { %v2099_v45 = vsel %vm874_vm9, %v2089_v43, 0 }
 0x72f   :  { %v1852_v44 = vpop.xlane.xlu1 %1851  ;;  %v1846_v47 = vpop.xlane.xlu0 %1845 }
 0x730   :  { %v1862_v48 = vsub.f32 %v1830_v15, %v1852_v44  ;;  %v1860_v50 = vsub.f32 %v1828_v14, %v1846_v47  ;;  %v5070_v44 = vld [vmem:[%s7178_s10 + $0x4] sm:$0xf] }
 0x731   :  { %v2131_v47 = vsel %vm874_vm9, %v5070_v44, 0 }
 0x732   :  { %v5747_v51 = vpop.eup %5746  ;;  %v1876_v52 = vmul.f32 1.442695, %v1862_v48  ;;  %v1872_v53 = vmul.f32 1.442695, %v1860_v50  ;;  %v5072_v48 = vld [vmem:[%s7178_s10 + $0x8] sm:$0xf] }
 0x733   :  { %v5749_v54 = vpop.eup %5748  ;;  %v1889_v57 = vsel %vm606_vm8, %v5747_v51, 0.0  ;;  %v2160_v50 = vsel %vm874_vm9, %v5072_v48, 0 }
 0x734   :  { %5750 = vpow2.f32 %v1876_v52  ;;  %v1883_v58 = vsel %vm606_vm8, %v5749_v54, 0.0  ;;  %1890 = vadd.xlane.f32.xlu0 %v1889_v57 }
 0x735   :  { %5752 = vpow2.f32 %v1872_v53  ;;  %1884 = vadd.xlane.f32.xlu2 %v1883_v58 }
 0x737   :  { %v1849_v49 = vpop.xlane.xlu1 %1848  ;;  %v1855_v59 = vpop.xlane.xlu2 %1854 }
 0x738   :  { %v1861_v55 = vsub.f32 %v1829_v24, %v1849_v49  ;;  %v1863_v60 = vsub.f32 %v1831_v25, %v1855_v59 }
 0x73a   :  { %v5751_v61 = vpop.eup %5750  ;;  %v1874_v62 = vmul.f32 1.442695, %v1861_v55  ;;  %v1878_v63 = vmul.f32 1.442695, %v1863_v60 }
 0x73b   :  { %v5753_v0 = vpop.eup %5752  ;;  %v1898_v1 = vsel %vm606_vm8, %v5751_v61, 0.0 }
 0x73c   :  { %5754 = vpow2.f32 %v1874_v62  ;;  %1899 = vadd.xlane.f32.xlu0 %v1898_v1  ;;  %v1892_v2 = vsel %vm606_vm8, %v5753_v0, 0.0 }
 0x73d   :  { %5756 = vpow2.f32 %v1878_v63  ;;  %1893 = vadd.xlane.f32.xlu2 %v1892_v2 }
 0x742   :  { %v5755_v3 = vpop.eup %5754 }
 0x743   :  { %v5757_v4 = vpop.eup %5756  ;;  %v1895_v5 = vsel %vm606_vm8, %v5755_v3, 0.0 }
 0x744   :  { %v1901_v6 = vsel %vm606_vm8, %v5757_v4, 0.0  ;;  %1896 = vadd.xlane.f32.xlu0 %v1895_v5 }
 0x745   :  { %1902 = vadd.xlane.f32.xlu1 %v1901_v6 }
 0x781   :  { %v1882_v7 = vpop.xlane.xlu1 %1881 }
 0x782   :  { %5758 = vrcp.f32 %v1882_v7 }
 0x788   :  { %v5759_v9 = vpop.eup %5758 }
 0x789   :  { %v1912_v11 = vmul.f32 %v5759_v9, %v5743_v32 }
 0x78b   :  { %v1920_v12 = vpack.c.bf16 %v1912_v11, %v1912_v11 }
 0x78d   :  { %5061 = vmatmul.msk.bf16.vlgmr.msrb.gmra.mxu0 %vm606_vm8, %v1920_v12 }
 0x78e   :  { %2108 = vmatpush.bf16.msrb.mxu0 %v2099_v45 }
 0x79f   :  { %v1888_v13 = vpop.xlane.xlu2 %1887 }
 0x7a0   :  { %5760 = vrcp.f32 %v1888_v13 }
 0x7a6   :  { %v5761_v14 = vpop.eup %5760 }
 0x7a7   :  { %v1914_v15 = vmul.f32 %v5761_v14, %v5745_v41  ;;  %v1891_v16 = vpop.xlane.xlu0 %1890 }
 0x7a8   :  { %v1885_v17 = vpop.xlane.xlu2 %1884  ;;  %5762 = vrcp.f32 %v1891_v16 }
 0x7a9   :  { %v1922_v18 = vpack.c.bf16 %v1914_v15, %v1914_v15  ;;  %5764 = vrcp.f32 %v1885_v17 }
 0x7ab   :  { %5063 = vmatmul.msk.bf16.vlgmr.msrb.gmra.mxu2 %vm606_vm8, %v1922_v18 }
 0x7ac   :  { %2169 = vmatpush.bf16.msrb.mxu2 %v2160_v50 }
 0x7ae   :  { %v5763_v19 = vpop.eup %5762 }
 0x7af   :  { %v5765_v20 = vpop.eup %5764  ;;  %v1915_v21 = vmul.f32 %v5763_v19, %v5747_v51  ;;  %v1900_v22 = vpop.xlane.xlu0 %1899  ;;  %v5074_v51 = vld [vmem:[%s7178_s10 + $0xc] sm:$0xf] }
 0x7b0   :  { %v1913_v23 = vmul.f32 %v5765_v20, %v5749_v54  ;;  %v1894_v24 = vpop.xlane.xlu2 %1893  ;;  %5766 = vrcp.f32 %v1900_v22  ;;  %v2189_v52 = vsel %vm874_vm9, %v5074_v51, 0 }
 0x7b1   :  { %v1923_v25 = vpack.c.bf16 %v1915_v21, %v1915_v21  ;;  %5768 = vrcp.f32 %v1894_v24 }
 0x7b2   :  { %v1921_v26 = vpack.c.bf16 %v1913_v23, %v1913_v23 }
 0x7b3   :  { %5064 = vmatmul.msk.bf16.vlgmr.msrb.gmra.mxu3 %vm606_vm8, %v1923_v25 }
 0x7b4   :  { %5062 = vmatmul.msk.bf16.vlgmr.msrb.gmra.mxu1 %vm606_vm8, %v1921_v26  ;;  %2198 = vmatpush.bf16.msrb.mxu3 %v2189_v52  ;;  %v5667_v26 = vld [vmem:[%s7179_s11] ss:$0 sm:$0xff] }
 0x7b5   :  { %2140 = vmatpush.bf16.msrb.mxu1 %v2131_v47 }
 0x7b6   :  { %v5767_v27 = vpop.eup %5766 }
 0x7b7   :  { %v5769_v28 = vpop.eup %5768  ;;  %v1918_v29 = vmul.f32 %v5767_v27, %v5751_v61  ;;  %v1897_v30 = vpop.xlane.xlu0 %1896 }
 0x7b8   :  { %v1916_v31 = vmul.f32 %v5769_v28, %v5753_v0  ;;  %v1903_v32 = vpop.xlane.xlu1 %1902  ;;  %5770 = vrcp.f32 %v1897_v30 }
 0x7b9   :  { %v1926_v33 = vpack.c.bf16 %v1918_v29, %v1918_v29  ;;  %5772 = vrcp.f32 %v1903_v32 }
 0x7ba   :  { %v1924_v34 = vpack.c.bf16 %v1916_v31, %v1916_v31 }
 0x7bb   :  { %5067 = vmatmul.msk.bf16.vlgmr.msra.gmra.mxu2 %vm606_vm8, %v1926_v33 }
 0x7bc   :  { %5065 = vmatmul.msk.bf16.vlgmr.msra.gmra.mxu0 %vm606_vm8, %v1924_v34 }
 0x7be   :  { %v5771_v35 = vpop.eup %5770 }
 0x7bf   :  { %v5773_v36 = vpop.eup %5772  ;;  %v1917_v37 = vmul.f32 %v5771_v35, %v5755_v3 }
 0x7c0   :  { %v1919_v38 = vmul.f32 %v5773_v36, %v5757_v4 }
 0x7c1   :  { %v1925_v39 = vpack.c.bf16 %v1917_v37, %v1917_v37 }
 0x7c2   :  { %v1927_v40 = vpack.c.bf16 %v1919_v38, %v1919_v38 }
 0x7c4   :  { %5066 = vmatmul.msk.bf16.vlgmr.msra.gmra.mxu1 %vm606_vm8, %v1925_v39  ;;  %5068 = vmatmul.msk.bf16.vlgmr.msra.gmra.mxu3 %vm606_vm8, %v1927_v40 }
 0x80a   :  { %v1943_v41 = vpop.f32.mrf.mxu0 }
 0x80b   :  { %v2080_v54 = vpack.c.bf16 %v1943_v41, %v1943_v41 }
 0x80d   :  { %v2092_v49 = vunpack.c.l.b16 %v2080_v54 }
 0x812   :  { %v1945_v42 = vpop.f32.mrf.mxu0 }
 0x82e   :  { %v1981_v53 = vpop.f32.mrf.mxu2 }
 0x82f   :  { %v2082_v55 = vpack.c.bf16 %v1981_v53, %v1981_v53 }
 0x831   :  { %v1962_v57 = vpop.f32.mrf.mxu1  ;;  %v2124_v0 = vunpack.c.l.b16 %v2082_v55 }
 0x832   :  { %v2081_v58 = vpack.c.bf16 %v1962_v57, %v1962_v57 }
 0x834   :  { %v2093_v59 = vunpack.c.l.b16 %v2081_v58  ;;  %v5579_v58 = vld [vmem:[%s7180_s12 + $0x8] sm:$0xff] }
 0x835   :  { %2289 = vmatpush.bf16.msra.mxu0 %v5579_v58 }
 0x836   :  { %v2094_v60 = vpack.c.b16 %v2093_v59, %v2092_v49  ;;  %v1983_v61 = vpop.f32.mrf.mxu2  ;;  %v2000_v62 = vpop.f32.mrf.mxu3  ;;  %v5578_v59 = vld [vmem:[%s7180_s12] sm:$0xff] }
 0x837   :  { %v2083_v63 = vpack.c.bf16 %v2000_v62, %v2000_v62 }
 0x838   :  { %5069 = vmatmul.msk.bf16.vlgmr.msrb.gmra.mxu0 %vm606_vm8, %v2094_v60 }
 0x839   :  { %v2125_v1 = vunpack.c.l.b16 %v2083_v63  ;;  %v1964_v2 = vpop.f32.mrf.mxu1  ;;  %v2019_v3 = vpop.f32.mrf.mxu0  ;;  %2290 = vmatpush.bf16.msra.mxu0 %v5578_v59  ;;  %v5585_v59 = vld [vmem:[%s7200_s26 + $0xc8] sm:$0xff] }
 0x83a   :  { %v2084_v7 = vpack.c.bf16 %v2019_v3, %v2019_v3  ;;  %2444 = vmatpush.bf16.msra.mxu2 %v5585_v59 }
 0x83b   :  { %v2126_v4 = vpack.c.b16 %v2125_v1, %v2124_v0 }
 0x83c   :  { %v2153_v13 = vunpack.c.l.b16 %v2084_v7 }
 0x83d   :  { %5071 = vmatmul.msk.bf16.vlgmr.msrb.gmra.mxu1 %vm606_vm8, %v2126_v4 }
 0x83e   :  { %v2002_v5 = vpop.f32.mrf.mxu3  ;;  %v2057_v6 = vpop.f32.mrf.mxu2 }
 0x83f   :  { %v2086_v15 = vpack.c.bf16 %v2057_v6, %v2057_v6 }
 0x841   :  { %v2021_v9 = vpop.f32.mrf.mxu0  ;;  %v2038_v11 = vpop.f32.mrf.mxu1  ;;  %v2182_v21 = vunpack.c.l.b16 %v2086_v15 }
 0x842   :  { %v2085_v12 = vpack.c.bf16 %v2038_v11, %v2038_v11  ;;  %v5860_v11 = vld [vmem:[%s7184_s16] sm:$0x7] }
 0x844   :  { %v2154_v14 = vunpack.c.l.b16 %v2085_v12  ;;  %v2229_v12 = vperm.slane %v5860_v11, 2 }
 0x846   :  { %v2155_v16 = vpack.c.b16 %v2154_v14, %v2153_v13  ;;  %v2059_v17 = vpop.f32.mrf.mxu2 }
 0x847   :  { %v2076_v18 = vpop.f32.mrf.mxu3 }
 0x848   :  { %v2087_v19 = vpack.c.bf16 %v2076_v18, %v2076_v18  ;;  %5073 = vmatmul.msk.bf16.vlgmr.msrb.gmra.mxu2 %vm606_vm8, %v2155_v16 }
 0x849   :  { %v2040_v20 = vpop.f32.mrf.mxu1 }
 0x84a   :  { %v2183_v22 = vunpack.c.l.b16 %v2087_v19  ;;  %v5861_v19 = vld [vmem:[%s7185_s17] sm:$0x7] }
 0x84b   :  { %v2256_v20 = vperm.slane %v5861_v19, 2 }
 0x84c   :  { %v2184_v23 = vpack.c.b16 %v2183_v22, %v2182_v21 }
 0x84e   :  { %5075 = vmatmul.msk.bf16.vlgmr.msrb.gmra.mxu3 %vm606_vm8, %v2184_v23 }
 0x84f   :  { %v2078_v24 = vpop.f32.mrf.mxu3 }
 0x8b5   :  { %v2110_v25 = vpop.f32.mrf.mxu0 }
 0x8b6   :  { %v2118_v29 = vadd.f32 %v5667_v26, %v2110_v25 }
 0x8ba   :  { %v2142_v27 = vpop.f32.mrf.mxu1 }
 0x8bb   :  { %v2147_v30 = vadd.f32 %v2142_v27, %v2118_v29  ;;  %v5583_v27 = vld [vmem:[%s7182_s14 + $0x18] sm:$0xff]  ;;  %v5581_v29 = vld [vmem:[%s7182_s14 + $0x8] sm:$0xff] }
 0x8bc   :  { %2340 = vmatpush.bf16.msra.mxu1 %v5583_v27 }
 0x8bd   :  { %v2112_v32 = vpop.f32.mrf.mxu0 }
 0x8be   :  { %v2119_v36 = vadd.f32 %v5667_v26, %v2112_v32  ;;  %v5668_v32 = vld [vmem:[%s7181_s13] ss:$0 sm:$0xff] }
 0x8c2   :  { %v2144_v35 = vpop.f32.mrf.mxu1 }
 0x8c3   :  { %v2148_v39 = vadd.f32 %v2144_v35, %v2119_v36 }
 0x8cb   :  { %v2171_v28 = vpop.f32.mrf.mxu2 }
 0x8cc   :  { %v2176_v31 = vadd.f32 %v2171_v28, %v2147_v30  ;;  %v5582_v28 = vld [vmem:[%s7182_s14 + $0x10] sm:$0xff]  ;;  %v5580_v30 = vld [vmem:[%s7182_s14] sm:$0xff] }
 0x8cd   :  { %2341 = vmatpush.bf16.msra.mxu1 %v5582_v28 }
 0x8d1   :  { %v2200_v33 = vpop.f32.mrf.mxu3  ;;  %2342 = vmatpush.bf16.msra.mxu1 %v5581_v29 }
 0x8d2   :  { %v2205_v34 = vadd.f32 %v2200_v33, %v2176_v31 }
 0x8d3   :  { %v2173_v38 = vpop.f32.mrf.mxu2 }
 0x8d4   :  { %v6534_v37 = vadd.f32 %v2205_v34, %v6271_v46  ;;  %v2177_v41 = vadd.f32 %v2173_v38, %v2148_v39 }
 0x8d5   :  { %2343 = vmatpush.bf16.msra.mxu1 %v5580_v30  ;;  %v6666_v30 = vld [vmem:[%s7185_s17 + $0x4] sm:$0x7] }
 0x8d6   :  { %v2209_v40 = vsel %vm90_vm0, %v6534_v37, 0.0 }
 0x8d7   :  { %2210 = vadd.xlane.f32.xlu1 %v2209_v40  ;;  %v5669_v40 = vld [vmem:[%s7183_s15] ss:$0 sm:$0xff] }
 0x8d9   :  { %v2202_v42 = vpop.f32.mrf.mxu3 }
 0x8da   :  { %v2206_v43 = vadd.f32 %v2202_v42, %v2177_v41 }
 0x8dc   :  { %v6539_v45 = vadd.f32 %v2206_v43, %v6278_v56 }
 0x8de   :  { %v2212_v44 = vsel %vm90_vm0, %v6539_v45, 0.0 }
 0x8df   :  { %2213 = vadd.xlane.f32.xlu2 %v2212_v44 }
 0x94a   :  { %v2211_v47 = vpop.xlane.xlu1 %2210 }
 0x94b   :  { %v2215_v46 = vmul.f32 %v2211_v47, %v6023_v10 }
 0x94d   :  { %v2217_v48 = vsub.f32 %v6534_v37, %v2215_v46 }
 0x94f   :  { %v2219_v50 = vmul.f32 %v2217_v48, %v2217_v48  ;;  %v2230_v16 = vmul.f32 %v2229_v12, %v2217_v48 }
 0x951   :  { %v2221_v51 = vsel %vm90_vm0, %v2219_v50, 0.0 }
 0x952   :  { %2222 = vadd.xlane.f32.xlu0 %v2221_v51  ;;  %v2214_v52 = vpop.xlane.xlu2 %2213 }
 0x953   :  { %v2216_v53 = vmul.f32 %v2214_v52, %v6023_v10 }
 0x955   :  { %v2218_v54 = vsub.f32 %v6539_v45, %v2216_v53 }
 0x957   :  { %v2220_v56 = vmul.f32 %v2218_v54, %v2218_v54  ;;  %v2231_v18 = vmul.f32 %v2229_v12, %v2218_v54  ;;  %v5592_v12 = vld [vmem:[%s7200_s26 + $0x110] sm:$0xff] }
 0x959   :  { %v2224_v57 = vsel %vm90_vm0, %v2220_v56, 0.0 }
 0x95a   :  { %2225 = vadd.xlane.f32.xlu1 %v2224_v57 }
 0x9c5   :  { %v2223_v49 = vpop.xlane.xlu0 %2222 }
 0x9c6   :  { %v2227_v55 = vmul.f32 %v2223_v49, %v6023_v10 }
 0x9c8   :  { %v2232_v60 = vadd.f32 1e-06, %v2227_v55  ;;  %v5587_v55 = vld [vmem:[%s7200_s26 + $0x108] sm:$0xff] }
 0x9c9   :  { %2480 = vmatpush.bf16.msra.mxu3 %v5587_v55  ;;  %v5672_v55 = vld [vmem:[%s7173_s5 + $0xc] ss:$0 sm:$0xff] }
 0x9ca   :  { %5774 = vrsqrt.f32 %v2232_v60  ;;  %vm2240_vm2 = vweird.f32 %v2232_v60 }
 0x9cd   :  { %v2226_v61 = vpop.xlane.xlu1 %2225 }
 0x9ce   :  { %v2228_v62 = vmul.f32 %v2226_v61, %v6023_v10  ;;  %v5591_v61 = vld [vmem:[%s7200_s26 + $0xd8] sm:$0xff] }
 0x9cf   :  { %2552 = vmatpush.bf16.msrb.mxu1 %v5591_v61 }
 0x9d0   :  { %v5775_v63 = vpop.eup %5774  ;;  %v2233_v0 = vadd.f32 1e-06, %v2228_v62 }
 0x9d1   :  { %v2235_v1 = vmul.f32 %v5775_v63, %v2232_v60  ;;  %vm2241_vm1 = vweird.f32 %v5775_v63  ;;  %v5589_v60 = vld [vmem:[%s7200_s26 + $0x148] sm:$0xff] }
 0x9d2   :  { %5776 = vrsqrt.f32 %v2233_v0  ;;  %vm2242_vm3 = vmor %vm2240_vm2, %vm2241_vm1  ;;  %vm2250_vm5 = vweird.f32 %v2233_v0  ;;  %2516 = vmatpush.bf16.msrb.mxu0 %v5589_v60 }
 0x9d3   :  { %v2236_v2 = vmul.f32 %v5775_v63, %v2235_v1  ;;  %v5588_v1 = vld [vmem:[%s7200_s26 + $0x140] sm:$0xff] }
 0x9d5   :  { %v2237_v3 = vmul.f32 0.5, %v2236_v2 }
 0x9d6   :  { %2517 = vmatpush.bf16.msrb.mxu0 %v5588_v1 }
 0x9d7   :  { %v2238_v4 = vsub.f32 1.5, %v2237_v3  ;;  %v5590_v3 = vld [vmem:[%s7200_s26 + $0xd0] sm:$0xff] }
 0x9d8   :  { %v5777_v5 = vpop.eup %5776  ;;  %2553 = vmatpush.bf16.msrb.mxu1 %v5590_v3 }
 0x9d9   :  { %v2245_v6 = vmul.f32 %v5777_v5, %v2233_v0  ;;  %v2239_v7 = vmul.f32 %v5775_v63, %v2238_v4  ;;  %vm2251_vm4 = vweird.f32 %v5777_v5  ;;  %v5586_v0 = vld [vmem:[%s7200_s26 + $0x100] sm:$0xff] }
 0x9da   :  { %vm2252_vm6 = vmor %vm2250_vm5, %vm2251_vm4  ;;  %2481 = vmatpush.bf16.msra.mxu3 %v5586_v0 }
 0x9db   :  { %v2246_v9 = vmul.f32 %v5777_v5, %v2245_v6  ;;  %v2243_v14 = vsel %vm2242_vm3, %v5775_v63, %v2239_v7  ;;  %v5584_v63 = vld [vmem:[%s7200_s26 + $0xc0] sm:$0xff]  ;;  %v5595_v6 = vld [vmem:[%s7200_s26 + $0x158] sm:$0xff]  ;;  %v5597_v7 = vld [vmem:[%s7200_s26 + $0xe8] sm:$0xff] }
 0x9dc   :  { %v2254_v21 = vmul.f32 %v2243_v14, %v2230_v16  ;;  %2445 = vmatpush.bf16.msra.mxu2 %v5584_v63  ;;  %v5598_v16 = vld [vmem:[%s7200_s26 + $0x120] sm:$0xff]  ;;  %v5670_v63 = vld [vmem:[%s7173_s5 + $0x14] ss:$0 sm:$0xff] }
 0x9dd   :  { %v2247_v13 = vmul.f32 0.5, %v2246_v9  ;;  %v5599_v9 = vld [vmem:[%s7200_s26 + $0x128] sm:$0xff] }
 0x9de   :  { %v2257_v24 = vadd.f32 %v2256_v20, %v2254_v21  ;;  %2624 = vmatpush.bf16.msrb.mxu3 %v5595_v6 }
 0x9df   :  { %v2248_v15 = vsub.f32 1.5, %v2247_v13  ;;  %v5594_v13 = vld [vmem:[%s7200_s26 + $0x150] sm:$0xff] }
 0x9e1   :  { %v2249_v17 = vmul.f32 %v5777_v5, %v2248_v15  ;;  %v5596_v15 = vld [vmem:[%s7200_s26 + $0xe0] sm:$0xff] }
 0x9e2   :  { %2625 = vmatpush.bf16.msrb.mxu3 %v5594_v13 }
 0x9e3   :  { %v2253_v22 = vsel %vm2252_vm6, %v5777_v5, %v2249_v17  ;;  %v5593_v5 = vld [vmem:[%s7200_s26 + $0x118] sm:$0xff] }
 0x9e4   :  { %v2255_v23 = vmul.f32 %v2253_v22, %v2231_v18  ;;  %2588 = vmatpush.bf16.msrb.mxu2 %v5593_v5 }
 0x9e6   :  { %v2258_v25 = vadd.f32 %v2256_v20, %v2255_v23 }
 0x9e8   :  { %v2259_v26 = vpack.c.bf16 %v2258_v25, %v2257_v24  ;;  %2589 = vmatpush.bf16.msrb.mxu2 %v5592_v12  ;;  %v6660_v24 = vld [vmem:[%s7184_s16 + $0x4] sm:$0x7] }
 0x9e9   :  { %v2382_v28 = vperm.slane %v6660_v24, 0 }
 0x9ea   :  { %5084 = vmatmul.msk.bf16.vlgmr.msra.gmra.mxu0 %vm90_vm0, %v2259_v26 }
 0x9eb   :  { %2660 = vmatpush.bf16.msra.mxu0 %v5597_v7 }
 0x9ef   :  { %2661 = vmatpush.bf16.msra.mxu0 %v5596_v15 }
 0xa67   :  { %v2292_v31 = vpop.f32.mrf.mxu0 }
 0xa68   :  { %v2293_v33 = vadd.f32 %v5668_v32, %v2292_v31 }
 0xa6a   :  { %v2297_v36 = vmax.f32 %v2293_v33, 0.0 }
 0xa6f   :  { %v2294_v34 = vpop.f32.mrf.mxu0 }
 0xa70   :  { %v2295_v35 = vadd.f32 %v5668_v32, %v2294_v34 }
 0xa72   :  { %v2298_v38 = vmax.f32 %v2295_v35, 0.0 }
 0xa74   :  { %v2299_v39 = vpack.c.bf16 %v2298_v38, %v2297_v36  ;;  %v2409_v36 = vperm.slane %v6666_v30, 0 }
 0xa76   :  { %5101 = vmatmul.msk.bf16.vlgmr.msra.gmra.mxu1 %vm2332_vm7, %v2299_v39 }
 0xa77   :  { %2696 = vmatpush.bf16.msra.mxu1 %v5599_v9 }
 0xa7b   :  { %2697 = vmatpush.bf16.msra.mxu1 %v5598_v16  ;;  %v5676_v16 = vld [vmem:[%s7173_s5 + $0x11] ss:$0 sm:$0xff] }
 0xaf3   :  { %v2345_v41 = vpop.f32.mrf.mxu1 }
 0xaf4   :  { %v2350_v42 = vadd.f32 %v2345_v41, %v6534_v37 }
 0xaf6   :  { %v6584_v43 = vadd.f32 %v5669_v40, %v2350_v42 }
 0xaf8   :  { %v2362_v44 = vsel %vm90_vm0, %v6584_v43, 0.0 }
 0xaf9   :  { %2363 = vadd.xlane.f32.xlu2 %v2362_v44 }
 0xafb   :  { %v2347_v47 = vpop.f32.mrf.mxu1 }
 0xafc   :  { %v2351_v46 = vadd.f32 %v2347_v47, %v6539_v45  ;;  %v5601_v47 = vld [vmem:[%s7200_s26 + $0x168] sm:$0xff] }
 0xafe   :  { %v6589_v48 = vadd.f32 %v5669_v40, %v2351_v46  ;;  %v5603_v46 = vld [vmem:[%s7200_s26 + $0xf8] sm:$0xff] }
 0xb00   :  { %v2365_v50 = vsel %vm90_vm0, %v6589_v48, 0.0 }
 0xb01   :  { %2366 = vadd.xlane.f32.xlu0 %v2365_v50  ;;  %v5605_v50 = vld [vmem:[%s7200_s26 + $0x138] sm:$0xff] }
 0xb6c   :  { %v2364_v51 = vpop.xlane.xlu2 %2363 }
 0xb6d   :  { %v2368_v52 = vmul.f32 %v2364_v51, %v6023_v10  ;;  %v5607_v51 = vld [vmem:[%s7200_s26 + $0x178] sm:$0xff] }
 0xb6f   :  { %v6595_v37 = vsub.f32 %v6584_v43, %v2368_v52  ;;  %v5600_v52 = vld [vmem:[%s7200_s26 + $0x160] sm:$0xff] }
 0xb71   :  { %v2372_v53 = vmul.f32 %v6595_v37, %v6595_v37  ;;  %v2383_v33 = vmul.f32 %v2382_v28, %v6595_v37  ;;  %v5602_v37 = vld [vmem:[%s7200_s26 + $0xf0] sm:$0xff] }
 0xb73   :  { %v2374_v54 = vsel %vm90_vm0, %v2372_v53, 0.0  ;;  %v5604_v53 = vld [vmem:[%s7200_s26 + $0x130] sm:$0xff] }
 0xb74   :  { %2375 = vadd.xlane.f32.xlu1 %v2374_v54  ;;  %v2367_v56 = vpop.xlane.xlu0 %2366  ;;  %v5606_v54 = vld [vmem:[%s7200_s26 + $0x170] sm:$0xff] }
 0xb75   :  { %v2369_v45 = vmul.f32 %v2367_v56, %v6023_v10 }
 0xb77   :  { %v6602_v57 = vsub.f32 %v6589_v48, %v2369_v45 }
 0xb79   :  { %v2373_v58 = vmul.f32 %v6602_v57, %v6602_v57  ;;  %v2384_v35 = vmul.f32 %v2382_v28, %v6602_v57  ;;  %v5673_v57 = vld [vmem:[%s7173_s5 + $0x10] ss:$0 sm:$0xff]  ;;  %v5674_v28 = vld [vmem:[%s7173_s5 + $0xe] ss:$0 sm:$0xff] }
 0xb7b   :  { %v2377_v49 = vsel %vm90_vm0, %v2373_v58, 0.0 }
 0xb7c   :  { %2378 = vadd.xlane.f32.xlu2 %v2377_v49 }
 0xbe7   :  { %v2376_v62 = vpop.xlane.xlu1 %2375 }
 0xbe8   :  { %v2380_v2 = vmul.f32 %v2376_v62, %v6023_v10 }
 0xbea   :  { %v2385_v4 = vadd.f32 1e-06, %v2380_v2 }
 0xbec   :  { %5778 = vrsqrt.f32 %v2385_v4  ;;  %vm2393_vm11 = vweird.f32 %v2385_v4 }
 0xbef   :  { %v2379_v11 = vpop.xlane.xlu2 %2378 }
 0xbf0   :  { %v2381_v14 = vmul.f32 %v2379_v11, %v6023_v10 }
 0xbf2   :  { %v5779_v17 = vpop.eup %5778  ;;  %v2386_v18 = vadd.f32 1e-06, %v2381_v14 }
 0xbf3   :  { %v2388_v19 = vmul.f32 %v5779_v17, %v2385_v4  ;;  %vm2394_vm10 = vweird.f32 %v5779_v17  ;;  %v5675_v4 = vld [vmem:[%s7173_s5 + $0x12] ss:$0 sm:$0xff] }
 0xbf4   :  { %5780 = vrsqrt.f32 %v2386_v18  ;;  %vm2395_vm12 = vmor %vm2393_vm11, %vm2394_vm10  ;;  %vm2403_vm14 = vweird.f32 %v2386_v18 }
 0xbf5   :  { %v2389_v20 = vmul.f32 %v5779_v17, %v2388_v19 }
 0xbf7   :  { %v2390_v21 = vmul.f32 0.5, %v2389_v20 }
 0xbf9   :  { %v2391_v22 = vsub.f32 1.5, %v2390_v21 }
 0xbfa   :  { %v5781_v23 = vpop.eup %5780 }
 0xbfb   :  { %v2398_v25 = vmul.f32 %v5781_v23, %v2386_v18  ;;  %v2392_v26 = vmul.f32 %v5779_v17, %v2391_v22  ;;  %vm2404_vm13 = vweird.f32 %v5781_v23 }
 0xbfc   :  { %vm2405_vm15 = vmor %vm2403_vm14, %vm2404_vm13 }
 0xbfd   :  { %v2399_v27 = vmul.f32 %v5781_v23, %v2398_v25  ;;  %v2396_v31 = vsel %vm2395_vm12, %v5779_v17, %v2392_v26  ;;  %v5671_v26 = vld [vmem:[%s7173_s5 + $0xd] ss:$0 sm:$0xff] }
 0xbfe   :  { %v2407_v38 = vmul.f32 %v2396_v31, %v2383_v33 }
 0xbff   :  { %v2400_v29 = vmul.f32 0.5, %v2399_v27 }
 0xc00   :  { %v2410_v41 = vadd.f32 %v2409_v36, %v2407_v38 }
 0xc01   :  { %v2401_v32 = vsub.f32 1.5, %v2400_v29 }
 0xc03   :  { %v2402_v34 = vmul.f32 %v5781_v23, %v2401_v32 }
 0xc05   :  { %v2406_v39 = vsel %vm2405_vm15, %v5781_v23, %v2402_v34 }
 0xc06   :  { %v2408_v40 = vmul.f32 %v2406_v39, %v2384_v35 }
 0xc08   :  { %v2411_v42 = vadd.f32 %v2409_v36, %v2408_v40  ;;  %v5677_v36 = vld [vmem:[%s7173_s5 + $0x15] ss:$0 sm:$0xff] }
 0xc0a   :  { %v2412_v44 = vpack.c.bf16 %v2411_v42, %v2410_v41 }
 0xc0c   :  { %5117 = vmatmul.msk.bf16.vlgmr.msra.gmra.mxu2 %vm90_vm0, %v2412_v44  ;;  %5131 = vmatmul.msk.bf16.vlgmr.msra.gmra.mxu3 %vm90_vm0, %v2412_v44 }
 0xc0d   :  { %5145 = vmatmul.msk.bf16.vlgmr.msrb.gmra.mxu0 %vm90_vm0, %v2412_v44  ;;  %5159 = vmatmul.msk.bf16.vlgmr.msrb.gmra.mxu1 %vm90_vm0, %v2412_v44 }
 0xc0e   :  { %2732 = vmatpush.bf16.msra.mxu2 %v5601_v47  ;;  %2768 = vmatpush.bf16.msra.mxu3 %v5603_v46  ;;  %v5678_v47 = vld [vmem:[%s7173_s5 + $0x13] ss:$0 sm:$0xff] }
 0xc0f   :  { %2804 = vmatpush.bf16.msrb.mxu0 %v5605_v50  ;;  %2840 = vmatpush.bf16.msrb.mxu1 %v5607_v51 }
 0xc12   :  { %2733 = vmatpush.bf16.msra.mxu2 %v5600_v52  ;;  %2769 = vmatpush.bf16.msra.mxu3 %v5602_v37 }
 0xc13   :  { %2805 = vmatpush.bf16.msrb.mxu0 %v5604_v53  ;;  %2841 = vmatpush.bf16.msrb.mxu1 %v5606_v54 }
 0xc1c   :  { %5173 = vmatmul.msk.bf16.vlgmr.msrb.gmra.mxu2 %vm90_vm0, %v2412_v44  ;;  %5187 = vmatmul.msk.bf16.vlgmr.msrb.gmra.mxu3 %vm90_vm0, %v2412_v44 }
 0xc1d   :  { %5201 = vmatmul.msk.bf16.vlgmr.msra.gmra.mxu0 %vm90_vm0, %v2412_v44  ;;  %5215 = vmatmul.msk.bf16.vlgmr.msra.gmra.mxu1 %vm90_vm0, %v2412_v44 }
 0xc2c   :  { %5229 = vmatmul.msk.bf16.vlgmr.msra.gmra.mxu2 %vm90_vm0, %v2412_v44  ;;  %5243 = vmatmul.msk.bf16.vlgmr.msra.gmra.mxu3 %vm90_vm0, %v2412_v44 }
 0xc2d   :  { %5257 = vmatmul.msk.bf16.vlgmr.msrb.gmra.mxu0 %vm90_vm0, %v2412_v44  ;;  %5271 = vmatmul.msk.bf16.vlgmr.msrb.gmra.mxu1 %vm90_vm0, %v2412_v44 }
 0xc8a   :  { %v2519_v56 = vpop.f32.mrf.mxu0  ;;  %v2555_v45 = vpop.f32.mrf.mxu1 }
 0xc8b   :  { %v2520_v5 = vadd.f32 %v5670_v63, %v2519_v56  ;;  %v2556_v39 = vadd.f32 %v5671_v26, %v2555_v45 }
 0xc8d   :  { %v2864_v14 = vpack.c.bf16 %v2520_v5, %v2520_v5  ;;  %v2850_v52 = vpack.c.bf16 %v2556_v39, %v2556_v39 }
 0xc8f   :  { %v2447_v58 = vpop.f32.mrf.mxu2  ;;  %v2483_v49 = vpop.f32.mrf.mxu3  ;;  %v3140_v22 = vsel %vm874_vm9, %v2864_v14, 0 }
 0xc90   :  { %v2484_v59 = vadd.f32 %v5673_v57, %v2483_v49  ;;  %v2448_v1 = vadd.f32 %v5672_v55, %v2447_v58  ;;  %v5680_v58 = vld [vmem:[%s7173_s5 + $0x16] ss:$0 sm:$0xff] }
 0xc92   :  { %v2856_v60 = vpack.c.bf16 %v2484_v59, %v2484_v59  ;;  %v2521_v61 = vpop.f32.mrf.mxu0  ;;  %v6713_v62 = vpop.f32.mrf.mxu1  ;;  %v2848_v7 = vpack.c.bf16 %v2448_v1, %v2448_v1 }
 0xc93   :  { %v2522_v23 = vadd.f32 %v5670_v63, %v2521_v61  ;;  %v2558_v59 = vadd.f32 %v5671_v26, %v6713_v62  ;;  %v5681_v62 = vld [vmem:[%s7173_s5 + $0xf] ss:$0 sm:$0xff] }
 0xc94   :  { %v2876_v0 = vsel %vm606_vm8, %v2856_v60, 0 }
 0xc95   :  { %2885 = vmatpush.bf16.xpose.msrb.mxu2 %v2876_v0  ;;  %v2865_v34 = vpack.c.bf16 %v2522_v23, %v2522_v23  ;;  %v2851_v5 = vpack.c.bf16 %v2558_v59, %v2558_v59 }
 0xc97   :  { %v2449_v2 = vpop.f32.mrf.mxu2  ;;  %v2485_v3 = vpop.f32.mrf.mxu3  ;;  %v3159_v51 = vsel %vm874_vm9, %v2865_v34, 0 }
 0xc98   :  { %v2486_v6 = vadd.f32 %v5673_v57, %v2485_v3  ;;  %v2450_v18 = vadd.f32 %v5672_v55, %v2449_v2  ;;  %v5679_v2 = vld [vmem:[%s7173_s5 + $0x17] ss:$0 sm:$0xff]  ;;  %s5908_s5 = smov 128  }
 0xc9a   :  { %v2857_v9 = vpack.c.bf16 %v2486_v6, %v2486_v6  ;;  %v2663_v11 = vpop.f32.mrf.mxu0  ;;  %v2699_v12 = vpop.f32.mrf.mxu1  ;;  %v2849_v27 = vpack.c.bf16 %v2450_v18, %v2450_v18 }
 0xc9b   :  { %v2700_v13 = vadd.f32 %v5675_v4, %v2699_v12  ;;  %v2664_v40 = vadd.f32 %v5674_v28, %v2663_v11 }
 0xc9c   :  { %5272 = vmatmul.msk.bf16.vlgmr.msrb.gmra.mxu2 %vm606_vm8, %v2848_v7  ;;  %v2895_v15 = vsel %vm606_vm8, %v2857_v9, 0 }
 0xc9d   :  { %v2860_v17 = vpack.c.bf16 %v2700_v13, %v2700_v13  ;;  %2904 = vmatpush.bf16.xpose.msrb.mxu3 %v2895_v15  ;;  %v2852_v37 = vpack.c.bf16 %v2664_v40, %v2664_v40 }
 0xc9f   :  { %v2952_v19 = vsel %vm606_vm8, %v2860_v17, 0  ;;  %v2591_v20 = vpop.f32.mrf.mxu2  ;;  %v2627_v21 = vpop.f32.mrf.mxu3 }
 0xca0   :  { %v2592_v25 = vadd.f32 %v5676_v16, %v2591_v20  ;;  %2961 = vmatpush.bf16.xpose.msra.mxu2 %v2952_v19  ;;  %v2628_v46 = vadd.f32 %v5677_v36, %v2627_v21 }
 0xca2   :  { %v2858_v29 = vpack.c.bf16 %v2592_v25, %v2592_v25  ;;  %v2665_v31 = vpop.f32.mrf.mxu0  ;;  %v2701_v32 = vpop.f32.mrf.mxu1  ;;  %v2866_v45 = vpack.c.bf16 %v2628_v46, %v2628_v46 }
 0xca3   :  { %v2702_v33 = vadd.f32 %v5675_v4, %v2701_v32  ;;  %v2666_v55 = vadd.f32 %v5674_v28, %v2665_v31 }
 0xca4   :  { %v2914_v35 = vsel %vm606_vm8, %v2858_v29, 0  ;;  %5273 = vmatmul.msk.bf16.vlgmr.msrb.gmra.mxu3 %vm606_vm8, %v2849_v27  ;;  %v3178_v0 = vsel %vm874_vm9, %v2866_v45, 0 }
 0xca5   :  { %v2861_v38 = vpack.c.bf16 %v2702_v33, %v2702_v33  ;;  %2923 = vmatpush.bf16.xpose.msra.mxu0 %v2914_v35  ;;  %v2853_v6 = vpack.c.bf16 %v2666_v55, %v2666_v55  ;;  %v5865_v55 = vld [vmem:[%s7201_s25 + $0x20] sm:$0xff] }
 0xca7   :  { %v2593_v41 = vpop.f32.mrf.mxu2  ;;  %v2629_v42 = vpop.f32.mrf.mxu3  ;;  %v2971_v44 = vsel %vm606_vm8, %v2861_v38, 0  ;;  %v5862_v38 = vld [vmem:[%s7201_s25] sm:$0xff] }
 0xca8   :  { %3149 = vmatpush.bf16.msrb.mxu2 %v3140_v22  ;;  %v2594_v50 = vadd.f32 %v5676_v16, %v2593_v41  ;;  %2980 = vmatpush.bf16.xpose.msra.mxu3 %v2971_v44  ;;  %v2630_v1 = vadd.f32 %v5677_v36, %v2629_v42 }
 0xcaa   :  { %v2859_v53 = vpack.c.bf16 %v2594_v50, %v2594_v50  ;;  %v2807_v54 = vpop.f32.mrf.mxu0  ;;  %v2843_v61 = vpop.f32.mrf.mxu1  ;;  %v2867_v12 = vpack.c.bf16 %v2630_v1, %v2630_v1  ;;  %v5863_v50 = vld [vmem:[%s7201_s25 + $0x8] sm:$0xff] }
 0xcab   :  { %v2808_v56 = vadd.f32 %v5678_v47, %v2807_v54  ;;  %v2844_v13 = vadd.f32 %v5679_v2, %v2843_v61 }
 0xcac   :  { %5274 = vmatmul.msk.bf16.vlgmr.msra.gmra.mxu0 %vm606_vm8, %v2850_v52  ;;  %5276 = vmatmul.msk.bf16.vlgmr.msra.gmra.mxu2 %vm606_vm8, %v2852_v37  ;;  %v2933_v57 = vsel %vm606_vm8, %v2859_v53, 0  ;;  %v3197_v21 = vsel %vm874_vm9, %v2867_v12, 0  ;;  %v5864_v37 = vld [vmem:[%s7201_s25 + $0x10] sm:$0xff] }
 0xcad   :  { %v2862_v49 = vpack.c.bf16 %v2808_v56, %v2808_v56  ;;  %2942 = vmatpush.bf16.xpose.msra.mxu1 %v2933_v57  ;;  %v2870_v19 = vpack.c.bf16 %v2844_v13, %v2844_v13  ;;  %v5868_v12 = vld [vmem:[%s7201_s25 + $0x30] sm:$0xff] }
 0xcaf   :  { %v2990_v60 = vsel %vm606_vm8, %v2862_v49, 0  ;;  %v2735_v63 = vpop.f32.mrf.mxu2  ;;  %v2771_v4 = vpop.f32.mrf.mxu3  ;;  %v3254_v27 = vsel %vm874_vm9, %v2870_v19, 0  ;;  %v5869_v19 = vld [vmem:[%s7201_s25 + $0x38] sm:$0xff] }
 0xcb0   :  { %3168 = vmatpush.bf16.msrb.mxu3 %v3159_v51  ;;  %v2736_v3 = vadd.f32 %v5680_v58, %v2735_v63  ;;  %2999 = vmatpush.bf16.xpose.msrb.mxu0 %v2990_v60  ;;  %v2772_v16 = vadd.f32 %v5681_v62, %v2771_v4  ;;  %v5866_v63 = vld [vmem:[%s7201_s25 + $0x18] sm:$0xff] }
 0xcb2   :  { %v2868_v7 = vpack.c.bf16 %v2736_v3, %v2736_v3  ;;  %v2809_v9 = vpop.f32.mrf.mxu0  ;;  %v2845_v22 = vpop.f32.mrf.mxu1  ;;  %v2854_v23 = vpack.c.bf16 %v2772_v16, %v2772_v16 }
 0xcb3   :  { %v2810_v11 = vadd.f32 %v5678_v47, %v2809_v9  ;;  %v2846_v28 = vadd.f32 %v5679_v2, %v2845_v22 }
 0xcb4   :  { %v3216_v14 = vsel %vm874_vm9, %v2868_v7, 0  ;;  %5275 = vmatmul.msk.bf16.vlgmr.msra.gmra.mxu1 %vm606_vm8, %v2851_v5  ;;  %5277 = vmatmul.msk.bf16.vlgmr.msra.gmra.mxu3 %vm606_vm8, %v2853_v6 }
 0xcb5   :  { %v2863_v15 = vpack.c.bf16 %v2810_v11, %v2810_v11  ;;  %3225 = vmatpush.bf16.msra.mxu2 %v3216_v14  ;;  %v2871_v32 = vpack.c.bf16 %v2846_v28, %v2846_v28 }
 0xcb7   :  { %v2737_v17 = vpop.f32.mrf.mxu2  ;;  %v3009_v18 = vsel %vm606_vm8, %v2863_v15, 0  ;;  %v2773_v26 = vpop.f32.mrf.mxu3  ;;  %v3273_v34 = vsel %vm874_vm9, %v2871_v32, 0 }
 0xcb8   :  { %3187 = vmatpush.bf16.msra.mxu0 %v3178_v0  ;;  %v2738_v20 = vadd.f32 %v5680_v58, %v2737_v17  ;;  %3018 = vmatpush.bf16.xpose.msrb.mxu1 %v3009_v18  ;;  %v2774_v31 = vadd.f32 %v5681_v62, %v2773_v26  ;;  %v5867_v62 = vld [vmem:[%s7201_s25 + $0x28] sm:$0xff] }
 0xcba   :  { %v2869_v25 = vpack.c.bf16 %v2738_v20, %v2738_v20  ;;  %v2855_v33 = vpack.c.bf16 %v2774_v31, %v2774_v31 }
 0xcbc   :  { %5278 = vmatmul.msk.bf16.vlgmr.msrb.gmra.mxu0 %vm606_vm8, %v2854_v23  ;;  %v3235_v29 = vsel %vm874_vm9, %v2869_v25, 0 }
 0xcbd   :  { %3263 = vmatpush.bf16.msrb.mxu0 %v3254_v27  ;;  %3244 = vmatpush.bf16.msra.mxu3 %v3235_v29 }
 0xcc0   :  { %3206 = vmatpush.bf16.msra.mxu1 %v3197_v21 }
 0xcc4   :  { %5279 = vmatmul.msk.bf16.vlgmr.msrb.gmra.mxu1 %vm606_vm8, %v2855_v33 }
 0xcc5   :  { %3282 = vmatpush.bf16.msrb.mxu1 %v3273_v34 }
 0xd1f   :  { %v2887_v35 = vpop.f32.mrf.mxu2 }
 0xd20   :  { %v3024_v36 = vmul.f32 0.35355338, %v2887_v35 }
 0xd22   :  { %v3032_v39 = vadd.f32 %v5862_v38, %v3024_v36 }
 0xd24   :  { %v3040_v40 = vsel %vm606_vm8, %v3032_v39, -inf }
 0xd25   :  { %3041 = vmax.xlane.f32.xlu0 %v3040_v40 }
 0xd27   :  { %v2889_v41 = vpop.f32.mrf.mxu2  ;;  %v2906_v42 = vpop.f32.mrf.mxu3 }
 0xd28   :  { %v3025_v44 = vmul.f32 0.35355338, %v2906_v42 }
 0xd29   :  { %v2925_v47 = vpop.f32.mrf.mxu0 }
 0xd2a   :  { %v3026_v46 = vmul.f32 0.35355338, %v2925_v47  ;;  %v3033_v51 = vadd.f32 %v5863_v50, %v3025_v44 }
 0xd2c   :  { %v3043_v52 = vsel %vm606_vm8, %v3033_v51, -inf  ;;  %v3034_v53 = vadd.f32 %v5864_v37, %v3026_v46 }
 0xd2d   :  { %3044 = vmax.xlane.f32.xlu1 %v3043_v52 }
 0xd2e   :  { %v3046_v54 = vsel %vm606_vm8, %v3034_v53, -inf }
 0xd2f   :  { %3047 = vmax.xlane.f32.xlu2 %v3046_v54  ;;  %v2908_v56 = vpop.f32.mrf.mxu3  ;;  %v2963_v45 = vpop.f32.mrf.mxu2 }
 0xd30   :  { %v3028_v57 = vmul.f32 0.35355338, %v2963_v45 }
 0xd31   :  { %v2927_v58 = vpop.f32.mrf.mxu0  ;;  %v2944_v49 = vpop.f32.mrf.mxu1 }
 0xd32   :  { %v3027_v59 = vmul.f32 0.35355338, %v2944_v49  ;;  %v3036_v60 = vadd.f32 %v5865_v55, %v3028_v57 }
 0xd34   :  { %v3052_v61 = vsel %vm606_vm8, %v3036_v60, -inf  ;;  %v3035_v0 = vadd.f32 %v5866_v63, %v3027_v59 }
 0xd35   :  { %3053 = vmax.xlane.f32.xlu1 %v3052_v61 }
 0xd36   :  { %v3049_v1 = vsel %vm606_vm8, %v3035_v0, -inf }
 0xd37   :  { %v2982_v2 = vpop.f32.mrf.mxu3  ;;  %3050 = vmax.xlane.f32.xlu0 %v3049_v1  ;;  %v2965_v3 = vpop.f32.mrf.mxu2 }
 0xd38   :  { %v3029_v4 = vmul.f32 0.35355338, %v2982_v2 }
 0xd39   :  { %v2946_v5 = vpop.f32.mrf.mxu1  ;;  %v3001_v6 = vpop.f32.mrf.mxu0 }
 0xd3a   :  { %v3030_v7 = vmul.f32 0.35355338, %v3001_v6  ;;  %v3037_v9 = vadd.f32 %v5867_v62, %v3029_v4 }
 0xd3c   :  { %v3055_v11 = vsel %vm606_vm8, %v3037_v9, -inf  ;;  %v3038_v13 = vadd.f32 %v5868_v12, %v3030_v7 }
 0xd3d   :  { %3056 = vmax.xlane.f32.xlu2 %v3055_v11 }
 0xd3e   :  { %v3058_v14 = vsel %vm606_vm8, %v3038_v13, -inf }
 0xd3f   :  { %v2984_v15 = vpop.f32.mrf.mxu3  ;;  %3059 = vmax.xlane.f32.xlu0 %v3058_v14 }
 0xd41   :  { %v3003_v16 = vpop.f32.mrf.mxu0  ;;  %v3020_v17 = vpop.f32.mrf.mxu1 }
 0xd42   :  { %v3031_v18 = vmul.f32 0.35355338, %v3020_v17 }
 0xd44   :  { %v3039_v20 = vadd.f32 %v5869_v19, %v3031_v18 }
 0xd46   :  { %v3061_v21 = vsel %vm606_vm8, %v3039_v20, -inf }
 0xd47   :  { %3062 = vmax.xlane.f32.xlu1 %v3061_v21 }
 0xd49   :  { %v3022_v22 = vpop.f32.mrf.mxu1 }
 0xd98   :  { %v3042_v23 = vpop.xlane.xlu0 %3041 }
 0xd99   :  { %v3064_v25 = vsub.f32 %v3032_v39, %v3042_v23 }
 0xd9b   :  { %v3072_v26 = vmul.f32 1.442695, %v3064_v25 }
 0xd9d   :  { %5782 = vpow2.f32 %v3072_v26 }
 0xda0   :  { %v3045_v27 = vpop.xlane.xlu1 %3044 }
 0xda1   :  { %v3065_v28 = vsub.f32 %v3033_v51, %v3045_v27 }
 0xda2   :  { %v3048_v29 = vpop.xlane.xlu2 %3047 }
 0xda3   :  { %v5783_v31 = vpop.eup %5782  ;;  %v3074_v32 = vmul.f32 1.442695, %v3065_v28  ;;  %v3066_v33 = vsub.f32 %v3034_v53, %v3048_v29 }
 0xda4   :  { %v3088_v34 = vsel %vm606_vm8, %v5783_v31, 0.0 }
 0xda5   :  { %5784 = vpow2.f32 %v3074_v32  ;;  %v3076_v35 = vmul.f32 1.442695, %v3066_v33  ;;  %3089 = vadd.xlane.f32.xlu2 %v3088_v34 }
 0xda7   :  { %5786 = vpow2.f32 %v3076_v35 }
 0xda8   :  { %v3054_v36 = vpop.xlane.xlu1 %3053 }
 0xda9   :  { %v3068_v38 = vsub.f32 %v3036_v60, %v3054_v36 }
 0xdaa   :  { %v3051_v40 = vpop.xlane.xlu0 %3050 }
 0xdab   :  { %v5785_v41 = vpop.eup %5784  ;;  %v3080_v42 = vmul.f32 1.442695, %v3068_v38  ;;  %v3067_v39 = vsub.f32 %v3035_v0, %v3051_v40 }
 0xdac   :  { %v3091_v44 = vsel %vm606_vm8, %v5785_v41, 0.0 }
 0xdad   :  { %v5787_v47 = vpop.eup %5786  ;;  %5788 = vpow2.f32 %v3080_v42  ;;  %v3078_v46 = vmul.f32 1.442695, %v3067_v39  ;;  %3092 = vadd.xlane.f32.xlu0 %v3091_v44  ;;  %v5291_v39 = vld [vmem:[%s7174_s6 + $0x14] sm:$0xf] }
 0xdae   :  { %v3094_v50 = vsel %vm606_vm8, %v5787_v47, 0.0  ;;  %v3341_v44 = vsel %vm874_vm9, %v5291_v39, 0 }
 0xdaf   :  { %5790 = vpow2.f32 %v3078_v46  ;;  %3095 = vadd.xlane.f32.xlu1 %v3094_v50  ;;  %v5295_v50 = vld [vmem:[%s7174_s6 + $0x1c] sm:$0xf] }
 0xdb0   :  { %v3057_v51 = vpop.xlane.xlu2 %3056 }
 0xdb1   :  { %v3069_v52 = vsub.f32 %v3037_v9, %v3057_v51 }
 0xdb2   :  { %v3060_v37 = vpop.xlane.xlu0 %3059 }
 0xdb3   :  { %v5789_v53 = vpop.eup %5788  ;;  %v3082_v54 = vmul.f32 1.442695, %v3069_v52  ;;  %v3070_v56 = vsub.f32 %v3038_v13, %v3060_v37  ;;  %v3399_v52 = vsel %vm874_vm9, %v5295_v50, 0 }
 0xdb4   :  { %v3100_v45 = vsel %vm606_vm8, %v5789_v53, 0.0 }
 0xdb5   :  { %v5791_v57 = vpop.eup %5790  ;;  %5792 = vpow2.f32 %v3082_v54  ;;  %v3084_v58 = vmul.f32 1.442695, %v3070_v56  ;;  %3101 = vadd.xlane.f32.xlu0 %v3100_v45 }
 0xdb6   :  { %v3097_v49 = vsel %vm606_vm8, %v5791_v57, 0.0 }
 0xdb7   :  { %5794 = vpow2.f32 %v3084_v58  ;;  %3098 = vadd.xlane.f32.xlu2 %v3097_v49 }
 0xdba   :  { %v3063_v59 = vpop.xlane.xlu1 %3062 }
 0xdbb   :  { %v5793_v55 = vpop.eup %5792  ;;  %v3071_v60 = vsub.f32 %v3039_v20, %v3063_v59 }
 0xdbc   :  { %v3103_v61 = vsel %vm606_vm8, %v5793_v55, 0.0 }
 0xdbd   :  { %v5795_v63 = vpop.eup %5794  ;;  %v3086_v0 = vmul.f32 1.442695, %v3071_v60  ;;  %3104 = vadd.xlane.f32.xlu1 %v3103_v61 }
 0xdbe   :  { %v3106_v1 = vsel %vm606_vm8, %v5795_v63, 0.0 }
 0xdbf   :  { %5796 = vpow2.f32 %v3086_v0  ;;  %3107 = vadd.xlane.f32.xlu2 %v3106_v1 }
 0xdc5   :  { %v5797_v2 = vpop.eup %5796 }
 0xdc6   :  { %v3109_v3 = vsel %vm606_vm8, %v5797_v2, 0.0 }
 0xdc7   :  { %3110 = vadd.xlane.f32.xlu0 %v3109_v3 }
 0xe18   :  { %v3090_v4 = vpop.xlane.xlu2 %3089 }
 0xe19   :  { %5798 = vrcp.f32 %v3090_v4 }
 0xe1f   :  { %v5799_v5 = vpop.eup %5798 }
 0xe20   :  { %v3120_v6 = vmul.f32 %v5799_v5, %v5783_v31  ;;  %v3093_v7 = vpop.xlane.xlu0 %3092 }
 0xe21   :  { %5800 = vrcp.f32 %v3093_v7 }
 0xe22   :  { %v3128_v62 = vpack.c.bf16 %v3120_v6, %v3120_v6  ;;  %v3096_v9 = vpop.xlane.xlu1 %3095 }
 0xe23   :  { %5802 = vrcp.f32 %v3096_v9 }
 0xe24   :  { %5280 = vmatmul.msk.bf16.vlgmr.msrb.gmra.mxu2 %vm606_vm8, %v3128_v62 }
 0xe27   :  { %v5801_v11 = vpop.eup %5800 }
 0xe28   :  { %v3121_v12 = vmul.f32 %v5801_v11, %v5785_v41  ;;  %v3102_v13 = vpop.xlane.xlu0 %3101  ;;  %v5289_v41 = vld [vmem:[%s7174_s6 + $0x10] sm:$0xf] }
 0xe29   :  { %v5803_v14 = vpop.eup %5802  ;;  %5804 = vrcp.f32 %v3102_v13  ;;  %v3309_v42 = vsel %vm874_vm9, %v5289_v41, 0 }
 0xe2a   :  { %v3129_v15 = vpack.c.bf16 %v3121_v12, %v3121_v12  ;;  %v3122_v16 = vmul.f32 %v5803_v14, %v5787_v47  ;;  %v3099_v17 = vpop.xlane.xlu2 %3098  ;;  %3318 = vmatpush.bf16.msrb.mxu2 %v3309_v42  ;;  %v5293_v47 = vld [vmem:[%s7174_s6 + $0x18] sm:$0xf] }
 0xe2b   :  { %5806 = vrcp.f32 %v3099_v17  ;;  %v3370_v46 = vsel %vm874_vm9, %v5293_v47, 0 }
 0xe2c   :  { %v3130_v18 = vpack.c.bf16 %v3122_v16, %v3122_v16  ;;  %5281 = vmatmul.msk.bf16.vlgmr.msrb.gmra.mxu3 %vm606_vm8, %v3129_v15 }
 0xe2d   :  { %3350 = vmatpush.bf16.msrb.mxu3 %v3341_v44 }
 0xe2e   :  { %5282 = vmatmul.msk.bf16.vlgmr.msra.gmra.mxu0 %vm606_vm8, %v3130_v18 }
 0xe2f   :  { %v5805_v19 = vpop.eup %5804  ;;  %3379 = vmatpush.bf16.msra.mxu0 %v3370_v46 }
 0xe30   :  { %v3124_v20 = vmul.f32 %v5805_v19, %v5789_v53  ;;  %v3105_v21 = vpop.xlane.xlu1 %3104 }
 0xe31   :  { %v5807_v22 = vpop.eup %5806  ;;  %5808 = vrcp.f32 %v3105_v21 }
 0xe32   :  { %v3132_v23 = vpack.c.bf16 %v3124_v20, %v3124_v20  ;;  %v3123_v25 = vmul.f32 %v5807_v22, %v5791_v57  ;;  %v3108_v26 = vpop.xlane.xlu2 %3107 }
 0xe33   :  { %5810 = vrcp.f32 %v3108_v26 }
 0xe34   :  { %v3131_v27 = vpack.c.bf16 %v3123_v25, %v3123_v25  ;;  %5284 = vmatmul.msk.bf16.vlgmr.msra.gmra.mxu2 %vm606_vm8, %v3132_v23  ;;  %v5682_v25 = vld [vmem:[%s7175_s7 + $0x1] ss:$0 sm:$0xff] }
 0xe36   :  { %5283 = vmatmul.msk.bf16.vlgmr.msra.gmra.mxu1 %vm606_vm8, %v3131_v27 }
 0xe37   :  { %v5809_v28 = vpop.eup %5808  ;;  %3408 = vmatpush.bf16.msra.mxu1 %v3399_v52 }
 0xe38   :  { %v3125_v29 = vmul.f32 %v5809_v28, %v5793_v55 }
 0xe39   :  { %v5811_v31 = vpop.eup %5810 }
 0xe3a   :  { %v3133_v32 = vpack.c.bf16 %v3125_v29, %v3125_v29  ;;  %v3126_v33 = vmul.f32 %v5811_v31, %v5795_v63  ;;  %v3111_v34 = vpop.xlane.xlu0 %3110 }
 0xe3b   :  { %5812 = vrcp.f32 %v3111_v34 }
 0xe3c   :  { %v3134_v35 = vpack.c.bf16 %v3126_v33, %v3126_v33  ;;  %5285 = vmatmul.msk.bf16.vlgmr.msra.gmra.mxu3 %vm606_vm8, %v3133_v32 }
 0xe3e   :  { %5286 = vmatmul.msk.bf16.vlgmr.msrb.gmra.mxu0 %vm606_vm8, %v3134_v35 }
 0xe41   :  { %v5813_v36 = vpop.eup %5812 }
 0xe42   :  { %v3127_v38 = vmul.f32 %v5813_v36, %v5797_v2 }
 0xe44   :  { %v3135_v40 = vpack.c.bf16 %v3127_v38, %v3127_v38 }
 0xe46   :  { %5287 = vmatmul.msk.bf16.vlgmr.msrb.gmra.mxu1 %vm606_vm8, %v3135_v40 }
 0xea7   :  { %v3151_v51 = vpop.f32.mrf.mxu2 }
 0xea8   :  { %v3288_v53 = vpack.c.bf16 %v3151_v51, %v3151_v51 }
 0xeaa   :  { %v3302_v57 = vunpack.c.l.b16 %v3288_v53 }
 0xeab   :  { %v3189_v37 = vpop.f32.mrf.mxu0 }
 0xeac   :  { %v3290_v58 = vpack.c.bf16 %v3189_v37, %v3189_v37 }
 0xeae   :  { %v3334_v63 = vunpack.c.l.b16 %v3290_v58 }
 0xeaf   :  { %v3153_v54 = vpop.f32.mrf.mxu2  ;;  %v3170_v56 = vpop.f32.mrf.mxu3 }
 0xeb0   :  { %v3289_v45 = vpack.c.bf16 %v3170_v56, %v3170_v56 }
 0xeb2   :  { %v3303_v49 = vunpack.c.l.b16 %v3289_v45 }
 0xeb3   :  { %v3191_v59 = vpop.f32.mrf.mxu0  ;;  %v3208_v55 = vpop.f32.mrf.mxu1 }
 0xeb4   :  { %v3304_v60 = vpack.c.b16 %v3303_v49, %v3302_v57  ;;  %v3291_v61 = vpack.c.bf16 %v3208_v55, %v3208_v55  ;;  %v5610_v49 = vld [vmem:[%s7176_s8 + $0x100] sm:$0xff]  ;;  %v5613_v59 = vld [vmem:[%s7176_s8 + $0x148] sm:$0xff]  ;;  %v5619_v55 = vld [vmem:[%s7176_s8 + $0x158] sm:$0xff] }
 0xeb5   :  { %3573 = vmatpush.bf16.msrb.mxu0 %v5613_v59  ;;  %v5630_v59 = vld [vmem:[%s7176_s8 + $0x170] sm:$0xff] }
 0xeb6   :  { %v3335_v0 = vunpack.c.l.b16 %v3291_v61  ;;  %5290 = vmatmul.msk.bf16.vlgmr.msrb.gmra.mxu2 %vm606_vm8, %v3304_v60  ;;  %v5612_v60 = vld [vmem:[%s7176_s8 + $0x140] sm:$0xff]  ;;  %v5618_v61 = vld [vmem:[%s7176_s8 + $0x150] sm:$0xff] }
 0xeb7   :  { %v3172_v1 = vpop.f32.mrf.mxu3  ;;  %v3227_v2 = vpop.f32.mrf.mxu2 }
 0xeb8   :  { %v3336_v3 = vpack.c.b16 %v3335_v0, %v3334_v63  ;;  %v3292_v6 = vpack.c.bf16 %v3227_v2, %v3227_v2  ;;  %v5609_v63 = vld [vmem:[%s7176_s8 + $0xc8] sm:$0xff]  ;;  %v5615_v0 = vld [vmem:[%s7176_s8 + $0xd8] sm:$0xff] }
 0xeb9   :  { %3574 = vmatpush.bf16.msrb.mxu0 %v5612_v60  ;;  %v5621_v1 = vld [vmem:[%s7176_s8 + $0xe8] sm:$0xff]  ;;  %v5627_v2 = vld [vmem:[%s7176_s8 + $0xf8] sm:$0xff]  ;;  %3501 = vmatpush.bf16.msra.mxu2 %v5609_v63 }
 0xeba   :  { %5292 = vmatmul.msk.bf16.vlgmr.msrb.gmra.mxu3 %vm606_vm8, %v3336_v3  ;;  %v3363_v11 = vunpack.c.l.b16 %v3292_v6  ;;  %3609 = vmatpush.bf16.msrb.mxu1 %v5615_v0  ;;  %v5614_v6 = vld [vmem:[%s7176_s8 + $0xd0] sm:$0xff]  ;;  %v5688_v63 = vld [vmem:[%s7177_s9 + $0xc] ss:$0 sm:$0xff] }
 0xebb   :  { %v3210_v4 = vpop.f32.mrf.mxu1  ;;  %v3265_v5 = vpop.f32.mrf.mxu0 }
 0xebc   :  { %v3294_v12 = vpack.c.bf16 %v3265_v5, %v3265_v5  ;;  %v5608_v5 = vld [vmem:[%s7176_s8 + $0xc0] sm:$0xff] }
 0xebd   :  { %3502 = vmatpush.bf16.msra.mxu2 %v5608_v5  ;;  %v5684_v5 = vld [vmem:[%s7177_s9 + $0x14] ss:$0 sm:$0xff] }
 0xebe   :  { %v3392_v18 = vunpack.c.l.b16 %v3294_v12  ;;  %3610 = vmatpush.bf16.msrb.mxu1 %v5614_v6  ;;  %v5623_v12 = vld [vmem:[%s7176_s8 + $0x128] sm:$0xff] }
 0xebf   :  { %v3229_v7 = vpop.f32.mrf.mxu2  ;;  %v3246_v62 = vpop.f32.mrf.mxu3 }
 0xec0   :  { %v3293_v9 = vpack.c.bf16 %v3246_v62, %v3246_v62  ;;  %v5620_v7 = vld [vmem:[%s7176_s8 + $0xe0] sm:$0xff]  ;;  %v5626_v62 = vld [vmem:[%s7176_s8 + $0xf0] sm:$0xff] }
 0xec2   :  { %v3364_v13 = vunpack.c.l.b16 %v3293_v9 }
 0xec3   :  { %v3267_v14 = vpop.f32.mrf.mxu0  ;;  %v3284_v15 = vpop.f32.mrf.mxu1 }
 0xec4   :  { %v3365_v16 = vpack.c.b16 %v3364_v13, %v3363_v11  ;;  %v3295_v17 = vpack.c.bf16 %v3284_v15, %v3284_v15  ;;  %v5617_v11 = vld [vmem:[%s7176_s8 + $0x118] sm:$0xff]  ;;  %v5616_v14 = vld [vmem:[%s7176_s8 + $0x110] sm:$0xff]  ;;  %v5622_v15 = vld [vmem:[%s7176_s8 + $0x120] sm:$0xff] }
 0xec5   :  { %3645 = vmatpush.bf16.msrb.mxu2 %v5617_v11 }
 0xec6   :  { %v3393_v19 = vunpack.c.l.b16 %v3295_v17  ;;  %5294 = vmatmul.msk.bf16.vlgmr.msra.gmra.mxu0 %vm606_vm8, %v3365_v16 }
 0xec7   :  { %v3248_v20 = vpop.f32.mrf.mxu3  ;;  %3717 = vmatpush.bf16.msra.mxu0 %v5621_v1 }
 0xec8   :  { %v3394_v21 = vpack.c.b16 %v3393_v19, %v3392_v18 }
 0xec9   :  { %3646 = vmatpush.bf16.msrb.mxu2 %v5616_v14 }
 0xeca   :  { %5296 = vmatmul.msk.bf16.vlgmr.msra.gmra.mxu1 %vm606_vm8, %v3394_v21 }
 0xecb   :  { %v3286_v22 = vpop.f32.mrf.mxu1  ;;  %3718 = vmatpush.bf16.msra.mxu0 %v5620_v7  ;;  %3753 = vmatpush.bf16.msra.mxu1 %v5623_v12 }
 0xecf   :  { %3754 = vmatpush.bf16.msra.mxu1 %v5622_v15 }
 0xed6   :  { %5338 = vmatmul.msk.bf16.vlgmr.msrb.gmra.mxu0 %vm90_vm0, %v6308_v8 }
 0xf39   :  { %v3320_v23 = vpop.f32.mrf.mxu2 }
 0xf3a   :  { %v3328_v27 = vadd.f32 %v5682_v25, %v3320_v23 }
 0xf3d   :  { %v3352_v26 = vpop.f32.mrf.mxu3 }
 0xf3e   :  { %v3357_v29 = vadd.f32 %v3352_v26, %v3328_v27  ;;  %v5629_v26 = vld [vmem:[%s7176_s8 + $0x138] sm:$0xff] }
 0xf3f   :  { %3861 = vmatpush.bf16.msrb.mxu0 %v5629_v26 }
 0xf41   :  { %v3322_v32 = vpop.f32.mrf.mxu2 }
 0xf42   :  { %v3329_v36 = vadd.f32 %v5682_v25, %v3322_v32 }
 0xf43   :  { %v3381_v28 = vpop.f32.mrf.mxu0 }
 0xf44   :  { %v3386_v31 = vadd.f32 %v3381_v28, %v3357_v29  ;;  %v3439_v29 = vperm.slane %v6660_v24, 1  ;;  %v3466_v24 = vperm.slane %v6666_v30, 1  ;;  %v5625_v30 = vld [vmem:[%s7176_s8 + $0x168] sm:$0xff] }
 0xf45   :  { %v3354_v35 = vpop.f32.mrf.mxu3 }
 0xf46   :  { %v3358_v41 = vadd.f32 %v3354_v35, %v3329_v36 }
 0xf47   :  { %v3410_v33 = vpop.f32.mrf.mxu1 }
 0xf48   :  { %v3415_v34 = vadd.f32 %v3410_v33, %v3386_v31  ;;  %v5628_v31 = vld [vmem:[%s7176_s8 + $0x130] sm:$0xff] }
 0xf49   :  { %3862 = vmatpush.bf16.msrb.mxu0 %v5628_v31 }
 0xf4a   :  { %v6842_v38 = vadd.f32 %v3415_v34, %v6584_v43  ;;  %v5611_v43 = vld [vmem:[%s7176_s8 + $0x108] sm:$0xff] }
 0xf4b   :  { %v3383_v40 = vpop.f32.mrf.mxu0  ;;  %3537 = vmatpush.bf16.msra.mxu3 %v5611_v43  ;;  %v5624_v43 = vld [vmem:[%s7176_s8 + $0x160] sm:$0xff] }
 0xf4c   :  { %v3419_v42 = vsel %vm90_vm0, %v6842_v38, 0.0  ;;  %v3387_v39 = vadd.f32 %v3383_v40, %v3358_v41 }
 0xf4d   :  { %3420 = vadd.xlane.f32.xlu1 %v3419_v42 }
 0xf4f   :  { %v3412_v44 = vpop.f32.mrf.mxu1  ;;  %3538 = vmatpush.bf16.msra.mxu3 %v5610_v49 }
 0xf50   :  { %v3416_v47 = vadd.f32 %v3412_v44, %v3387_v39 }
 0xf52   :  { %v6847_v46 = vadd.f32 %v3416_v47, %v6589_v48  ;;  %5324 = vmatmul.msk.bf16.vlgmr.msra.gmra.mxu3 %vm90_vm0, %v6308_v8 }
 0xf53   :  { %3681 = vmatpush.bf16.msrb.mxu3 %v5619_v55  ;;  %v3576_v49 = vpop.f32.mrf.mxu0 }
 0xf54   :  { %v3422_v50 = vsel %vm90_vm0, %v6847_v46, 0.0  ;;  %v3577_v6 = vadd.f32 %v5684_v5, %v3576_v49 }
 0xf55   :  { %3423 = vadd.xlane.f32.xlu2 %v3422_v50 }
 0xf56   :  { %v3921_v15 = vpack.c.bf16 %v3577_v6, %v3577_v6  ;;  %v5693_v6 = vld [vmem:[%s7177_s9 + $0x16] ss:$0 sm:$0xff] }
 0xf57   :  { %3682 = vmatpush.bf16.msrb.mxu3 %v5618_v61 }
 0xf5b   :  { %3825 = vmatpush.bf16.msra.mxu3 %v5627_v2  ;;  %v3578_v55 = vpop.f32.mrf.mxu0 }
 0xf5f   :  { %3826 = vmatpush.bf16.msra.mxu3 %v5626_v62  ;;  %v5692_v62 = vld [vmem:[%s7177_s9 + $0x13] ss:$0 sm:$0xff] }
 0xf62   :  { %5380 = vmatmul.msk.bf16.vlgmr.msrb.gmra.mxu3 %vm90_vm0, %v6308_v8 }
 0xfc0   :  { %v3421_v51 = vpop.xlane.xlu1 %3420 }
 0xfc1   :  { %v3425_v52 = vmul.f32 %v3421_v51, %v6023_v10  ;;  %v5683_v51 = vld [vmem:[%s7177_s9 + $0x10] ss:$0 sm:$0xff] }
 0xfc3   :  { %v6856_v37 = vsub.f32 %v6842_v38, %v3425_v52 }
 0xfc5   :  { %v3429_v53 = vmul.f32 %v6856_v37, %v6856_v37  ;;  %v3440_v35 = vmul.f32 %v3439_v29, %v6856_v37 }
 0xfc7   :  { %v3431_v48 = vsel %vm90_vm0, %v3429_v53, 0.0 }
 0xfc8   :  { %3432 = vadd.xlane.f32.xlu0 %v3431_v48  ;;  %v3424_v54 = vpop.xlane.xlu2 %3423 }
 0xfc9   :  { %v3426_v56 = vmul.f32 %v3424_v54, %v6023_v10 }
 0xfcb   :  { %v6863_v45 = vsub.f32 %v6847_v46, %v3426_v56 }
 0xfcd   :  { %v3430_v57 = vmul.f32 %v6863_v45, %v6863_v45  ;;  %v3441_v40 = vmul.f32 %v3439_v29, %v6863_v45 }
 0xfcf   :  { %v3434_v58 = vsel %vm90_vm0, %v3430_v57, 0.0 }
 0xfd0   :  { %3435 = vadd.xlane.f32.xlu1 %v3434_v58  ;;  %v5631_v58 = vld [vmem:[%s7176_s8 + $0x178] sm:$0xff] }
 0xfd5   :  { %v3540_v52 = vpop.f32.mrf.mxu3 }
 0xfd6   :  { %v3541_v37 = vadd.f32 %v5683_v51, %v3540_v52 }
 0xfd8   :  { %v3913_v53 = vpack.c.bf16 %v3541_v37, %v3541_v37 }
 0xfda   :  { %v3933_v48 = vsel %vm606_vm8, %v3913_v53, 0 }
 0xfdd   :  { %v3542_v54 = vpop.f32.mrf.mxu3 }
 0xfde   :  { %v3543_v56 = vadd.f32 %v5683_v51, %v3542_v54 }
 0xfe0   :  { %v3914_v45 = vpack.c.bf16 %v3543_v56, %v3543_v56 }
 0xfe2   :  { %v3952_v57 = vsel %vm606_vm8, %v3914_v45, 0 }
 0xfe3   :  { %3961 = vmatpush.bf16.xpose.msrb.mxu3 %v3952_v57 }
0x103b   :  { %v3433_v3 = vpop.xlane.xlu0 %3432 }
0x103c   :  { %v3437_v4 = vmul.f32 %v3433_v3, %v6023_v10 }
0x103e   :  { %v3442_v9 = vadd.f32 1e-06, %v3437_v4 }
0x1040   :  { %5814 = vrsqrt.f32 %v3442_v9  ;;  %vm3450_vm2 = vweird.f32 %v3442_v9 }
0x1043   :  { %v3436_v13 = vpop.xlane.xlu1 %3435 }
0x1044   :  { %v3438_v16 = vmul.f32 %v3436_v13, %v6023_v10 }
0x1046   :  { %v5815_v17 = vpop.eup %5814  ;;  %v3443_v18 = vadd.f32 1e-06, %v3438_v16 }
0x1047   :  { %v3445_v19 = vmul.f32 %v5815_v17, %v3442_v9  ;;  %vm3451_vm1 = vweird.f32 %v5815_v17 }
0x1048   :  { %5816 = vrsqrt.f32 %v3443_v18  ;;  %vm3452_vm3 = vmor %vm3450_vm2, %vm3451_vm1  ;;  %vm3460_vm5 = vweird.f32 %v3443_v18 }
0x1049   :  { %v3446_v20 = vmul.f32 %v5815_v17, %v3445_v19  ;;  %v5691_v19 = vld [vmem:[%s7177_s9 + $0x11] ss:$0 sm:$0xff] }
0x104b   :  { %v3447_v21 = vmul.f32 0.5, %v3446_v20  ;;  %v3684_v20 = vpop.f32.mrf.mxu3 }
0x104d   :  { %v3448_v22 = vsub.f32 1.5, %v3447_v21  ;;  %v5685_v21 = vld [vmem:[%s7177_s9 + $0x15] ss:$0 sm:$0xff] }
0x104e   :  { %v5817_v23 = vpop.eup %5816 }
0x104f   :  { %v3455_v25 = vmul.f32 %v5817_v23, %v3443_v18  ;;  %v3449_v27 = vmul.f32 %v5815_v17, %v3448_v22  ;;  %vm3461_vm4 = vweird.f32 %v5817_v23 }
0x1050   :  { %vm3462_vm6 = vmor %vm3460_vm5, %vm3461_vm4 }
0x1051   :  { %v3456_v28 = vmul.f32 %v5817_v23, %v3455_v25  ;;  %v3453_v33 = vsel %vm3452_vm3, %v5815_v17, %v3449_v27  ;;  %v5687_v17 = vld [vmem:[%s7177_s9 + $0xe] ss:$0 sm:$0xff]  ;;  %v3579_v25 = vadd.f32 %v5684_v5, %v3578_v55 }
0x1052   :  { %v3464_v41 = vmul.f32 %v3453_v33, %v3440_v35  ;;  %v5686_v33 = vld [vmem:[%s7177_s9 + $0xd] ss:$0 sm:$0xff] }
0x1053   :  { %v3457_v32 = vmul.f32 0.5, %v3456_v28  ;;  %v3686_v51 = vpop.f32.mrf.mxu3 }
0x1054   :  { %v3467_v44 = vadd.f32 %v3466_v24, %v3464_v41 }
0x1055   :  { %v3458_v34 = vsub.f32 1.5, %v3457_v32  ;;  %v3685_v32 = vadd.f32 %v5685_v21, %v3684_v20 }
0x1057   :  { %v3459_v36 = vmul.f32 %v5817_v23, %v3458_v34 }
0x1059   :  { %v3463_v42 = vsel %vm3462_vm6, %v5817_v23, %v3459_v36  ;;  %v4197_v23 = vsel %vm874_vm9, %v3921_v15, 0 }
0x105a   :  { %v3465_v39 = vmul.f32 %v3463_v42, %v3441_v40  ;;  %v3922_v40 = vpack.c.bf16 %v3579_v25, %v3579_v25 }
0x105c   :  { %v3468_v47 = vadd.f32 %v3466_v24, %v3465_v39 }
0x105e   :  { %v3469_v50 = vpack.c.bf16 %v3468_v47, %v3467_v44  ;;  %v3923_v47 = vpack.c.bf16 %v3685_v32, %v3685_v32 }
0x1060   :  { %5310 = vmatmul.msk.bf16.vlgmr.msra.gmra.mxu2 %vm90_vm0, %v3469_v50  ;;  %5352 = vmatmul.msk.bf16.vlgmr.msrb.gmra.mxu1 %vm90_vm0, %v3469_v50  ;;  %v4235_v54 = vsel %vm874_vm9, %v3923_v47, 0  ;;  %v5872_v47 = vld [vmem:[%s7203_s30 + $0x10] sm:$0xff] }
0x1061   :  { %5394 = vmatmul.msk.bf16.vlgmr.msra.gmra.mxu0 %vm90_vm0, %v3469_v50  ;;  %5436 = vmatmul.msk.bf16.vlgmr.msra.gmra.mxu3 %vm90_vm0, %v3469_v50 }
0x1062   :  { %3789 = vmatpush.bf16.msra.mxu2 %v5625_v30  ;;  %3897 = vmatpush.bf16.msrb.mxu1 %v5631_v58  ;;  %v3687_v58 = vadd.f32 %v5685_v21, %v3686_v51 }
0x1066   :  { %3790 = vmatpush.bf16.msra.mxu2 %v5624_v43  ;;  %3898 = vmatpush.bf16.msrb.mxu1 %v5630_v59  ;;  %v4216_v43 = vsel %vm874_vm9, %v3922_v40, 0 }
0x1070   :  { %5366 = vmatmul.msk.bf16.vlgmr.msrb.gmra.mxu2 %vm90_vm0, %v6308_v8  ;;  %5408 = vmatmul.msk.bf16.vlgmr.msra.gmra.mxu1 %vm90_vm0, %v6308_v8 }
0x1071   :  { %5450 = vmatmul.msk.bf16.vlgmr.msrb.gmra.mxu0 %vm90_vm0, %v6308_v8  ;;  %3942 = vmatpush.bf16.xpose.msrb.mxu2 %v3933_v48 }
0x1080   :  { %5422 = vmatmul.msk.bf16.vlgmr.msra.gmra.mxu2 %vm90_vm0, %v6308_v8  ;;  %5464 = vmatmul.msk.bf16.vlgmr.msrb.gmra.mxu1 %vm90_vm0, %v6308_v8  ;;  %v5690_v8 = vld [vmem:[%s7177_s9 + $0x12] ss:$0 sm:$0xff] }
0x10dd   :  { %v3612_v60 = vpop.f32.mrf.mxu1 }
0x10de   :  { %v3720_v61 = vpop.f32.mrf.mxu0  ;;  %v3613_v50 = vadd.f32 %v5686_v33, %v3612_v60  ;;  %v3924_v60 = vpack.c.bf16 %v3687_v58, %v3687_v58 }
0x10df   :  { %v3721_v28 = vadd.f32 %v5687_v17, %v3720_v61 }
0x10e0   :  { %v3907_v56 = vpack.c.bf16 %v3613_v50, %v3613_v50 }
0x10e1   :  { %v3909_v42 = vpack.c.bf16 %v3721_v28, %v3721_v28  ;;  %v5870_v28 = vld [vmem:[%s7203_s30] sm:$0xff] }
0x10e3   :  { %v3504_v0 = vpop.f32.mrf.mxu2 }
0x10e4   :  { %v3505_v1 = vadd.f32 %v5688_v63, %v3504_v0  ;;  %v3828_v61 = vpop.f32.mrf.mxu3 }
0x10e5   :  { %v6971_v2 = vpop.f32.mrf.mxu1 }
0x10e6   :  { %v3905_v3 = vpack.c.bf16 %v3505_v1, %v3505_v1  ;;  %v3722_v4 = vpop.f32.mrf.mxu0  ;;  %v3615_v55 = vadd.f32 %v5686_v33, %v6971_v2  ;;  %v4254_v1 = vsel %vm874_vm9, %v3924_v60, 0 }
0x10e7   :  { %v3723_v53 = vadd.f32 %v5687_v17, %v3722_v4  ;;  %v5694_v17 = vld [vmem:[%s7177_s9 + $0x17] ss:$0 sm:$0xff] }
0x10e8   :  { %5465 = vmatmul.msk.bf16.vlgmr.msrb.gmra.mxu2 %vm606_vm8, %v3905_v3  ;;  %v3908_v0 = vpack.c.bf16 %v3615_v55, %v3615_v55 }
0x10e9   :  { %v3910_v49 = vpack.c.bf16 %v3723_v53, %v3723_v53 }
0x10eb   :  { %v3506_v7 = vpop.f32.mrf.mxu2 }
0x10ec   :  { %v3507_v9 = vadd.f32 %v5688_v63, %v3506_v7  ;;  %v5689_v63 = vld [vmem:[%s7177_s9 + $0xf] ss:$0 sm:$0xff]  ;;  %v3830_v5 = vpop.f32.mrf.mxu3 }
0x10ed   :  { %v3756_v11 = vpop.f32.mrf.mxu1  ;;  %v3829_v3 = vadd.f32 %v5689_v63, %v3828_v61  ;;  %v3831_v2 = vadd.f32 %v5689_v63, %v3830_v5 }
0x10ee   :  { %v3906_v12 = vpack.c.bf16 %v3507_v9, %v3507_v9  ;;  %v3757_v13 = vadd.f32 %v5690_v8, %v3756_v11  ;;  %v3864_v14 = vpop.f32.mrf.mxu0 }
0x10ef   :  { %v3865_v16 = vadd.f32 %v5692_v62, %v3864_v14  ;;  %v3911_v4 = vpack.c.bf16 %v3829_v3, %v3829_v3  ;;  %v5876_v3 = vld [vmem:[%s7203_s30 + $0x30] sm:$0xff] }
0x10f0   :  { %v3917_v18 = vpack.c.bf16 %v3757_v13, %v3757_v13  ;;  %5466 = vmatmul.msk.bf16.vlgmr.msrb.gmra.mxu3 %vm606_vm8, %v3906_v12 }
0x10f1   :  { %v3919_v27 = vpack.c.bf16 %v3865_v16, %v3865_v16 }
0x10f2   :  { %v4009_v22 = vsel %vm606_vm8, %v3917_v18, 0 }
0x10f3   :  { %v3648_v26 = vpop.f32.mrf.mxu2  ;;  %4018 = vmatpush.bf16.xpose.msra.mxu2 %v4009_v22  ;;  %v4047_v24 = vsel %vm606_vm8, %v3919_v27, 0 }
0x10f4   :  { %v3649_v29 = vadd.f32 %v5691_v19, %v3648_v26 }
0x10f5   :  { %v3758_v31 = vpop.f32.mrf.mxu1 }
0x10f6   :  { %v3915_v34 = vpack.c.bf16 %v3649_v29, %v3649_v29  ;;  %v3759_v35 = vadd.f32 %v5690_v8, %v3758_v31  ;;  %v3866_v36 = vpop.f32.mrf.mxu0  ;;  %v3912_v8 = vpack.c.bf16 %v3831_v2, %v3831_v2 }
0x10f7   :  { %v3867_v41 = vadd.f32 %v5692_v62, %v3866_v36 }
0x10f8   :  { %v3971_v39 = vsel %vm606_vm8, %v3915_v34, 0  ;;  %v3918_v44 = vpack.c.bf16 %v3759_v35, %v3759_v35  ;;  %v5871_v35 = vld [vmem:[%s7203_s30 + $0x8] sm:$0xff] }
0x10f9   :  { %3980 = vmatpush.bf16.xpose.msra.mxu0 %v3971_v39  ;;  %v3920_v37 = vpack.c.bf16 %v3867_v41, %v3867_v41 }
0x10fa   :  { %v4028_v30 = vsel %vm606_vm8, %v3918_v44, 0  ;;  %5469 = vmatmul.msk.bf16.vlgmr.msra.gmra.mxu2 %vm606_vm8, %v3909_v42 }
0x10fb   :  { %4206 = vmatpush.bf16.msrb.mxu2 %v4197_v23  ;;  %v3650_v52 = vpop.f32.mrf.mxu2  ;;  %4037 = vmatpush.bf16.xpose.msra.mxu3 %v4028_v30  ;;  %v4066_v57 = vsel %vm606_vm8, %v3920_v37, 0  ;;  %v5873_v30 = vld [vmem:[%s7203_s30 + $0x20] sm:$0xff] }
0x10fc   :  { %v3651_v48 = vadd.f32 %v5691_v19, %v3650_v52 }
0x10fd   :  { %v3900_v16 = vpop.f32.mrf.mxu1 }
0x10fe   :  { %v3916_v45 = vpack.c.bf16 %v3651_v48, %v3651_v48  ;;  %v3901_v18 = vadd.f32 %v5694_v17, %v3900_v16 }
0x1100   :  { %v3990_v59 = vsel %vm606_vm8, %v3916_v45, 0  ;;  %5467 = vmatmul.msk.bf16.vlgmr.msra.gmra.mxu0 %vm606_vm8, %v3907_v56  ;;  %v3927_v21 = vpack.c.bf16 %v3901_v18, %v3901_v18 }
0x1101   :  { %4056 = vmatpush.bf16.xpose.msrb.mxu0 %v4047_v24  ;;  %3999 = vmatpush.bf16.xpose.msra.mxu1 %v3990_v59 }
0x1102   :  { %5470 = vmatmul.msk.bf16.vlgmr.msra.gmra.mxu3 %vm606_vm8, %v3910_v49  ;;  %v4311_v23 = vsel %vm874_vm9, %v3927_v21, 0  ;;  %v5875_v49 = vld [vmem:[%s7203_s30 + $0x28] sm:$0xff] }
0x1103   :  { %4225 = vmatpush.bf16.msrb.mxu3 %v4216_v43  ;;  %v3792_v7 = vpop.f32.mrf.mxu2 }
0x1104   :  { %v3793_v62 = vadd.f32 %v5693_v6, %v3792_v7  ;;  %v5877_v7 = vld [vmem:[%s7203_s30 + $0x38] sm:$0xff] }
0x1105   :  { %v3902_v19 = vpop.f32.mrf.mxu1 }
0x1106   :  { %v3925_v9 = vpack.c.bf16 %v3793_v62, %v3793_v62  ;;  %v3903_v20 = vadd.f32 %v5694_v17, %v3902_v19 }
0x1108   :  { %5468 = vmatmul.msk.bf16.vlgmr.msra.gmra.mxu1 %vm606_vm8, %v3908_v0  ;;  %v4273_v11 = vsel %vm874_vm9, %v3925_v9, 0  ;;  %v3928_v22 = vpack.c.bf16 %v3903_v20, %v3903_v20 }
0x1109   :  { %4244 = vmatpush.bf16.msra.mxu0 %v4235_v54  ;;  %4075 = vmatpush.bf16.xpose.msrb.mxu1 %v4066_v57  ;;  %v5874_v57 = vld [vmem:[%s7203_s30 + $0x18] sm:$0xff] }
0x110a   :  { %4282 = vmatpush.bf16.msra.mxu2 %v4273_v11  ;;  %v4330_v25 = vsel %vm874_vm9, %v3928_v22, 0 }
0x110b   :  { %v3794_v12 = vpop.f32.mrf.mxu2 }
0x110c   :  { %v3795_v13 = vadd.f32 %v5693_v6, %v3794_v12 }
0x110e   :  { %v3926_v14 = vpack.c.bf16 %v3795_v13, %v3795_v13 }
0x1110   :  { %5471 = vmatmul.msk.bf16.vlgmr.msrb.gmra.mxu0 %vm606_vm8, %v3911_v4  ;;  %v4292_v15 = vsel %vm874_vm9, %v3926_v14, 0 }
0x1111   :  { %4263 = vmatpush.bf16.msra.mxu1 %v4254_v1  ;;  %4301 = vmatpush.bf16.msra.mxu3 %v4292_v15 }
0x1112   :  { %4320 = vmatpush.bf16.msrb.mxu0 %v4311_v23 }
0x1118   :  { %5472 = vmatmul.msk.bf16.vlgmr.msrb.gmra.mxu1 %vm606_vm8, %v3912_v8 }
0x1119   :  { %4339 = vmatpush.bf16.msrb.mxu1 %v4330_v25 }
0x116b   :  { %v3944_v26 = vpop.f32.mrf.mxu2 }
0x116c   :  { %v4081_v27 = vmul.f32 0.35355338, %v3944_v26 }
0x116e   :  { %v4089_v29 = vadd.f32 %v5870_v28, %v4081_v27 }
0x1170   :  { %v4097_v31 = vsel %vm606_vm8, %v4089_v29, -inf }
0x1171   :  { %4098 = vmax.xlane.f32.xlu2 %v4097_v31 }
0x1173   :  { %v3946_v32 = vpop.f32.mrf.mxu2  ;;  %v3963_v33 = vpop.f32.mrf.mxu3 }
0x1174   :  { %v4082_v34 = vmul.f32 0.35355338, %v3963_v33 }
0x1176   :  { %v4090_v36 = vadd.f32 %v5871_v35, %v4082_v34 }
0x1178   :  { %v4100_v40 = vsel %vm606_vm8, %v4090_v36, -inf }
0x1179   :  { %4101 = vmax.xlane.f32.xlu0 %v4100_v40 }
0x117b   :  { %v3965_v24 = vpop.f32.mrf.mxu3 }
0x117d   :  { %v3982_v41 = vpop.f32.mrf.mxu0  ;;  %v4020_v42 = vpop.f32.mrf.mxu2 }
0x117e   :  { %v4083_v39 = vmul.f32 0.35355338, %v3982_v41  ;;  %v4085_v44 = vmul.f32 0.35355338, %v4020_v42 }
0x1180   :  { %v4091_v50 = vadd.f32 %v5872_v47, %v4083_v39  ;;  %v4093_v43 = vadd.f32 %v5873_v30, %v4085_v44 }
0x1182   :  { %v4103_v51 = vsel %vm606_vm8, %v4091_v50, -inf  ;;  %v4109_v52 = vsel %vm606_vm8, %v4093_v43, -inf }
0x1183   :  { %4104 = vmax.xlane.f32.xlu1 %v4103_v51  ;;  %4110 = vmax.xlane.f32.xlu0 %v4109_v52 }
0x1185   :  { %v3984_v37 = vpop.f32.mrf.mxu0  ;;  %v4001_v53 = vpop.f32.mrf.mxu1 }
0x1186   :  { %v4084_v48 = vmul.f32 0.35355338, %v4001_v53  ;;  %v4022_v54 = vpop.f32.mrf.mxu2  ;;  %v4039_v56 = vpop.f32.mrf.mxu3 }
0x1187   :  { %v4086_v45 = vmul.f32 0.35355338, %v4039_v56 }
0x1188   :  { %v4092_v58 = vadd.f32 %v5874_v57, %v4084_v48 }
0x1189   :  { %v4094_v59 = vadd.f32 %v5875_v49, %v4086_v45 }
0x118a   :  { %v4106_v55 = vsel %vm606_vm8, %v4092_v58, -inf }
0x118b   :  { %v4112_v60 = vsel %vm606_vm8, %v4094_v59, -inf  ;;  %4107 = vmax.xlane.f32.xlu2 %v4106_v55 }
0x118c   :  { %4113 = vmax.xlane.f32.xlu1 %v4112_v60 }
0x118d   :  { %v4003_v61 = vpop.f32.mrf.mxu1  ;;  %v4058_v63 = vpop.f32.mrf.mxu0 }
0x118e   :  { %v4041_v0 = vpop.f32.mrf.mxu3  ;;  %v4087_v1 = vmul.f32 0.35355338, %v4058_v63 }
0x1190   :  { %v4095_v4 = vadd.f32 %v5876_v3, %v4087_v1 }
0x1192   :  { %v4115_v5 = vsel %vm606_vm8, %v4095_v4, -inf }
0x1193   :  { %4116 = vmax.xlane.f32.xlu2 %v4115_v5 }
0x1195   :  { %v4060_v2 = vpop.f32.mrf.mxu0  ;;  %v4077_v8 = vpop.f32.mrf.mxu1 }
0x1196   :  { %v4088_v6 = vmul.f32 0.35355338, %v4077_v8 }
0x1198   :  { %v4096_v62 = vadd.f32 %v5877_v7, %v4088_v6 }
0x119a   :  { %v4118_v9 = vsel %vm606_vm8, %v4096_v62, -inf }
0x119b   :  { %4119 = vmax.xlane.f32.xlu0 %v4118_v9 }
0x119d   :  { %v4079_v11 = vpop.f32.mrf.mxu1 }
0x11e4   :  { %v4099_v12 = vpop.xlane.xlu2 %4098 }
0x11e5   :  { %v4121_v13 = vsub.f32 %v4089_v29, %v4099_v12 }
0x11e7   :  { %v4129_v14 = vmul.f32 1.442695, %v4121_v13 }
0x11e9   :  { %5818 = vpow2.f32 %v4129_v14 }
0x11ec   :  { %v4102_v15 = vpop.xlane.xlu0 %4101 }
0x11ed   :  { %v4122_v16 = vsub.f32 %v4090_v36, %v4102_v15 }
0x11ef   :  { %v5819_v17 = vpop.eup %5818  ;;  %v4131_v18 = vmul.f32 1.442695, %v4122_v16 }
0x11f0   :  { %v4145_v19 = vsel %vm606_vm8, %v5819_v17, 0.0 }
0x11f1   :  { %5820 = vpow2.f32 %v4131_v18  ;;  %4146 = vadd.xlane.f32.xlu1 %v4145_v19 }
0x11f6   :  { %v4105_v20 = vpop.xlane.xlu1 %4104  ;;  %v4111_v21 = vpop.xlane.xlu0 %4110 }
0x11f7   :  { %v5821_v22 = vpop.eup %5820  ;;  %v4123_v23 = vsub.f32 %v4091_v50, %v4105_v20  ;;  %v4125_v25 = vsub.f32 %v4093_v43, %v4111_v21 }
0x11f8   :  { %v4148_v26 = vsel %vm606_vm8, %v5821_v22, 0.0 }
0x11f9   :  { %v4133_v27 = vmul.f32 1.442695, %v4123_v23  ;;  %v4137_v28 = vmul.f32 1.442695, %v4125_v25  ;;  %4149 = vadd.xlane.f32.xlu2 %v4148_v26  ;;  %v5482_v23 = vld [vmem:[%s7178_s10 + $0x10] sm:$0xf] }
0x11fa   :  { %v4366_v25 = vsel %vm874_vm9, %v5482_v23, 0  ;;  %v5484_v26 = vld [vmem:[%s7178_s10 + $0x14] sm:$0xf] }
0x11fb   :  { %5822 = vpow2.f32 %v4133_v27  ;;  %v4398_v27 = vsel %vm874_vm9, %v5484_v26, 0 }
0x11fc   :  { %5824 = vpow2.f32 %v4137_v28  ;;  %v5486_v28 = vld [vmem:[%s7178_s10 + $0x18] sm:$0xf] }
0x11fe   :  { %v4108_v29 = vpop.xlane.xlu2 %4107 }
0x11ff   :  { %v4114_v31 = vpop.xlane.xlu1 %4113  ;;  %v4124_v32 = vsub.f32 %v4092_v58, %v4108_v29  ;;  %v4427_v29 = vsel %vm874_vm9, %v5486_v28, 0 }
0x1200   :  { %v4126_v33 = vsub.f32 %v4094_v59, %v4114_v31 }
0x1201   :  { %v5823_v34 = vpop.eup %5822  ;;  %v4135_v35 = vmul.f32 1.442695, %v4124_v32 }
0x1202   :  { %v5825_v36 = vpop.eup %5824  ;;  %v4139_v40 = vmul.f32 1.442695, %v4126_v33  ;;  %v4151_v24 = vsel %vm606_vm8, %v5823_v34, 0.0  ;;  %v5488_v33 = vld [vmem:[%s7178_s10 + $0x1c] sm:$0xf] }
0x1203   :  { %5826 = vpow2.f32 %v4135_v35  ;;  %4152 = vadd.xlane.f32.xlu0 %v4151_v24  ;;  %v4157_v41 = vsel %vm606_vm8, %v5825_v36, 0.0 }
0x1204   :  { %5828 = vpow2.f32 %v4139_v40  ;;  %4158 = vadd.xlane.f32.xlu2 %v4157_v41 }
0x1206   :  { %v4117_v42 = vpop.xlane.xlu2 %4116 }
0x1207   :  { %v4127_v39 = vsub.f32 %v4095_v4, %v4117_v42 }
0x1209   :  { %v5827_v44 = vpop.eup %5826  ;;  %v4141_v47 = vmul.f32 1.442695, %v4127_v39 }
0x120a   :  { %v5829_v50 = vpop.eup %5828  ;;  %v4154_v30 = vsel %vm606_vm8, %v5827_v44, 0.0 }
0x120b   :  { %5830 = vpow2.f32 %v4141_v47  ;;  %4155 = vadd.xlane.f32.xlu1 %v4154_v30  ;;  %v4160_v43 = vsel %vm606_vm8, %v5829_v50, 0.0 }
0x120c   :  { %4161 = vadd.xlane.f32.xlu0 %v4160_v43 }
0x120e   :  { %v4120_v51 = vpop.xlane.xlu0 %4119 }
0x120f   :  { %v4128_v52 = vsub.f32 %v4096_v62, %v4120_v51 }
0x1211   :  { %v5831_v37 = vpop.eup %5830  ;;  %v4143_v53 = vmul.f32 1.442695, %v4128_v52 }
0x1212   :  { %v4163_v48 = vsel %vm606_vm8, %v5831_v37, 0.0 }
0x1213   :  { %5832 = vpow2.f32 %v4143_v53  ;;  %4164 = vadd.xlane.f32.xlu1 %v4163_v48 }
0x1219   :  { %v5833_v54 = vpop.eup %5832 }
0x121a   :  { %v4166_v56 = vsel %vm606_vm8, %v5833_v54, 0.0 }
0x121b   :  { %4167 = vadd.xlane.f32.xlu2 %v4166_v56 }
0x1264   :  { %v4147_v45 = vpop.xlane.xlu1 %4146 }
0x1265   :  { %5834 = vrcp.f32 %v4147_v45 }
0x126b   :  { %v5835_v57 = vpop.eup %5834 }
0x126c   :  { %v4177_v58 = vmul.f32 %v5835_v57, %v5819_v17  ;;  %v4150_v49 = vpop.xlane.xlu2 %4149 }
0x126d   :  { %5836 = vrcp.f32 %v4150_v49 }
0x126e   :  { %v4185_v59 = vpack.c.bf16 %v4177_v58, %v4177_v58 }
0x1270   :  { %5473 = vmatmul.msk.bf16.vlgmr.msrb.gmra.mxu2 %vm606_vm8, %v4185_v59 }
0x1271   :  { %4375 = vmatpush.bf16.msrb.mxu2 %v4366_v25 }
0x1273   :  { %v5837_v55 = vpop.eup %5836 }
0x1274   :  { %v4178_v60 = vmul.f32 %v5837_v55, %v5821_v22 }
0x1276   :  { %v4186_v61 = vpack.c.bf16 %v4178_v60, %v4178_v60  ;;  %v4153_v63 = vpop.xlane.xlu0 %4152 }
0x1277   :  { %v4159_v0 = vpop.xlane.xlu2 %4158  ;;  %5838 = vrcp.f32 %v4153_v63 }
0x1278   :  { %5840 = vrcp.f32 %v4159_v0  ;;  %5474 = vmatmul.msk.bf16.vlgmr.msrb.gmra.mxu3 %vm606_vm8, %v4186_v61 }
0x1279   :  { %4407 = vmatpush.bf16.msrb.mxu3 %v4398_v27 }
0x127d   :  { %v5839_v1 = vpop.eup %5838 }
0x127e   :  { %v5841_v3 = vpop.eup %5840  ;;  %v4179_v4 = vmul.f32 %v5839_v1, %v5823_v34  ;;  %v4156_v5 = vpop.xlane.xlu1 %4155 }
0x127f   :  { %v4181_v2 = vmul.f32 %v5841_v3, %v5825_v36  ;;  %5842 = vrcp.f32 %v4156_v5  ;;  %v4162_v8 = vpop.xlane.xlu0 %4161  ;;  %v4456_v36 = vsel %vm874_vm9, %v5488_v33, 0 }
0x1280   :  { %v4187_v6 = vpack.c.bf16 %v4179_v4, %v4179_v4  ;;  %5844 = vrcp.f32 %v4162_v8 }
0x1281   :  { %v4189_v7 = vpack.c.bf16 %v4181_v2, %v4181_v2 }
0x1282   :  { %5475 = vmatmul.msk.bf16.vlgmr.msra.gmra.mxu0 %vm606_vm8, %v4187_v6  ;;  %v5695_v6 = vld [vmem:[%s7179_s11 + $0x1] ss:$0 sm:$0xff]  ;;  %s5909_s11 = smov 8  }
0x1283   :  { %5477 = vmatmul.msk.bf16.vlgmr.msra.gmra.mxu2 %vm606_vm8, %v4189_v7  ;;  %4436 = vmatpush.bf16.msra.mxu0 %v4427_v29 }
0x1285   :  { %v5843_v62 = vpop.eup %5842 }
0x1286   :  { %v5845_v9 = vpop.eup %5844  ;;  %v4180_v11 = vmul.f32 %v5843_v62, %v5827_v44  ;;  %v4165_v12 = vpop.xlane.xlu1 %4164 }
0x1287   :  { %v4182_v13 = vmul.f32 %v5845_v9, %v5829_v50  ;;  %5846 = vrcp.f32 %v4165_v12 }
0x1288   :  { %v4188_v14 = vpack.c.bf16 %v4180_v11, %v4180_v11 }
0x1289   :  { %v4190_v15 = vpack.c.bf16 %v4182_v13, %v4182_v13 }
0x128a   :  { %5476 = vmatmul.msk.bf16.vlgmr.msra.gmra.mxu1 %vm606_vm8, %v4188_v14 }
0x128b   :  { %5478 = vmatmul.msk.bf16.vlgmr.msra.gmra.mxu3 %vm606_vm8, %v4190_v15  ;;  %4465 = vmatpush.bf16.msra.mxu1 %v4456_v36 }
0x128d   :  { %v5847_v16 = vpop.eup %5846 }
0x128e   :  { %v4183_v17 = vmul.f32 %v5847_v16, %v5831_v37  ;;  %v4168_v18 = vpop.xlane.xlu2 %4167 }
0x128f   :  { %5848 = vrcp.f32 %v4168_v18 }
0x1290   :  { %v4191_v19 = vpack.c.bf16 %v4183_v17, %v4183_v17 }
0x1292   :  { %5479 = vmatmul.msk.bf16.vlgmr.msrb.gmra.mxu0 %vm606_vm8, %v4191_v19 }
0x1295   :  { %v5849_v20 = vpop.eup %5848 }
0x1296   :  { %v4184_v21 = vmul.f32 %v5849_v20, %v5833_v54 }
0x1298   :  { %v4192_v22 = vpack.c.bf16 %v4184_v21, %v4184_v21 }
0x129a   :  { %5480 = vmatmul.msk.bf16.vlgmr.msrb.gmra.mxu1 %vm606_vm8, %v4192_v22 }
0x12f3   :  { %v4208_v31 = vpop.f32.mrf.mxu2 }
0x12f4   :  { %v4345_v32 = vpack.c.bf16 %v4208_v31, %v4208_v31 }
0x12f6   :  { %v4359_v24 = vunpack.c.l.b16 %v4345_v32 }
0x12fb   :  { %v4210_v34 = vpop.f32.mrf.mxu2  ;;  %v4227_v35 = vpop.f32.mrf.mxu3 }
0x12fc   :  { %v4346_v40 = vpack.c.bf16 %v4227_v35, %v4227_v35 }
0x12fe   :  { %v4360_v41 = vunpack.c.l.b16 %v4346_v40  ;;  %v5633_v40 = vld [vmem:[%s7180_s12 + $0x18] sm:$0xff] }
0x12ff   :  { %v4246_v42 = vpop.f32.mrf.mxu0  ;;  %4558 = vmatpush.bf16.msra.mxu2 %v5633_v40 }
0x1300   :  { %v4361_v39 = vpack.c.b16 %v4360_v41, %v4359_v24  ;;  %v4347_v47 = vpack.c.bf16 %v4246_v42, %v4246_v42  ;;  %v5632_v42 = vld [vmem:[%s7180_s12 + $0x10] sm:$0xff] }
0x1302   :  { %5483 = vmatmul.msk.bf16.vlgmr.msrb.gmra.mxu2 %vm606_vm8, %v4361_v39  ;;  %v4391_v52 = vunpack.c.l.b16 %v4347_v47 }
0x1303   :  { %v4229_v44 = vpop.f32.mrf.mxu3  ;;  %4559 = vmatpush.bf16.msra.mxu2 %v5632_v42 }
0x1306   :  { %v4284_v50 = vpop.f32.mrf.mxu2 }
0x1307   :  { %v4248_v30 = vpop.f32.mrf.mxu0  ;;  %v4265_v43 = vpop.f32.mrf.mxu1  ;;  %v4349_v48 = vpack.c.bf16 %v4284_v50, %v4284_v50 }
0x1308   :  { %v4348_v51 = vpack.c.bf16 %v4265_v43, %v4265_v43 }
0x1309   :  { %v4420_v49 = vunpack.c.l.b16 %v4349_v48 }
0x130a   :  { %v4392_v37 = vunpack.c.l.b16 %v4348_v51 }
0x130c   :  { %v4393_v53 = vpack.c.b16 %v4392_v37, %v4391_v52 }
0x130e   :  { %v4286_v54 = vpop.f32.mrf.mxu2  ;;  %v4303_v56 = vpop.f32.mrf.mxu3  ;;  %5485 = vmatmul.msk.bf16.vlgmr.msrb.gmra.mxu3 %vm606_vm8, %v4393_v53 }
0x130f   :  { %v4350_v45 = vpack.c.bf16 %v4303_v56, %v4303_v56  ;;  %v4267_v57 = vpop.f32.mrf.mxu1  ;;  %v4322_v58 = vpop.f32.mrf.mxu0 }
0x1310   :  { %v4351_v60 = vpack.c.bf16 %v4322_v58, %v4322_v58 }
0x1311   :  { %v4421_v59 = vunpack.c.l.b16 %v4350_v45  ;;  %v5878_v45 = vld [vmem:[%s7184_s16 + $0x4] sm:$0x7] }
0x1312   :  { %v4449_v3 = vunpack.c.l.b16 %v4351_v60  ;;  %v4496_v57 = vperm.slane %v5878_v45, 2 }
0x1313   :  { %v4422_v55 = vpack.c.b16 %v4421_v59, %v4420_v49 }
0x1315   :  { %5487 = vmatmul.msk.bf16.vlgmr.msra.gmra.mxu0 %vm606_vm8, %v4422_v55 }
0x1316   :  { %v4305_v61 = vpop.f32.mrf.mxu3 }
0x1317   :  { %v4324_v63 = vpop.f32.mrf.mxu0  ;;  %v4341_v0 = vpop.f32.mrf.mxu1 }
0x1318   :  { %v4352_v1 = vpack.c.bf16 %v4341_v0, %v4341_v0  ;;  %v5879_v63 = vld [vmem:[%s7185_s17 + $0x4] sm:$0x7] }
0x1319   :  { %v4523_v0 = vperm.slane %v5879_v63, 2 }
0x131a   :  { %v4450_v4 = vunpack.c.l.b16 %v4352_v1 }
0x131c   :  { %v4451_v5 = vpack.c.b16 %v4450_v4, %v4449_v3 }
0x131e   :  { %5489 = vmatmul.msk.bf16.vlgmr.msra.gmra.mxu1 %vm606_vm8, %v4451_v5 }
0x131f   :  { %v4343_v2 = vpop.f32.mrf.mxu1 }
0x1385   :  { %v4377_v8 = vpop.f32.mrf.mxu2 }
0x1386   :  { %v4385_v62 = vadd.f32 %v5695_v6, %v4377_v8 }
0x138d   :  { %v4379_v12 = vpop.f32.mrf.mxu2 }
0x138e   :  { %v4386_v16 = vadd.f32 %v5695_v6, %v4379_v12  ;;  %v5637_v6 = vld [vmem:[%s7182_s14 + $0x38] sm:$0xff]  ;;  %v5696_v12 = vld [vmem:[%s7181_s13 + $0x1] ss:$0 sm:$0xff] }
0x138f   :  { %4609 = vmatpush.bf16.msra.mxu3 %v5637_v6 }
0x1391   :  { %v4409_v7 = vpop.f32.mrf.mxu3 }
0x1392   :  { %v4414_v9 = vadd.f32 %v4409_v7, %v4385_v62  ;;  %v4438_v11 = vpop.f32.mrf.mxu0  ;;  %v5636_v7 = vld [vmem:[%s7182_s14 + $0x30] sm:$0xff]  ;;  %v5635_v62 = vld [vmem:[%s7182_s14 + $0x28] sm:$0xff] }
0x1393   :  { %4610 = vmatpush.bf16.msra.mxu3 %v5636_v7 }
0x1394   :  { %v4443_v13 = vadd.f32 %v4438_v11, %v4414_v9  ;;  %v5634_v9 = vld [vmem:[%s7182_s14 + $0x20] sm:$0xff] }
0x1397   :  { %4611 = vmatpush.bf16.msra.mxu3 %v5635_v62 }
0x1399   :  { %v4411_v14 = vpop.f32.mrf.mxu3 }
0x139a   :  { %v4415_v18 = vadd.f32 %v4411_v14, %v4386_v16  ;;  %v4440_v21 = vpop.f32.mrf.mxu0 }
0x139b   :  { %v4467_v15 = vpop.f32.mrf.mxu1  ;;  %4612 = vmatpush.bf16.msra.mxu3 %v5634_v9 }
0x139c   :  { %v4472_v17 = vadd.f32 %v4467_v15, %v4443_v13  ;;  %v4444_v22 = vadd.f32 %v4440_v21, %v4415_v18 }
0x139e   :  { %v7098_v19 = vadd.f32 %v4472_v17, %v6842_v38 }
0x13a0   :  { %v4476_v20 = vsel %vm90_vm0, %v7098_v19, 0.0 }
0x13a1   :  { %4477 = vadd.xlane.f32.xlu0 %v4476_v20  ;;  %v5697_v20 = vld [vmem:[%s7183_s15 + $0x1] ss:$0 sm:$0xff] }
0x13a3   :  { %v4469_v23 = vpop.f32.mrf.mxu1 }
0x13a4   :  { %v4473_v25 = vadd.f32 %v4469_v23, %v4444_v22 }
0x13a6   :  { %v7103_v26 = vadd.f32 %v4473_v25, %v6847_v46 }
0x13a8   :  { %v4479_v27 = vsel %vm90_vm0, %v7103_v26, 0.0 }
0x13a9   :  { %4480 = vadd.xlane.f32.xlu1 %v4479_v27 }
0x1414   :  { %v4478_v28 = vpop.xlane.xlu0 %4477 }
0x1415   :  { %v4482_v29 = vmul.f32 %v4478_v28, %v6023_v10 }
0x1417   :  { %v4484_v38 = vsub.f32 %v7098_v19, %v4482_v29 }
0x1419   :  { %v4486_v31 = vmul.f32 %v4484_v38, %v4484_v38  ;;  %v4497_v55 = vmul.f32 %v4496_v57, %v4484_v38 }
0x141b   :  { %v4488_v32 = vsel %vm90_vm0, %v4486_v31, 0.0 }
0x141c   :  { %4489 = vadd.xlane.f32.xlu2 %v4488_v32  ;;  %v4481_v33 = vpop.xlane.xlu1 %4480 }
0x141d   :  { %v4483_v34 = vmul.f32 %v4481_v33, %v6023_v10 }
0x141f   :  { %v4485_v35 = vsub.f32 %v7103_v26, %v4483_v34 }
0x1421   :  { %v4487_v46 = vmul.f32 %v4485_v35, %v4485_v35  ;;  %v4498_v61 = vmul.f32 %v4496_v57, %v4485_v35 }
0x1423   :  { %v4491_v36 = vsel %vm90_vm0, %v4487_v46, 0.0 }
0x1424   :  { %4492 = vadd.xlane.f32.xlu0 %v4491_v36 }
0x148f   :  { %v4490_v24 = vpop.xlane.xlu2 %4489 }
0x1490   :  { %v4494_v41 = vmul.f32 %v4490_v24, %v6023_v10 }
0x1492   :  { %v4499_v39 = vadd.f32 1e-06, %v4494_v41 }
0x1494   :  { %5850 = vrsqrt.f32 %v4499_v39  ;;  %vm4507_vm9 = vweird.f32 %v4499_v39 }
0x1497   :  { %v4493_v44 = vpop.xlane.xlu0 %4492 }
0x1498   :  { %v4495_v47 = vmul.f32 %v4493_v44, %v6023_v10 }
0x149a   :  { %v5851_v50 = vpop.eup %5850  ;;  %v4500_v30 = vadd.f32 1e-06, %v4495_v47 }
0x149b   :  { %v4502_v43 = vmul.f32 %v5851_v50, %v4499_v39  ;;  %vm4508_vm8 = vweird.f32 %v5851_v50 }
0x149c   :  { %5852 = vrsqrt.f32 %v4500_v30  ;;  %vm4509_vm10 = vmor %vm4507_vm9, %vm4508_vm8  ;;  %vm4517_vm12 = vweird.f32 %v4500_v30 }
0x149d   :  { %v4503_v51 = vmul.f32 %v5851_v50, %v4502_v43 }
0x149f   :  { %v4504_v52 = vmul.f32 0.5, %v4503_v51 }
0x14a1   :  { %v4505_v37 = vsub.f32 1.5, %v4504_v52  ;;  %v5698_v52 = vld [vmem:[%s7186_s18] ss:$0 sm:$0xff]  ;;  %s5907_s18 = smov [#allocation2]  }
0x14a2   :  { %v5853_v53 = vpop.eup %5852  ;;  %s4690_s9 = sshll.u32 %s5907_s18, 4  ;;  %s4691_s9 = int_to_ptr.vmem [resolvable:$true] %s4690_s9 }
0x14a3   :  { %v4512_v48 = vmul.f32 %v5853_v53, %v4500_v30  ;;  %v4506_v54 = vmul.f32 %v5851_v50, %v4505_v37  ;;  %vm4518_vm11 = vweird.f32 %v5853_v53 }
0x14a4   :  { %vm4519_vm13 = vmor %vm4517_vm12, %vm4518_vm11 }
0x14a5   :  { %v4513_v56 = vmul.f32 %v5853_v53, %v4512_v48  ;;  %v4510_v49 = vsel %vm4509_vm10, %v5851_v50, %v4506_v54 }
0x14a6   :  { %v4521_v1 = vmul.f32 %v4510_v49, %v4497_v55 }
0x14a7   :  { %v4514_v58 = vmul.f32 0.5, %v4513_v56 }
0x14a8   :  { %v4524_v5 = vadd.f32 %v4523_v0, %v4521_v1 }
0x14a9   :  { %v4515_v59 = vsub.f32 1.5, %v4514_v58 }
0x14ab   :  { %v4516_v60 = vmul.f32 %v5853_v53, %v4515_v59 }
0x14ad   :  { %v4520_v3 = vsel %vm4519_vm13, %v5853_v53, %v4516_v60 }
0x14ae   :  { %v4522_v4 = vmul.f32 %v4520_v3, %v4498_v61 }
0x14b0   :  { %v4525_v2 = vadd.f32 %v4523_v0, %v4522_v4 }
0x14b2   :  { %v4526_v8 = vpack.c.bf16 %v4525_v2, %v4524_v5 }
0x14b4   :  { %5503 = vmatmul.msk.bf16.vlgmr.msra.gmra.mxu2 %vm90_vm0, %v4526_v8 }
0x1537   :  { %v4561_v11 = vpop.f32.mrf.mxu2 }
0x1538   :  { %v4562_v13 = vadd.f32 %v5696_v12, %v4561_v11 }
0x153a   :  { %v4566_v16 = vmax.f32 %v4562_v13, 0.0 }
0x153f   :  { %v4563_v14 = vpop.f32.mrf.mxu2 }
0x1540   :  { %v4564_v15 = vadd.f32 %v5696_v12, %v4563_v14 }
0x1542   :  { %v4567_v17 = vmax.f32 %v4564_v15, 0.0 }
0x1544   :  { %v4568_v18 = vpack.c.bf16 %v4567_v17, %v4566_v16 }
0x1546   :  { %5528 = vmatmul.msk.bf16.vlgmr.msra.gmra.mxu3 %vm2332_vm7, %v4568_v18 }
0x15c9   :  { %v4614_v21 = vpop.f32.mrf.mxu3 }
0x15ca   :  { %v4619_v22 = vadd.f32 %v4614_v21, %v7098_v19 }
0x15cc   :  { %v4626_v23 = vadd.f32 %v5697_v20, %v4619_v22 }
0x15ce   :  { %v4630_v25 = vsel %vm90_vm0, %v4626_v23, 0.0 }
0x15cf   :  { %4631 = vadd.xlane.f32.xlu1 %v4630_v25 }
0x15d1   :  { %v4616_v27 = vpop.f32.mrf.mxu3 }
0x15d2   :  { %v4620_v28 = vadd.f32 %v4616_v27, %v7103_v26 }
0x15d4   :  { %v4627_v29 = vadd.f32 %v5697_v20, %v4620_v28 }
0x15d6   :  { %v4633_v38 = vsel %vm90_vm0, %v4627_v29, 0.0 }
0x15d7   :  { %4634 = vadd.xlane.f32.xlu2 %v4633_v38 }
0x1642   :  { %v4632_v31 = vpop.xlane.xlu1 %4631 }
0x1643   :  { %v4636_v32 = vmul.f32 %v4632_v31, %v6023_v10 }
0x1645   :  { %v4638_v33 = vsub.f32 %v4626_v23, %v4636_v32 }
0x1647   :  { %v4640_v34 = vmul.f32 %v4638_v33, %v4638_v33  ;;  %v4653_v56 = vmul.f32 %v5698_v52, %v4638_v33 }
0x1649   :  { %v4642_v35 = vsel %vm90_vm0, %v4640_v34, 0.0 }
0x164a   :  { %4643 = vadd.xlane.f32.xlu0 %v4642_v35  ;;  %v4635_v19 = vpop.xlane.xlu2 %4634 }
0x164b   :  { %v4637_v46 = vmul.f32 %v4635_v19, %v6023_v10 }
0x164d   :  { %v4639_v36 = vsub.f32 %v4627_v29, %v4637_v46 }
0x164f   :  { %v4641_v40 = vmul.f32 %v4639_v36, %v4639_v36  ;;  %v4654_v61 = vmul.f32 %v5698_v52, %v4639_v36 }
0x1651   :  { %v4645_v24 = vsel %vm90_vm0, %v4641_v40, 0.0 }
0x1652   :  { %4646 = vadd.xlane.f32.xlu1 %v4645_v24 }
0x16bd   :  { %v4644_v26 = vpop.xlane.xlu0 %4643 }
0x16be   :  { %v4648_v41 = vmul.f32 %v4644_v26, %v6023_v10 }
0x16c0   :  { %v4655_v42 = vadd.f32 1e-06, %v4648_v41 }
0x16c2   :  { %5854 = vrsqrt.f32 %v4655_v42  ;;  %vm4663_vm14 = vweird.f32 %v4655_v42 }
0x16c5   :  { %v4647_v39 = vpop.xlane.xlu1 %4646 }
0x16c6   :  { %v4649_v44 = vmul.f32 %v4647_v39, %v6023_v10  ;;  %v5699_v10 = vld [vmem:[%s7187_s19] ss:$0 sm:$0xff]  ;;  %s4692_s19 = sshll.u32 %s7188_s20, 4  ;;  %s4693_s19 = int_to_ptr.hbm [resolvable:$true] %s4692_s19 }
0x16c8   :  { %v5855_v47 = vpop.eup %5854  ;;  %v4656_v50 = vadd.f32 1e-06, %v4649_v44 }
0x16c9   :  { %v4658_v30 = vmul.f32 %v5855_v47, %v4655_v42  ;;  %vm4664_vm7 = vweird.f32 %v5855_v47 }
0x16ca   :  { %5856 = vrsqrt.f32 %v4656_v50  ;;  %vm4665_vm15 = vmor %vm4663_vm14, %vm4664_vm7  ;;  %vm4673_vm2 = vweird.f32 %v4656_v50 }
0x16cb   :  { %v4659_v43 = vmul.f32 %v5855_v47, %v4658_v30 }
0x16cd   :  { %v4660_v51 = vmul.f32 0.5, %v4659_v43 }
0x16cf   :  { %v4661_v37 = vsub.f32 1.5, %v4660_v51 }
0x16d0   :  { %v5857_v53 = vpop.eup %5856 }
0x16d1   :  { %v4662_v48 = vmul.f32 %v5855_v47, %v4661_v37  ;;  %v4668_v54 = vmul.f32 %v5857_v53, %v4656_v50  ;;  %vm4674_vm1 = vweird.f32 %v5857_v53 }
0x16d2   :  { %vm4675_vm3 = vmor %vm4673_vm2, %vm4674_vm1 }
0x16d3   :  { %v4666_v45 = vsel %vm4665_vm15, %v5855_v47, %v4662_v48  ;;  %v4669_v57 = vmul.f32 %v5857_v53, %v4668_v54 }
0x16d4   :  { %v4677_v58 = vmul.f32 %v4666_v45, %v4653_v56 }
0x16d5   :  { %v4670_v49 = vmul.f32 0.5, %v4669_v57 }
0x16d6   :  { %v4682_v59 = vadd.f32 %v5699_v10, %v4677_v58 }
0x16d7   :  { %v4671_v55 = vsub.f32 1.5, %v4670_v49 }
0x16d8   :  { %4684 = vst.msk [vmem:[#allocation2] sm:$0xff] %vm90_vm0, %v4682_v59 }
0x16d9   :  { %v4672_v60 = vmul.f32 %v5857_v53, %v4671_v55 }
0x16db   :  { %v4676_v63 = vsel %vm4675_vm3, %v5857_v53, %v4672_v60 }
0x16dc   :  { %v4678_v0 = vmul.f32 %v4676_v63, %v4654_v61 }
0x16de   :  { %v4683_v1 = vadd.f32 %v5699_v10, %v4678_v0 }
0x16e0   :  { %4685 = vst.msk [vmem:[#allocation2 + $0x8] sm:$0xff] %vm90_vm0, %v4683_v1 }
0x16e1   :  { %4698 = dma.vmem_to_hbm [thread:$0]  %s4691_s9, 256, %s4693_s19, [#allocation3], %s5908_s5, %s5908_s5, %s5909_s11  }
0x16e2   :  { %5904 = dma.done.wait [#allocation3], 256  }
0x16e3   :  { %5905 = vsyncadd [#allocation3], 4294967040 }
0x16e4   :  { %4703 = vsyncpa [#allocation3], 1 }

</bundles_post_ra>
